<compile_context>
chip_gen: v6e
topology: v6e:2x2x1
jax: 0.10.0
libtpu: 0.0.40
codegen_flags: <defaults>
</compile_context>

<pallas_src>
import functools

import jax
import jax.numpy as jnp
from jax.experimental import pallas as pl
from jax.experimental.pallas import tpu as pltpu


# ----------------------------- kernel helpers -------------------------------

def _layernorm(x, gamma, beta, eps=1e-12):
    # x: (..., H) in f32; gamma/beta: (1, H). BERT uses eps=1e-12 (f32 only).
    mean = jnp.mean(x, axis=-1, keepdims=True)
    var = jnp.mean((x - mean) ** 2, axis=-1, keepdims=True)
    return (x - mean) * jax.lax.rsqrt(var + eps) * gamma + beta


# --------------------------- BERT encoder layer kernel -----------------------

def bert_layer_kernel(x_ref, bias_ref,
                      ln0g_ref, ln0b_ref,
                      wqkv_ref, bqkv_ref,
                      wo_ref, bo_ref, ln1g_ref, ln1b_ref,
                      w1_ref, b1_ref, w2_ref, b2_ref,
                      ln2g_ref, ln2b_ref,
                      o_ref, ctx_scr, *,
                      num_heads, head_dim, ffn_chunks, apply_input_ln, cls_only):
    Bt, S, H = x_ref.shape
    M = Bt * S
    I = w1_ref.shape[1]

    x = x_ref[...].astype(jnp.float32).reshape(M, H)          # (M, H) f32 rows
    if apply_input_ln:                                        # fused embedding LayerNorm
        x = _layernorm(x, ln0g_ref[...], ln0b_ref[...])
    mask_bias = bias_ref[...]                                 # (Bt, 1, S) additive bias

    x_bf = x.astype(jnp.bfloat16)

    # Fused QKV projection (bf16 operands, f32 accumulation); the 1/sqrt(dh)
    # scale is already folded into the Q columns/bias.  Single bf16 cast of
    # the whole (M, 3H) tensor.
    qkv = (jnp.dot(x_bf, wqkv_ref[...], preferred_element_type=jnp.float32)
           + bqkv_ref[...]).astype(jnp.bfloat16)              # (M, 3H) bf16

    # Multi-head attention.  Each head's normalized context (bf16) is written
    # into ctx_scr so the output projection is ONE K=H matmul after the loop.
    for h in range(num_heads):                                # small static loop
        s0 = h * head_dim
        qh = qkv[:, s0:s0 + head_dim].reshape(Bt, S, head_dim)
        kh = qkv[:, H + s0:H + s0 + head_dim].reshape(Bt, S, head_dim)
        vh = qkv[:, 2 * H + s0:2 * H + s0 + head_dim].reshape(Bt, S, head_dim)

        scores = jnp.einsum('bqd,bkd->bqk', qh, kh,
                            preferred_element_type=jnp.float32)        # (Bt,S,S)
        scores = scores + mask_bias                           # broadcast over query rows
        scores = scores - jnp.max(scores, axis=-1, keepdims=True)
        p = jnp.exp(scores)                                   # unnormalized probs (f32)
        inv = pl.reciprocal(jnp.sum(p, axis=-1, keepdims=True), approx=True)
        ctx = jnp.einsum('bqk,bkd->bqd', p.astype(jnp.bfloat16), vh,
                         preferred_element_type=jnp.float32)           # (Bt,S,dh)
        ctx = ctx * inv                                       # deferred normalization
        ctx_scr[:, s0:s0 + head_dim] = (
            ctx.reshape(M, head_dim).astype(jnp.bfloat16))

    # Single output projection over all heads (K = H -> full MXU depth).
    attn = jnp.dot(ctx_scr[...], wo_ref[...],
                   preferred_element_type=jnp.float32) + bo_ref[...]   # (M, H)

    # Residual + LayerNorm 1 (f32).
    y = _layernorm(attn + x, ln1g_ref[...], ln1b_ref[...])
    y_bf = y.astype(jnp.bfloat16)

    # FFN with intermediate-dim chunking (h1 never fully materializes in f32).
    ic = I // ffn_chunks
    h2 = jnp.zeros((M, H), jnp.float32)
    for c in range(ffn_chunks):                               # static weight slices
        c0 = c * ic
        h1 = (jnp.dot(y_bf, w1_ref[:, c0:c0 + ic],
                      preferred_element_type=jnp.float32) + b1_ref[:, c0:c0 + ic])
        # TODO(synk): HF BERT default is erf-based exact GELU; tanh approximation used.
        h1 = jax.nn.gelu(h1, approximate=True)
        h2 = h2 + jnp.dot(h1.astype(jnp.bfloat16), w2_ref[c0:c0 + ic, :],
                          preferred_element_type=jnp.float32)
    h2 = h2 + b2_ref[...]

    out = _layernorm(h2 + y, ln2g_ref[...], ln2b_ref[...]).reshape(Bt, S, H)
    if cls_only:
        o_ref[...] = out[:, 0:1, :].astype(o_ref.dtype)       # only the CLS row
    else:
        o_ref[...] = out.astype(o_ref.dtype)


# Flipped to False automatically if this jax build rejects single-buffered
# (pipeline_mode=pl.Buffered(1)) constant-weight BlockSpecs.
_SINGLE_BUFFER_WEIGHTS = True


def _const_spec(shape, single_buffer):
    """BlockSpec for grid-invariant params (weights/biases/LN): the index_map is
    constant, so double-buffering them is dead VMEM -> request 1 buffer."""
    index_map = lambda b: (0,) * len(shape)
    if single_buffer:
        return pl.BlockSpec(shape, index_map, pipeline_mode=pl.Buffered(1))
    return pl.BlockSpec(shape, index_map)


def bert_layer(x, mask_bias, emb_ln_g, emb_ln_b, lp, num_heads, *,
               batch_tile, apply_input_ln, cls_only, out_dtype, ffn_chunks=2):
    global _SINGLE_BUFFER_WEIGHTS
    B, S, H = x.shape
    I = lp["w1"].shape[1]
    head_dim = H // num_heads
    assert B % batch_tile == 0, "batch must be divisible by batch_tile"
    assert I % ffn_chunks == 0, "intermediate size must be divisible by ffn_chunks"
    grid = (B // batch_tile,)
    out_rows = 1 if cls_only else S
    M = batch_tile * S

    kernel = functools.partial(bert_layer_kernel,
                               num_heads=num_heads, head_dim=head_dim,
                               ffn_chunks=ffn_chunks,
                               apply_input_ln=apply_input_ln, cls_only=cls_only)

    def call(single_buffer):
        cs = lambda shape: _const_spec(shape, single_buffer)
        return pl.pallas_call(
            kernel,
            out_shape=jax.ShapeDtypeStruct((B, out_rows, H), out_dtype),
            grid=grid,
            in_specs=[
                pl.BlockSpec((batch_tile, S, H), lambda b: (b, 0, 0)),   # x (bf16)
                pl.BlockSpec((batch_tile, 1, S), lambda b: (b, 0, 0)),   # mask bias
                cs((1, H)), cs((1, H)),                                  # emb LN (layer 0)
                cs((H, 3 * H)), cs((1, 3 * H)),                          # fused QKV (bf16 W)
                cs((H, H)), cs((1, H)),                                  # wo (bf16), bo
                cs((1, H)), cs((1, H)),                                  # ln1 gamma, beta
                cs((H, I)), cs((1, I)),                                  # w1 (bf16), b1
                cs((I, H)), cs((1, H)),                                  # w2 (bf16), b2
                cs((1, H)), cs((1, H)),                                  # ln2 gamma, beta
            ],
            out_specs=pl.BlockSpec((batch_tile, out_rows, H), lambda b: (b, 0, 0)),
            scratch_shapes=[pltpu.VMEM((M, H), jnp.bfloat16)],           # per-head ctx buffer
            compiler_params=pltpu.CompilerParams(
                dimension_semantics=("parallel",),     # megacore-shard the batch axis
                # <= v7x 64 MiB physical VMEM; on v5e/v6e (128 MiB) this can be
                # raised toward ~100 MiB together with a larger batch_tile.
                vmem_limit_bytes=64 * 1024 * 1024),
        )(x, mask_bias, emb_ln_g, emb_ln_b,
          lp["wqkv"], lp["bqkv"], lp["wo"], lp["bo"], lp["ln1_g"], lp["ln1_b"],
          lp["w1"], lp["b1"], lp["w2"], lp["b2"], lp["ln2_g"], lp["ln2_b"])

    if _SINGLE_BUFFER_WEIGHTS:
        try:
            return call(True)
        except Exception:
            _SINGLE_BUFFER_WEIGHTS = False    # fall back to default double buffering
    return call(False)


# ------------------------------- model wrapper -------------------------------

def init_params(key, vocab_size, max_pos, type_vocab, hidden, intermediate, num_layers):
    init_std = 0.02
    keys = jax.random.split(key, 3 + num_layers)
    params = {
        "word_emb": init_std * jax.random.normal(keys[0], (vocab_size, hidden), jnp.float32),
        "pos_emb": init_std * jax.random.normal(keys[1], (max_pos, hidden), jnp.float32),
        "type_emb": init_std * jax.random.normal(keys[2], (type_vocab, hidden), jnp.float32),
        "emb_ln_g": jnp.ones((1, hidden), jnp.float32),
        "emb_ln_b": jnp.zeros((1, hidden), jnp.float32),
        "layers": [],
    }
    for l in range(num_layers):
        lk = jax.random.split(keys[3 + l], 6)
        params["layers"].append({
            "wq": init_std * jax.random.normal(lk[0], (hidden, hidden), jnp.float32),
            "bq": jnp.zeros((1, hidden), jnp.float32),
            "wk": init_std * jax.random.normal(lk[1], (hidden, hidden), jnp.float32),
            "bk": jnp.zeros((1, hidden), jnp.float32),
            "wv": init_std * jax.random.normal(lk[2], (hidden, hidden), jnp.float32),
            "bv": jnp.zeros((1, hidden), jnp.float32),
            "wo": init_std * jax.random.normal(lk[3], (hidden, hidden), jnp.float32),
            "bo": jnp.zeros((1, hidden), jnp.float32),
            "ln1_g": jnp.ones((1, hidden), jnp.float32),
            "ln1_b": jnp.zeros((1, hidden), jnp.float32),
            "w1": init_std * jax.random.normal(lk[4], (hidden, intermediate), jnp.float32),
            "b1": jnp.zeros((1, intermediate), jnp.float32),
            "w2": init_std * jax.random.normal(lk[5], (intermediate, hidden), jnp.float32),
            "b2": jnp.zeros((1, hidden), jnp.float32),
            "ln2_g": jnp.ones((1, hidden), jnp.float32),
            "ln2_b": jnp.zeros((1, hidden), jnp.float32),
        })
    return params


def prepare_layer(lp, num_heads):
    """Fuse QKV, fold 1/sqrt(head_dim) into Q, cast matmul weights to bf16."""
    H = lp["wq"].shape[0]
    head_dim = H // num_heads
    scale = 1.0 / (head_dim ** 0.5)
    wqkv = jnp.concatenate([lp["wq"] * scale, lp["wk"], lp["wv"]], axis=1)
    bqkv = jnp.concatenate([lp["bq"] * scale, lp["bk"], lp["bv"]], axis=1)
    return {
        "wqkv": wqkv.astype(jnp.bfloat16), "bqkv": bqkv.astype(jnp.float32),
        "wo": lp["wo"].astype(jnp.bfloat16), "bo": lp["bo"],
        "ln1_g": lp["ln1_g"], "ln1_b": lp["ln1_b"],
        "w1": lp["w1"].astype(jnp.bfloat16), "b1": lp["b1"],
        "w2": lp["w2"].astype(jnp.bfloat16), "b2": lp["b2"],
        "ln2_g": lp["ln2_g"], "ln2_b": lp["ln2_b"],
    }


def behrt_forward(params, input_ids, attention_mask, num_heads, batch_tile=1):
    """BEHRTModel.forward: BertModel(input_ids, attention_mask).last_hidden_state[:, 0, :]."""
    B, S = input_ids.shape
    # Embedding gathers are glue in plain JAX; the embedding LayerNorm is fused
    # into the first encoder-layer kernel.  Activations travel as bf16 between
    # layer kernels (f32 math inside).
    positions = jnp.arange(S, dtype=jnp.int32)
    x = (jnp.take(params["word_emb"], input_ids, axis=0)
         + params["pos_emb"][positions][None, :, :]
         + params["type_emb"][0][None, None, :])              # token_type_ids default 0
    x = x.astype(jnp.bfloat16)

    # Extended attention mask: (1 - mask) * -10000, broadcast over query rows.
    mask_bias = (1.0 - attention_mask.astype(jnp.float32))[:, None, :] * -10000.0  # (B,1,S)

    layers = [prepare_layer(lp, num_heads) for lp in params["layers"]]
    n = len(layers)
    for i, lp in enumerate(layers):
        last = (i == n - 1)
        x = bert_layer(x, mask_bias, params["emb_ln_g"], params["emb_ln_b"],
                       lp, num_heads, batch_tile=batch_tile,
                       apply_input_ln=(i == 0), cls_only=last,
                       out_dtype=jnp.float32 if last else jnp.bfloat16)
    # Last layer wrote only the CLS row: x is (B, 1, H) in f32.
    return x[:, 0, :]                                         # CLS embedding (B, H)


# ----------------------------------- main ------------------------------------

if __name__ == "__main__":
    # Scaled-down BertConfig (structure identical to BEHRTModel.__init__).
    num_diseases, num_ages, num_segments = 20, 10, 2
    num_admission_locs, num_discharge_locs = 5, 5
    vocab_size = (num_diseases + num_ages + num_segments
                  + num_admission_locs + num_discharge_locs + 2)  # = 44
    hidden = 128
    num_heads = 4
    num_layers = 2
    intermediate = 256
    max_pos = 512
    type_vocab = 2

    B, S = 4, 8
    batch_tile = 2          # grid length 2 -> both v7x TensorCores get work

    key = jax.random.PRNGKey(0)
    pkey, ikey = jax.random.split(key)
    params = init_params(pkey, vocab_size, max_pos, type_vocab,
                         hidden, intermediate, num_layers)

    input_ids = jax.random.randint(ikey, (B, S), 0, vocab_size, dtype=jnp.int32)
    attention_mask = jnp.ones((B, S), dtype=jnp.int32)
    attention_mask = attention_mask.at[1, 6:].set(0)   # padding on second sample
    attention_mask = attention_mask.at[3, 5:].set(0)   # padding on fourth sample

    cls = behrt_forward(params, input_ids, attention_mask, num_heads,
                        batch_tile=batch_tile)
    cls = jax.block_until_ready(cls)
    assert cls.shape == (B, hidden)
    assert bool(jnp.all(jnp.isfinite(cls)))
    print("KERNEL_OK")
</pallas_src>

<mosaic_0001>
module attributes {stable_mosaic.version = 11 : i64} {
  func.func @bert_layer_kernel(%arg0: i32, %arg1: memref<2x8x128xbf16, #tpu.memory_space<vmem>>, %arg2: memref<2x1x8xf32, #tpu.memory_space<vmem>>, %arg3: memref<1x128xf32, #tpu.memory_space<vmem>>, %arg4: memref<1x128xf32, #tpu.memory_space<vmem>>, %arg5: memref<128x384xbf16, #tpu.memory_space<vmem>>, %arg6: memref<1x384xf32, #tpu.memory_space<vmem>>, %arg7: memref<128x128xbf16, #tpu.memory_space<vmem>>, %arg8: memref<1x128xf32, #tpu.memory_space<vmem>>, %arg9: memref<1x128xf32, #tpu.memory_space<vmem>>, %arg10: memref<1x128xf32, #tpu.memory_space<vmem>>, %arg11: memref<128x256xbf16, #tpu.memory_space<vmem>>, %arg12: memref<1x256xf32, #tpu.memory_space<vmem>>, %arg13: memref<256x128xbf16, #tpu.memory_space<vmem>>, %arg14: memref<1x128xf32, #tpu.memory_space<vmem>>, %arg15: memref<1x128xf32, #tpu.memory_space<vmem>>, %arg16: memref<1x128xf32, #tpu.memory_space<vmem>>, %arg17: memref<2x8x128xbf16, #tpu.memory_space<vmem>>, %arg18: memref<16x128xbf16, #tpu.memory_space<vmem>>) attributes {dimension_semantics = [#tpu.dimension_semantics<parallel>], iteration_bounds = array<i64: 2>, scalar_prefetch = 0 : i64, scratch_operands = 1 : i64, tpu.core_type = #tpu.core_type<tc>, window_params = [{transform_indices = @transform_0, window_bounds = array<i64: 2, 8, 128>}, {transform_indices = @transform_1, window_bounds = array<i64: 2, 1, 8>}, {pipeline_mode = #tpu.pipeline_mode<synchronous>, transform_indices = @transform_2, window_bounds = array<i64: 1, 128>}, {pipeline_mode = #tpu.pipeline_mode<synchronous>, transform_indices = @transform_3, window_bounds = array<i64: 1, 128>}, {pipeline_mode = #tpu.pipeline_mode<synchronous>, transform_indices = @transform_4, window_bounds = array<i64: 128, 384>}, {pipeline_mode = #tpu.pipeline_mode<synchronous>, transform_indices = @transform_5, window_bounds = array<i64: 1, 384>}, {pipeline_mode = #tpu.pipeline_mode<synchronous>, transform_indices = @transform_6, window_bounds = array<i64: 128, 128>}, {pipeline_mode = #tpu.pipeline_mode<synchronous>, transform_indices = @transform_7, window_bounds = array<i64: 1, 128>}, {pipeline_mode = #tpu.pipeline_mode<synchronous>, transform_indices = @transform_8, window_bounds = array<i64: 1, 128>}, {pipeline_mode = #tpu.pipeline_mode<synchronous>, transform_indices = @transform_9, window_bounds = array<i64: 1, 128>}, {pipeline_mode = #tpu.pipeline_mode<synchronous>, transform_indices = @transform_10, window_bounds = array<i64: 128, 256>}, {pipeline_mode = #tpu.pipeline_mode<synchronous>, transform_indices = @transform_11, window_bounds = array<i64: 1, 256>}, {pipeline_mode = #tpu.pipeline_mode<synchronous>, transform_indices = @transform_12, window_bounds = array<i64: 256, 128>}, {pipeline_mode = #tpu.pipeline_mode<synchronous>, transform_indices = @transform_13, window_bounds = array<i64: 1, 128>}, {pipeline_mode = #tpu.pipeline_mode<synchronous>, transform_indices = @transform_14, window_bounds = array<i64: 1, 128>}, {pipeline_mode = #tpu.pipeline_mode<synchronous>, transform_indices = @transform_15, window_bounds = array<i64: 1, 128>}, {transform_indices = @transform_16, window_bounds = array<i64: 2, 8, 128>}]} {
    %c0 = arith.constant 0 : index
    %c0_0 = arith.constant 0 : index
    %c0_1 = arith.constant 0 : index
    %0 = vector.load %arg1[%c0, %c0_0, %c0_1] : memref<2x8x128xbf16, #tpu.memory_space<vmem>>, vector<2x8x128xbf16>
    %1 = arith.extf %0 : vector<2x8x128xbf16> to vector<2x8x128xf32>
    %2 = vector.shape_cast %1 : vector<2x8x128xf32> to vector<16x128xf32>
    %c0_2 = arith.constant 0 : index
    %c0_3 = arith.constant 0 : index
    %3 = vector.load %arg3[%c0_2, %c0_3] : memref<1x128xf32, #tpu.memory_space<vmem>>, vector<1x128xf32>
    %c0_4 = arith.constant 0 : index
    %c0_5 = arith.constant 0 : index
    %4 = vector.load %arg4[%c0_4, %c0_5] : memref<1x128xf32, #tpu.memory_space<vmem>>, vector<1x128xf32>
    %cst = arith.constant dense<0.000000e+00> : vector<16xf32>
    %5 = vector.multi_reduction <add>, %2, %cst [1] : vector<16x128xf32> to vector<16xf32>
    %6 = vector.shape_cast %5 : vector<16xf32> to vector<16x1xf32>
    %cst_6 = arith.constant 1.280000e+02 : f32
    %7 = vector.broadcast %cst_6 : f32 to vector<16x1xf32>
    %8 = arith.divf %6, %7 : vector<16x1xf32>
    %9 = vector.broadcast %8 : vector<16x1xf32> to vector<16x128xf32>
    %10 = arith.subf %2, %9 : vector<16x128xf32>
    %11 = arith.mulf %10, %10 : vector<16x128xf32>
    %cst_7 = arith.constant dense<0.000000e+00> : vector<16xf32>
    %12 = vector.multi_reduction <add>, %11, %cst_7 [1] : vector<16x128xf32> to vector<16xf32>
    %13 = vector.shape_cast %12 : vector<16xf32> to vector<16x1xf32>
    %cst_8 = arith.constant 1.280000e+02 : f32
    %14 = vector.broadcast %cst_8 : f32 to vector<16x1xf32>
    %15 = arith.divf %13, %14 : vector<16x1xf32>
    %16 = vector.broadcast %8 : vector<16x1xf32> to vector<16x128xf32>
    %17 = arith.subf %2, %16 : vector<16x128xf32>
    %cst_9 = arith.constant 9.99999996E-13 : f32
    %18 = vector.broadcast %cst_9 : f32 to vector<16x1xf32>
    %19 = arith.addf %15, %18 : vector<16x1xf32>
    %20 = math.rsqrt %19 : vector<16x1xf32>
    %21 = vector.broadcast %20 : vector<16x1xf32> to vector<16x128xf32>
    %22 = arith.mulf %17, %21 : vector<16x128xf32>
    %23 = vector.broadcast %3 : vector<1x128xf32> to vector<16x128xf32>
    %24 = arith.mulf %22, %23 : vector<16x128xf32>
    %25 = vector.broadcast %4 : vector<1x128xf32> to vector<16x128xf32>
    %26 = arith.addf %24, %25 : vector<16x128xf32>
    %c0_10 = arith.constant 0 : index
    %c0_11 = arith.constant 0 : index
    %c0_12 = arith.constant 0 : index
    %27 = vector.load %arg2[%c0_10, %c0_11, %c0_12] : memref<2x1x8xf32, #tpu.memory_space<vmem>>, vector<2x1x8xf32>
    %28 = arith.truncf %26 : vector<16x128xf32> to vector<16x128xbf16>
    %c0_13 = arith.constant 0 : index
    %c0_14 = arith.constant 0 : index
    %29 = vector.load %arg5[%c0_13, %c0_14] : memref<128x384xbf16, #tpu.memory_space<vmem>>, vector<128x384xbf16>
    %cst_15 = arith.constant dense<0.000000e+00> : vector<16x384xf32>
    %30 = tpu.matmul %28, %29, %cst_15 {dimension_numbers = #tpu.dot_dimension_numbers<[1], [0], [0], [1], [0, 0, 1, 1], [], []>} : vector<16x128xbf16>, vector<128x384xbf16>, vector<16x384xf32> -> vector<16x384xf32>
    %c0_16 = arith.constant 0 : index
    %c0_17 = arith.constant 0 : index
    %31 = vector.load %arg6[%c0_16, %c0_17] : memref<1x384xf32, #tpu.memory_space<vmem>>, vector<1x384xf32>
    %32 = vector.broadcast %31 : vector<1x384xf32> to vector<16x384xf32>
    %33 = arith.addf %30, %32 : vector<16x384xf32>
    %34 = arith.truncf %33 : vector<16x384xf32> to vector<16x384xbf16>
    %35 = vector.extract_strided_slice %34 {offsets = [0, 0], sizes = [16, 32], strides = [1, 1]} : vector<16x384xbf16> to vector<16x32xbf16>
    %36 = vector.shape_cast %35 : vector<16x32xbf16> to vector<2x8x32xbf16>
    %37 = vector.extract_strided_slice %34 {offsets = [0, 128], sizes = [16, 32], strides = [1, 1]} : vector<16x384xbf16> to vector<16x32xbf16>
    %38 = vector.shape_cast %37 : vector<16x32xbf16> to vector<2x8x32xbf16>
    %39 = vector.extract_strided_slice %34 {offsets = [0, 256], sizes = [16, 32], strides = [1, 1]} : vector<16x384xbf16> to vector<16x32xbf16>
    %40 = vector.shape_cast %39 : vector<16x32xbf16> to vector<2x8x32xbf16>
    "tpu.trace_start"() <{level = 10 : i32, message = "bqd,bkd->bqk"}> : () -> ()
    %cst_18 = arith.constant dense<0.000000e+00> : vector<2x8x8xf32>
    %41 = tpu.matmul %36, %38, %cst_18 {dimension_numbers = #tpu.dot_dimension_numbers<[2], [2], [1], [1], [0, 0, 0, 1, 1, 1], [0], [0]>} : vector<2x8x32xbf16>, vector<2x8x32xbf16>, vector<2x8x8xf32> -> vector<2x8x8xf32>
    "tpu.trace_stop"() : () -> ()
    %42 = vector.broadcast %27 : vector<2x1x8xf32> to vector<2x8x8xf32>
    %43 = arith.addf %41, %42 : vector<2x8x8xf32>
    %cst_19 = arith.constant dense<0xFF800000> : vector<2x8xf32>
    %44 = vector.multi_reduction <maximumf>, %43, %cst_19 [2] : vector<2x8x8xf32> to vector<2x8xf32>
    %45 = vector.shape_cast %44 : vector<2x8xf32> to vector<2x8x1xf32>
    %46 = vector.broadcast %45 : vector<2x8x1xf32> to vector<2x8x8xf32>
    %47 = arith.subf %43, %46 : vector<2x8x8xf32>
    %48 = math.exp %47 : vector<2x8x8xf32>
    %cst_20 = arith.constant dense<0.000000e+00> : vector<2x8xf32>
    %49 = vector.multi_reduction <add>, %48, %cst_20 [2] : vector<2x8x8xf32> to vector<2x8xf32>
    %50 = vector.shape_cast %49 : vector<2x8xf32> to vector<2x8x1xf32>
    %51 = tpu.reciprocal %50 {approx = true} : vector<2x8x1xf32> -> vector<2x8x1xf32>
    %52 = arith.truncf %48 : vector<2x8x8xf32> to vector<2x8x8xbf16>
    "tpu.trace_start"() <{level = 10 : i32, message = "bqk,bkd->bqd"}> : () -> ()
    %cst_21 = arith.constant dense<0.000000e+00> : vector<2x8x32xf32>
    %53 = tpu.matmul %52, %40, %cst_21 {dimension_numbers = #tpu.dot_dimension_numbers<[2], [1], [1], [2], [0, 0, 0, 1, 1, 2], [0], [0]>} : vector<2x8x8xbf16>, vector<2x8x32xbf16>, vector<2x8x32xf32> -> vector<2x8x32xf32>
    "tpu.trace_stop"() : () -> ()
    %54 = vector.broadcast %51 : vector<2x8x1xf32> to vector<2x8x32xf32>
    %55 = arith.mulf %53, %54 : vector<2x8x32xf32>
    %56 = vector.shape_cast %55 : vector<2x8x32xf32> to vector<16x32xf32>
    %57 = arith.truncf %56 : vector<16x32xf32> to vector<16x32xbf16>
    %c0_22 = arith.constant 0 : index
    %c0_23 = arith.constant 0 : index
    %58 = vector.load %arg18[%c0_22, %c0_23] : memref<16x128xbf16, #tpu.memory_space<vmem>>, vector<16x32xbf16>
    tpu.vector_store %arg18[%c0_22, %c0_23], %57 {strides = array<i32>} : memref<16x128xbf16, #tpu.memory_space<vmem>>, vector<16x32xbf16>,
    %59 = vector.extract_strided_slice %34 {offsets = [0, 32], sizes = [16, 32], strides = [1, 1]} : vector<16x384xbf16> to vector<16x32xbf16>
    %60 = vector.shape_cast %59 : vector<16x32xbf16> to vector<2x8x32xbf16>
    %61 = vector.extract_strided_slice %34 {offsets = [0, 160], sizes = [16, 32], strides = [1, 1]} : vector<16x384xbf16> to vector<16x32xbf16>
    %62 = vector.shape_cast %61 : vector<16x32xbf16> to vector<2x8x32xbf16>
    %63 = vector.extract_strided_slice %34 {offsets = [0, 288], sizes = [16, 32], strides = [1, 1]} : vector<16x384xbf16> to vector<16x32xbf16>
    %64 = vector.shape_cast %63 : vector<16x32xbf16> to vector<2x8x32xbf16>
    "tpu.trace_start"() <{level = 10 : i32, message = "bqd,bkd->bqk"}> : () -> ()
    %cst_24 = arith.constant dense<0.000000e+00> : vector<2x8x8xf32>
    %65 = tpu.matmul %60, %62, %cst_24 {dimension_numbers = #tpu.dot_dimension_numbers<[2], [2], [1], [1], [0, 0, 0, 1, 1, 1], [0], [0]>} : vector<2x8x32xbf16>, vector<2x8x32xbf16>, vector<2x8x8xf32> -> vector<2x8x8xf32>
    "tpu.trace_stop"() : () -> ()
    %66 = vector.broadcast %27 : vector<2x1x8xf32> to vector<2x8x8xf32>
    %67 = arith.addf %65, %66 : vector<2x8x8xf32>
    %cst_25 = arith.constant dense<0xFF800000> : vector<2x8xf32>
    %68 = vector.multi_reduction <maximumf>, %67, %cst_25 [2] : vector<2x8x8xf32> to vector<2x8xf32>
    %69 = vector.shape_cast %68 : vector<2x8xf32> to vector<2x8x1xf32>
    %70 = vector.broadcast %69 : vector<2x8x1xf32> to vector<2x8x8xf32>
    %71 = arith.subf %67, %70 : vector<2x8x8xf32>
    %72 = math.exp %71 : vector<2x8x8xf32>
    %cst_26 = arith.constant dense<0.000000e+00> : vector<2x8xf32>
    %73 = vector.multi_reduction <add>, %72, %cst_26 [2] : vector<2x8x8xf32> to vector<2x8xf32>
    %74 = vector.shape_cast %73 : vector<2x8xf32> to vector<2x8x1xf32>
    %75 = tpu.reciprocal %74 {approx = true} : vector<2x8x1xf32> -> vector<2x8x1xf32>
    %76 = arith.truncf %72 : vector<2x8x8xf32> to vector<2x8x8xbf16>
    "tpu.trace_start"() <{level = 10 : i32, message = "bqk,bkd->bqd"}> : () -> ()
    %cst_27 = arith.constant dense<0.000000e+00> : vector<2x8x32xf32>
    %77 = tpu.matmul %76, %64, %cst_27 {dimension_numbers = #tpu.dot_dimension_numbers<[2], [1], [1], [2], [0, 0, 0, 1, 1, 2], [0], [0]>} : vector<2x8x8xbf16>, vector<2x8x32xbf16>, vector<2x8x32xf32> -> vector<2x8x32xf32>
    "tpu.trace_stop"() : () -> ()
    %78 = vector.broadcast %75 : vector<2x8x1xf32> to vector<2x8x32xf32>
    %79 = arith.mulf %77, %78 : vector<2x8x32xf32>
    %80 = vector.shape_cast %79 : vector<2x8x32xf32> to vector<16x32xf32>
    %81 = arith.truncf %80 : vector<16x32xf32> to vector<16x32xbf16>
    %c0_28 = arith.constant 0 : index
    %c32 = arith.constant 32 : index
    %82 = vector.load %arg18[%c0_28, %c32] : memref<16x128xbf16, #tpu.memory_space<vmem>>, vector<16x32xbf16>
    tpu.vector_store %arg18[%c0_28, %c32], %81 {strides = array<i32>} : memref<16x128xbf16, #tpu.memory_space<vmem>>, vector<16x32xbf16>,
    %83 = vector.extract_strided_slice %34 {offsets = [0, 64], sizes = [16, 32], strides = [1, 1]} : vector<16x384xbf16> to vector<16x32xbf16>
    %84 = vector.shape_cast %83 : vector<16x32xbf16> to vector<2x8x32xbf16>
    %85 = vector.extract_strided_slice %34 {offsets = [0, 192], sizes = [16, 32], strides = [1, 1]} : vector<16x384xbf16> to vector<16x32xbf16>
    %86 = vector.shape_cast %85 : vector<16x32xbf16> to vector<2x8x32xbf16>
    %87 = vector.extract_strided_slice %34 {offsets = [0, 320], sizes = [16, 32], strides = [1, 1]} : vector<16x384xbf16> to vector<16x32xbf16>
    %88 = vector.shape_cast %87 : vector<16x32xbf16> to vector<2x8x32xbf16>
    "tpu.trace_start"() <{level = 10 : i32, message = "bqd,bkd->bqk"}> : () -> ()
    %cst_29 = arith.constant dense<0.000000e+00> : vector<2x8x8xf32>
    %89 = tpu.matmul %84, %86, %cst_29 {dimension_numbers = #tpu.dot_dimension_numbers<[2], [2], [1], [1], [0, 0, 0, 1, 1, 1], [0], [0]>} : vector<2x8x32xbf16>, vector<2x8x32xbf16>, vector<2x8x8xf32> -> vector<2x8x8xf32>
    "tpu.trace_stop"() : () -> ()
    %90 = vector.broadcast %27 : vector<2x1x8xf32> to vector<2x8x8xf32>
    %91 = arith.addf %89, %90 : vector<2x8x8xf32>
    %cst_30 = arith.constant dense<0xFF800000> : vector<2x8xf32>
    %92 = vector.multi_reduction <maximumf>, %91, %cst_30 [2] : vector<2x8x8xf32> to vector<2x8xf32>
    %93 = vector.shape_cast %92 : vector<2x8xf32> to vector<2x8x1xf32>
    %94 = vector.broadcast %93 : vector<2x8x1xf32> to vector<2x8x8xf32>
    %95 = arith.subf %91, %94 : vector<2x8x8xf32>
    %96 = math.exp %95 : vector<2x8x8xf32>
    %cst_31 = arith.constant dense<0.000000e+00> : vector<2x8xf32>
    %97 = vector.multi_reduction <add>, %96, %cst_31 [2] : vector<2x8x8xf32> to vector<2x8xf32>
    %98 = vector.shape_cast %97 : vector<2x8xf32> to vector<2x8x1xf32>
    %99 = tpu.reciprocal %98 {approx = true} : vector<2x8x1xf32> -> vector<2x8x1xf32>
    %100 = arith.truncf %96 : vector<2x8x8xf32> to vector<2x8x8xbf16>
    "tpu.trace_start"() <{level = 10 : i32, message = "bqk,bkd->bqd"}> : () -> ()
    %cst_32 = arith.constant dense<0.000000e+00> : vector<2x8x32xf32>
    %101 = tpu.matmul %100, %88, %cst_32 {dimension_numbers = #tpu.dot_dimension_numbers<[2], [1], [1], [2], [0, 0, 0, 1, 1, 2], [0], [0]>} : vector<2x8x8xbf16>, vector<2x8x32xbf16>, vector<2x8x32xf32> -> vector<2x8x32xf32>
    "tpu.trace_stop"() : () -> ()
    %102 = vector.broadcast %99 : vector<2x8x1xf32> to vector<2x8x32xf32>
    %103 = arith.mulf %101, %102 : vector<2x8x32xf32>
    %104 = vector.shape_cast %103 : vector<2x8x32xf32> to vector<16x32xf32>
    %105 = arith.truncf %104 : vector<16x32xf32> to vector<16x32xbf16>
    %c0_33 = arith.constant 0 : index
    %c64 = arith.constant 64 : index
    %106 = vector.load %arg18[%c0_33, %c64] : memref<16x128xbf16, #tpu.memory_space<vmem>>, vector<16x32xbf16>
    tpu.vector_store %arg18[%c0_33, %c64], %105 {strides = array<i32>} : memref<16x128xbf16, #tpu.memory_space<vmem>>, vector<16x32xbf16>,
    %107 = vector.extract_strided_slice %34 {offsets = [0, 96], sizes = [16, 32], strides = [1, 1]} : vector<16x384xbf16> to vector<16x32xbf16>
    %108 = vector.shape_cast %107 : vector<16x32xbf16> to vector<2x8x32xbf16>
    %109 = vector.extract_strided_slice %34 {offsets = [0, 224], sizes = [16, 32], strides = [1, 1]} : vector<16x384xbf16> to vector<16x32xbf16>
    %110 = vector.shape_cast %109 : vector<16x32xbf16> to vector<2x8x32xbf16>
    %111 = vector.extract_strided_slice %34 {offsets = [0, 352], sizes = [16, 32], strides = [1, 1]} : vector<16x384xbf16> to vector<16x32xbf16>
    %112 = vector.shape_cast %111 : vector<16x32xbf16> to vector<2x8x32xbf16>
    "tpu.trace_start"() <{level = 10 : i32, message = "bqd,bkd->bqk"}> : () -> ()
    %cst_34 = arith.constant dense<0.000000e+00> : vector<2x8x8xf32>
    %113 = tpu.matmul %108, %110, %cst_34 {dimension_numbers = #tpu.dot_dimension_numbers<[2], [2], [1], [1], [0, 0, 0, 1, 1, 1], [0], [0]>} : vector<2x8x32xbf16>, vector<2x8x32xbf16>, vector<2x8x8xf32> -> vector<2x8x8xf32>
    "tpu.trace_stop"() : () -> ()
    %114 = vector.broadcast %27 : vector<2x1x8xf32> to vector<2x8x8xf32>
    %115 = arith.addf %113, %114 : vector<2x8x8xf32>
    %cst_35 = arith.constant dense<0xFF800000> : vector<2x8xf32>
    %116 = vector.multi_reduction <maximumf>, %115, %cst_35 [2] : vector<2x8x8xf32> to vector<2x8xf32>
    %117 = vector.shape_cast %116 : vector<2x8xf32> to vector<2x8x1xf32>
    %118 = vector.broadcast %117 : vector<2x8x1xf32> to vector<2x8x8xf32>
    %119 = arith.subf %115, %118 : vector<2x8x8xf32>
    %120 = math.exp %119 : vector<2x8x8xf32>
    %cst_36 = arith.constant dense<0.000000e+00> : vector<2x8xf32>
    %121 = vector.multi_reduction <add>, %120, %cst_36 [2] : vector<2x8x8xf32> to vector<2x8xf32>
    %122 = vector.shape_cast %121 : vector<2x8xf32> to vector<2x8x1xf32>
    %123 = tpu.reciprocal %122 {approx = true} : vector<2x8x1xf32> -> vector<2x8x1xf32>
    %124 = arith.truncf %120 : vector<2x8x8xf32> to vector<2x8x8xbf16>
    "tpu.trace_start"() <{level = 10 : i32, message = "bqk,bkd->bqd"}> : () -> ()
    %cst_37 = arith.constant dense<0.000000e+00> : vector<2x8x32xf32>
    %125 = tpu.matmul %124, %112, %cst_37 {dimension_numbers = #tpu.dot_dimension_numbers<[2], [1], [1], [2], [0, 0, 0, 1, 1, 2], [0], [0]>} : vector<2x8x8xbf16>, vector<2x8x32xbf16>, vector<2x8x32xf32> -> vector<2x8x32xf32>
    "tpu.trace_stop"() : () -> ()
    %126 = vector.broadcast %123 : vector<2x8x1xf32> to vector<2x8x32xf32>
    %127 = arith.mulf %125, %126 : vector<2x8x32xf32>
    %128 = vector.shape_cast %127 : vector<2x8x32xf32> to vector<16x32xf32>
    %129 = arith.truncf %128 : vector<16x32xf32> to vector<16x32xbf16>
    %c0_38 = arith.constant 0 : index
    %c96 = arith.constant 96 : index
    %130 = vector.load %arg18[%c0_38, %c96] : memref<16x128xbf16, #tpu.memory_space<vmem>>, vector<16x32xbf16>
    tpu.vector_store %arg18[%c0_38, %c96], %129 {strides = array<i32>} : memref<16x128xbf16, #tpu.memory_space<vmem>>, vector<16x32xbf16>,
    %c0_39 = arith.constant 0 : index
    %c0_40 = arith.constant 0 : index
    %131 = vector.load %arg18[%c0_39, %c0_40] : memref<16x128xbf16, #tpu.memory_space<vmem>>, vector<16x128xbf16>
    %c0_41 = arith.constant 0 : index
    %c0_42 = arith.constant 0 : index
    %132 = vector.load %arg7[%c0_41, %c0_42] : memref<128x128xbf16, #tpu.memory_space<vmem>>, vector<128x128xbf16>
    %cst_43 = arith.constant dense<0.000000e+00> : vector<16x128xf32>
    %133 = tpu.matmul %131, %132, %cst_43 {dimension_numbers = #tpu.dot_dimension_numbers<[1], [0], [0], [1], [0, 0, 1, 1], [], []>} : vector<16x128xbf16>, vector<128x128xbf16>, vector<16x128xf32> -> vector<16x128xf32>
    %c0_44 = arith.constant 0 : index
    %c0_45 = arith.constant 0 : index
    %134 = vector.load %arg8[%c0_44, %c0_45] : memref<1x128xf32, #tpu.memory_space<vmem>>, vector<1x128xf32>
    %135 = vector.broadcast %134 : vector<1x128xf32> to vector<16x128xf32>
    %136 = arith.addf %133, %135 : vector<16x128xf32>
    %137 = arith.addf %136, %26 : vector<16x128xf32>
    %c0_46 = arith.constant 0 : index
    %c0_47 = arith.constant 0 : index
    %138 = vector.load %arg9[%c0_46, %c0_47] : memref<1x128xf32, #tpu.memory_space<vmem>>, vector<1x128xf32>
    %c0_48 = arith.constant 0 : index
    %c0_49 = arith.constant 0 : index
    %139 = vector.load %arg10[%c0_48, %c0_49] : memref<1x128xf32, #tpu.memory_space<vmem>>, vector<1x128xf32>
    %cst_50 = arith.constant dense<0.000000e+00> : vector<16xf32>
    %140 = vector.multi_reduction <add>, %137, %cst_50 [1] : vector<16x128xf32> to vector<16xf32>
    %141 = vector.shape_cast %140 : vector<16xf32> to vector<16x1xf32>
    %cst_51 = arith.constant 1.280000e+02 : f32
    %142 = vector.broadcast %cst_51 : f32 to vector<16x1xf32>
    %143 = arith.divf %141, %142 : vector<16x1xf32>
    %144 = vector.broadcast %143 : vector<16x1xf32> to vector<16x128xf32>
    %145 = arith.subf %137, %144 : vector<16x128xf32>
    %146 = arith.mulf %145, %145 : vector<16x128xf32>
    %cst_52 = arith.constant dense<0.000000e+00> : vector<16xf32>
    %147 = vector.multi_reduction <add>, %146, %cst_52 [1] : vector<16x128xf32> to vector<16xf32>
    %148 = vector.shape_cast %147 : vector<16xf32> to vector<16x1xf32>
    %cst_53 = arith.constant 1.280000e+02 : f32
    %149 = vector.broadcast %cst_53 : f32 to vector<16x1xf32>
    %150 = arith.divf %148, %149 : vector<16x1xf32>
    %151 = vector.broadcast %143 : vector<16x1xf32> to vector<16x128xf32>
    %152 = arith.subf %137, %151 : vector<16x128xf32>
    %cst_54 = arith.constant 9.99999996E-13 : f32
    %153 = vector.broadcast %cst_54 : f32 to vector<16x1xf32>
    %154 = arith.addf %150, %153 : vector<16x1xf32>
    %155 = math.rsqrt %154 : vector<16x1xf32>
    %156 = vector.broadcast %155 : vector<16x1xf32> to vector<16x128xf32>
    %157 = arith.mulf %152, %156 : vector<16x128xf32>
    %158 = vector.broadcast %138 : vector<1x128xf32> to vector<16x128xf32>
    %159 = arith.mulf %157, %158 : vector<16x128xf32>
    %160 = vector.broadcast %139 : vector<1x128xf32> to vector<16x128xf32>
    %161 = arith.addf %159, %160 : vector<16x128xf32>
    %162 = arith.truncf %161 : vector<16x128xf32> to vector<16x128xbf16>
    %cst_55 = arith.constant 0.000000e+00 : f32
    %163 = vector.broadcast %cst_55 : f32 to vector<16x128xf32>
    %c0_56 = arith.constant 0 : index
    %c0_57 = arith.constant 0 : index
    %164 = vector.load %arg11[%c0_56, %c0_57] : memref<128x256xbf16, #tpu.memory_space<vmem>>, vector<128x128xbf16>
    %cst_58 = arith.constant dense<0.000000e+00> : vector<16x128xf32>
    %165 = tpu.matmul %162, %164, %cst_58 {dimension_numbers = #tpu.dot_dimension_numbers<[1], [0], [0], [1], [0, 0, 1, 1], [], []>} : vector<16x128xbf16>, vector<128x128xbf16>, vector<16x128xf32> -> vector<16x128xf32>
    %c0_59 = arith.constant 0 : index
    %c0_60 = arith.constant 0 : index
    %166 = vector.load %arg12[%c0_59, %c0_60] : memref<1x256xf32, #tpu.memory_space<vmem>>, vector<1x128xf32>
    %167 = vector.broadcast %166 : vector<1x128xf32> to vector<16x128xf32>
    %168 = arith.addf %165, %167 : vector<16x128xf32>
    %169 = arith.mulf %168, %168 : vector<16x128xf32>
    %170 = arith.mulf %168, %169 : vector<16x128xf32>
    %cst_61 = arith.constant 4.471500e-02 : f32
    %171 = vector.broadcast %cst_61 : f32 to vector<16x128xf32>
    %172 = arith.mulf %171, %170 : vector<16x128xf32>
    %173 = arith.addf %168, %172 : vector<16x128xf32>
    %cst_62 = arith.constant 0.797884583 : f32
    %174 = vector.broadcast %cst_62 : f32 to vector<16x128xf32>
    %175 = arith.mulf %174, %173 : vector<16x128xf32>
    %176 = math.tanh %175 : vector<16x128xf32>
    %cst_63 = arith.constant 1.000000e+00 : f32
    %177 = vector.broadcast %cst_63 : f32 to vector<16x128xf32>
    %178 = arith.addf %177, %176 : vector<16x128xf32>
    %cst_64 = arith.constant 5.000000e-01 : f32
    %179 = vector.broadcast %cst_64 : f32 to vector<16x128xf32>
    %180 = arith.mulf %179, %178 : vector<16x128xf32>
    %181 = arith.mulf %168, %180 : vector<16x128xf32>
    %182 = arith.truncf %181 : vector<16x128xf32> to vector<16x128xbf16>
    %c0_65 = arith.constant 0 : index
    %c0_66 = arith.constant 0 : index
    %183 = vector.load %arg13[%c0_65, %c0_66] : memref<256x128xbf16, #tpu.memory_space<vmem>>, vector<128x128xbf16>
    %cst_67 = arith.constant dense<0.000000e+00> : vector<16x128xf32>
    %184 = tpu.matmul %182, %183, %cst_67 {dimension_numbers = #tpu.dot_dimension_numbers<[1], [0], [0], [1], [0, 0, 1, 1], [], []>} : vector<16x128xbf16>, vector<128x128xbf16>, vector<16x128xf32> -> vector<16x128xf32>
    %185 = arith.addf %163, %184 : vector<16x128xf32>
    %c0_68 = arith.constant 0 : index
    %c128 = arith.constant 128 : index
    %186 = vector.load %arg11[%c0_68, %c128] : memref<128x256xbf16, #tpu.memory_space<vmem>>, vector<128x128xbf16>
    %cst_69 = arith.constant dense<0.000000e+00> : vector<16x128xf32>
    %187 = tpu.matmul %162, %186, %cst_69 {dimension_numbers = #tpu.dot_dimension_numbers<[1], [0], [0], [1], [0, 0, 1, 1], [], []>} : vector<16x128xbf16>, vector<128x128xbf16>, vector<16x128xf32> -> vector<16x128xf32>
    %c0_70 = arith.constant 0 : index
    %c128_71 = arith.constant 128 : index
    %188 = vector.load %arg12[%c0_70, %c128_71] : memref<1x256xf32, #tpu.memory_space<vmem>>, vector<1x128xf32>
    %189 = vector.broadcast %188 : vector<1x128xf32> to vector<16x128xf32>
    %190 = arith.addf %187, %189 : vector<16x128xf32>
    %191 = arith.mulf %190, %190 : vector<16x128xf32>
    %192 = arith.mulf %190, %191 : vector<16x128xf32>
    %cst_72 = arith.constant 4.471500e-02 : f32
    %193 = vector.broadcast %cst_72 : f32 to vector<16x128xf32>
    %194 = arith.mulf %193, %192 : vector<16x128xf32>
    %195 = arith.addf %190, %194 : vector<16x128xf32>
    %cst_73 = arith.constant 0.797884583 : f32
    %196 = vector.broadcast %cst_73 : f32 to vector<16x128xf32>
    %197 = arith.mulf %196, %195 : vector<16x128xf32>
    %198 = math.tanh %197 : vector<16x128xf32>
    %cst_74 = arith.constant 1.000000e+00 : f32
    %199 = vector.broadcast %cst_74 : f32 to vector<16x128xf32>
    %200 = arith.addf %199, %198 : vector<16x128xf32>
    %cst_75 = arith.constant 5.000000e-01 : f32
    %201 = vector.broadcast %cst_75 : f32 to vector<16x128xf32>
    %202 = arith.mulf %201, %200 : vector<16x128xf32>
    %203 = arith.mulf %190, %202 : vector<16x128xf32>
    %204 = arith.truncf %203 : vector<16x128xf32> to vector<16x128xbf16>
    %c128_76 = arith.constant 128 : index
    %c0_77 = arith.constant 0 : index
    %205 = vector.load %arg13[%c128_76, %c0_77] : memref<256x128xbf16, #tpu.memory_space<vmem>>, vector<128x128xbf16>
    %cst_78 = arith.constant dense<0.000000e+00> : vector<16x128xf32>
    %206 = tpu.matmul %204, %205, %cst_78 {dimension_numbers = #tpu.dot_dimension_numbers<[1], [0], [0], [1], [0, 0, 1, 1], [], []>} : vector<16x128xbf16>, vector<128x128xbf16>, vector<16x128xf32> -> vector<16x128xf32>
    %207 = arith.addf %185, %206 : vector<16x128xf32>
    %c0_79 = arith.constant 0 : index
    %c0_80 = arith.constant 0 : index
    %208 = vector.load %arg14[%c0_79, %c0_80] : memref<1x128xf32, #tpu.memory_space<vmem>>, vector<1x128xf32>
    %209 = vector.broadcast %208 : vector<1x128xf32> to vector<16x128xf32>
    %210 = arith.addf %207, %209 : vector<16x128xf32>
    %211 = arith.addf %210, %161 : vector<16x128xf32>
    %c0_81 = arith.constant 0 : index
    %c0_82 = arith.constant 0 : index
    %212 = vector.load %arg15[%c0_81, %c0_82] : memref<1x128xf32, #tpu.memory_space<vmem>>, vector<1x128xf32>
    %c0_83 = arith.constant 0 : index
    %c0_84 = arith.constant 0 : index
    %213 = vector.load %arg16[%c0_83, %c0_84] : memref<1x128xf32, #tpu.memory_space<vmem>>, vector<1x128xf32>
    %cst_85 = arith.constant dense<0.000000e+00> : vector<16xf32>
    %214 = vector.multi_reduction <add>, %211, %cst_85 [1] : vector<16x128xf32> to vector<16xf32>
    %215 = vector.shape_cast %214 : vector<16xf32> to vector<16x1xf32>
    %cst_86 = arith.constant 1.280000e+02 : f32
    %216 = vector.broadcast %cst_86 : f32 to vector<16x1xf32>
    %217 = arith.divf %215, %216 : vector<16x1xf32>
    %218 = vector.broadcast %217 : vector<16x1xf32> to vector<16x128xf32>
    %219 = arith.subf %211, %218 : vector<16x128xf32>
    %220 = arith.mulf %219, %219 : vector<16x128xf32>
    %cst_87 = arith.constant dense<0.000000e+00> : vector<16xf32>
    %221 = vector.multi_reduction <add>, %220, %cst_87 [1] : vector<16x128xf32> to vector<16xf32>
    %222 = vector.shape_cast %221 : vector<16xf32> to vector<16x1xf32>
    %cst_88 = arith.constant 1.280000e+02 : f32
    %223 = vector.broadcast %cst_88 : f32 to vector<16x1xf32>
    %224 = arith.divf %222, %223 : vector<16x1xf32>
    %225 = vector.broadcast %217 : vector<16x1xf32> to vector<16x128xf32>
    %226 = arith.subf %211, %225 : vector<16x128xf32>
    %cst_89 = arith.constant 9.99999996E-13 : f32
    %227 = vector.broadcast %cst_89 : f32 to vector<16x1xf32>
    %228 = arith.addf %224, %227 : vector<16x1xf32>
    %229 = math.rsqrt %228 : vector<16x1xf32>
    %230 = vector.broadcast %229 : vector<16x1xf32> to vector<16x128xf32>
    %231 = arith.mulf %226, %230 : vector<16x128xf32>
    %232 = vector.broadcast %212 : vector<1x128xf32> to vector<16x128xf32>
    %233 = arith.mulf %231, %232 : vector<16x128xf32>
    %234 = vector.broadcast %213 : vector<1x128xf32> to vector<16x128xf32>
    %235 = arith.addf %233, %234 : vector<16x128xf32>
    %236 = vector.shape_cast %235 : vector<16x128xf32> to vector<2x8x128xf32>
    %237 = arith.truncf %236 : vector<2x8x128xf32> to vector<2x8x128xbf16>
    %c0_90 = arith.constant 0 : index
    %c0_91 = arith.constant 0 : index
    %c0_92 = arith.constant 0 : index
    %238 = vector.load %arg17[%c0_90, %c0_91, %c0_92] : memref<2x8x128xbf16, #tpu.memory_space<vmem>>, vector<2x8x128xbf16>
    tpu.vector_store %arg17[%c0_90, %c0_91, %c0_92], %237 {strides = array<i32>} : memref<2x8x128xbf16, #tpu.memory_space<vmem>>, vector<2x8x128xbf16>,
    return
  }
  func.func @transform_0(%arg0: i32) -> (i32, i32, i32) {
    %c0_i32 = arith.constant 0 : i32
    %c0_i32_0 = arith.constant 0 : i32
    %c0_i32_1 = arith.constant 0 : i32
    return %arg0, %c0_i32, %c0_i32_0 : i32, i32, i32
  }
  func.func @transform_1(%arg0: i32) -> (i32, i32, i32) {
    %c0_i32 = arith.constant 0 : i32
    %c0_i32_0 = arith.constant 0 : i32
    %c0_i32_1 = arith.constant 0 : i32
    return %arg0, %c0_i32, %c0_i32_0 : i32, i32, i32
  }
  func.func @transform_2(%arg0: i32) -> (i32, i32) {
    %c0_i32 = arith.constant 0 : i32
    %c0_i32_0 = arith.constant 0 : i32
    %c0_i32_1 = arith.constant 0 : i32
    return %c0_i32, %c0_i32_0 : i32, i32
  }
  func.func @transform_3(%arg0: i32) -> (i32, i32) {
    %c0_i32 = arith.constant 0 : i32
    %c0_i32_0 = arith.constant 0 : i32
    %c0_i32_1 = arith.constant 0 : i32
    return %c0_i32, %c0_i32_0 : i32, i32
  }
  func.func @transform_4(%arg0: i32) -> (i32, i32) {
    %c0_i32 = arith.constant 0 : i32
    %c0_i32_0 = arith.constant 0 : i32
    %c0_i32_1 = arith.constant 0 : i32
    return %c0_i32, %c0_i32_0 : i32, i32
  }
  func.func @transform_5(%arg0: i32) -> (i32, i32) {
    %c0_i32 = arith.constant 0 : i32
    %c0_i32_0 = arith.constant 0 : i32
    %c0_i32_1 = arith.constant 0 : i32
    return %c0_i32, %c0_i32_0 : i32, i32
  }
  func.func @transform_6(%arg0: i32) -> (i32, i32) {
    %c0_i32 = arith.constant 0 : i32
    %c0_i32_0 = arith.constant 0 : i32
    %c0_i32_1 = arith.constant 0 : i32
    return %c0_i32, %c0_i32_0 : i32, i32
  }
  func.func @transform_7(%arg0: i32) -> (i32, i32) {
    %c0_i32 = arith.constant 0 : i32
    %c0_i32_0 = arith.constant 0 : i32
    %c0_i32_1 = arith.constant 0 : i32
    return %c0_i32, %c0_i32_0 : i32, i32
  }
  func.func @transform_8(%arg0: i32) -> (i32, i32) {
    %c0_i32 = arith.constant 0 : i32
    %c0_i32_0 = arith.constant 0 : i32
    %c0_i32_1 = arith.constant 0 : i32
    return %c0_i32, %c0_i32_0 : i32, i32
  }
  func.func @transform_9(%arg0: i32) -> (i32, i32) {
    %c0_i32 = arith.constant 0 : i32
    %c0_i32_0 = arith.constant 0 : i32
    %c0_i32_1 = arith.constant 0 : i32
    return %c0_i32, %c0_i32_0 : i32, i32
  }
  func.func @transform_10(%arg0: i32) -> (i32, i32) {
    %c0_i32 = arith.constant 0 : i32
    %c0_i32_0 = arith.constant 0 : i32
    %c0_i32_1 = arith.constant 0 : i32
    return %c0_i32, %c0_i32_0 : i32, i32
  }
  func.func @transform_11(%arg0: i32) -> (i32, i32) {
    %c0_i32 = arith.constant 0 : i32
    %c0_i32_0 = arith.constant 0 : i32
    %c0_i32_1 = arith.constant 0 : i32
    return %c0_i32, %c0_i32_0 : i32, i32
  }
  func.func @transform_12(%arg0: i32) -> (i32, i32) {
    %c0_i32 = arith.constant 0 : i32
    %c0_i32_0 = arith.constant 0 : i32
    %c0_i32_1 = arith.constant 0 : i32
    return %c0_i32, %c0_i32_0 : i32, i32
  }
  func.func @transform_13(%arg0: i32) -> (i32, i32) {
    %c0_i32 = arith.constant 0 : i32
    %c0_i32_0 = arith.constant 0 : i32
    %c0_i32_1 = arith.constant 0 : i32
    return %c0_i32, %c0_i32_0 : i32, i32
  }
  func.func @transform_14(%arg0: i32) -> (i32, i32) {
    %c0_i32 = arith.constant 0 : i32
    %c0_i32_0 = arith.constant 0 : i32
    %c0_i32_1 = arith.constant 0 : i32
    return %c0_i32, %c0_i32_0 : i32, i32
  }
  func.func @transform_15(%arg0: i32) -> (i32, i32) {
    %c0_i32 = arith.constant 0 : i32
    %c0_i32_0 = arith.constant 0 : i32
    %c0_i32_1 = arith.constant 0 : i32
    return %c0_i32, %c0_i32_0 : i32, i32
  }
  func.func @transform_16(%arg0: i32) -> (i32, i32, i32) {
    %c0_i32 = arith.constant 0 : i32
    %c0_i32_0 = arith.constant 0 : i32
    %c0_i32_1 = arith.constant 0 : i32
    return %arg0, %c0_i32, %c0_i32_0 : i32, i32, i32
  }
}

module attributes {stable_mosaic.version = 11 : i64} {
  func.func @bert_layer_kernel(%arg0: i32, %arg1: memref<2x8x128xbf16, #tpu.memory_space<vmem>>, %arg2: memref<2x1x8xf32, #tpu.memory_space<vmem>>, %arg3: memref<1x128xf32, #tpu.memory_space<vmem>>, %arg4: memref<1x128xf32, #tpu.memory_space<vmem>>, %arg5: memref<128x384xbf16, #tpu.memory_space<vmem>>, %arg6: memref<1x384xf32, #tpu.memory_space<vmem>>, %arg7: memref<128x128xbf16, #tpu.memory_space<vmem>>, %arg8: memref<1x128xf32, #tpu.memory_space<vmem>>, %arg9: memref<1x128xf32, #tpu.memory_space<vmem>>, %arg10: memref<1x128xf32, #tpu.memory_space<vmem>>, %arg11: memref<128x256xbf16, #tpu.memory_space<vmem>>, %arg12: memref<1x256xf32, #tpu.memory_space<vmem>>, %arg13: memref<256x128xbf16, #tpu.memory_space<vmem>>, %arg14: memref<1x128xf32, #tpu.memory_space<vmem>>, %arg15: memref<1x128xf32, #tpu.memory_space<vmem>>, %arg16: memref<1x128xf32, #tpu.memory_space<vmem>>, %arg17: memref<2x8x128xbf16, #tpu.memory_space<vmem>>, %arg18: memref<16x128xbf16, #tpu.memory_space<vmem>>) attributes {dimension_semantics = [#tpu.dimension_semantics<parallel>], iteration_bounds = array<i64: 2>, scalar_prefetch = 0 : i64, scratch_operands = 1 : i64, tpu.core_type = #tpu.core_type<tc>, window_params = [{transform_indices = @transform_0, window_bounds = array<i64: 2, 8, 128>}, {transform_indices = @transform_1, window_bounds = array<i64: 2, 1, 8>}, {pipeline_mode = #tpu.pipeline_mode<synchronous>, transform_indices = @transform_2, window_bounds = array<i64: 1, 128>}, {pipeline_mode = #tpu.pipeline_mode<synchronous>, transform_indices = @transform_3, window_bounds = array<i64: 1, 128>}, {pipeline_mode = #tpu.pipeline_mode<synchronous>, transform_indices = @transform_4, window_bounds = array<i64: 128, 384>}, {pipeline_mode = #tpu.pipeline_mode<synchronous>, transform_indices = @transform_5, window_bounds = array<i64: 1, 384>}, {pipeline_mode = #tpu.pipeline_mode<synchronous>, transform_indices = @transform_6, window_bounds = array<i64: 128, 128>}, {pipeline_mode = #tpu.pipeline_mode<synchronous>, transform_indices = @transform_7, window_bounds = array<i64: 1, 128>}, {pipeline_mode = #tpu.pipeline_mode<synchronous>, transform_indices = @transform_8, window_bounds = array<i64: 1, 128>}, {pipeline_mode = #tpu.pipeline_mode<synchronous>, transform_indices = @transform_9, window_bounds = array<i64: 1, 128>}, {pipeline_mode = #tpu.pipeline_mode<synchronous>, transform_indices = @transform_10, window_bounds = array<i64: 128, 256>}, {pipeline_mode = #tpu.pipeline_mode<synchronous>, transform_indices = @transform_11, window_bounds = array<i64: 1, 256>}, {pipeline_mode = #tpu.pipeline_mode<synchronous>, transform_indices = @transform_12, window_bounds = array<i64: 256, 128>}, {pipeline_mode = #tpu.pipeline_mode<synchronous>, transform_indices = @transform_13, window_bounds = array<i64: 1, 128>}, {pipeline_mode = #tpu.pipeline_mode<synchronous>, transform_indices = @transform_14, window_bounds = array<i64: 1, 128>}, {pipeline_mode = #tpu.pipeline_mode<synchronous>, transform_indices = @transform_15, window_bounds = array<i64: 1, 128>}, {transform_indices = @transform_16, window_bounds = array<i64: 2, 8, 128>}]} {
    %c0 = arith.constant 0 : index
    %c0_0 = arith.constant 0 : index
    %c0_1 = arith.constant 0 : index
    %0 = vector.load %arg1[%c0, %c0_0, %c0_1] : memref<2x8x128xbf16, #tpu.memory_space<vmem>>, vector<2x8x128xbf16>
    %1 = arith.extf %0 : vector<2x8x128xbf16> to vector<2x8x128xf32>
    %2 = vector.shape_cast %1 : vector<2x8x128xf32> to vector<16x128xf32>
    %c0_2 = arith.constant 0 : index
    %c0_3 = arith.constant 0 : index
    %3 = vector.load %arg3[%c0_2, %c0_3] : memref<1x128xf32, #tpu.memory_space<vmem>>, vector<1x128xf32>
    %c0_4 = arith.constant 0 : index
    %c0_5 = arith.constant 0 : index
    %4 = vector.load %arg4[%c0_4, %c0_5] : memref<1x128xf32, #tpu.memory_space<vmem>>, vector<1x128xf32>
    %cst = arith.constant dense<0.000000e+00> : vector<16xf32>
    %5 = vector.multi_reduction <add>, %2, %cst [1] : vector<16x128xf32> to vector<16xf32>
    %6 = vector.shape_cast %5 : vector<16xf32> to vector<16x1xf32>
    %cst_6 = arith.constant 1.280000e+02 : f32
    %7 = vector.broadcast %cst_6 : f32 to vector<16x1xf32>
    %8 = arith.divf %6, %7 : vector<16x1xf32>
    %9 = vector.broadcast %8 : vector<16x1xf32> to vector<16x128xf32>
    %10 = arith.subf %2, %9 : vector<16x128xf32>
    %11 = arith.mulf %10, %10 : vector<16x128xf32>
    %cst_7 = arith.constant dense<0.000000e+00> : vector<16xf32>
    %12 = vector.multi_reduction <add>, %11, %cst_7 [1] : vector<16x128xf32> to vector<16xf32>
    %13 = vector.shape_cast %12 : vector<16xf32> to vector<16x1xf32>
    %cst_8 = arith.constant 1.280000e+02 : f32
    %14 = vector.broadcast %cst_8 : f32 to vector<16x1xf32>
    %15 = arith.divf %13, %14 : vector<16x1xf32>
    %16 = vector.broadcast %8 : vector<16x1xf32> to vector<16x128xf32>
    %17 = arith.subf %2, %16 : vector<16x128xf32>
    %cst_9 = arith.constant 9.99999996E-13 : f32
    %18 = vector.broadcast %cst_9 : f32 to vector<16x1xf32>
    %19 = arith.addf %15, %18 : vector<16x1xf32>
    %20 = math.rsqrt %19 : vector<16x1xf32>
    %21 = vector.broadcast %20 : vector<16x1xf32> to vector<16x128xf32>
    %22 = arith.mulf %17, %21 : vector<16x128xf32>
    %23 = vector.broadcast %3 : vector<1x128xf32> to vector<16x128xf32>
    %24 = arith.mulf %22, %23 : vector<16x128xf32>
    %25 = vector.broadcast %4 : vector<1x128xf32> to vector<16x128xf32>
    %26 = arith.addf %24, %25 : vector<16x128xf32>
    %c0_10 = arith.constant 0 : index
    %c0_11 = arith.constant 0 : index
    %c0_12 = arith.constant 0 : index
    %27 = vector.load %arg2[%c0_10, %c0_11, %c0_12] : memref<2x1x8xf32, #tpu.memory_space<vmem>>, vector<2x1x8xf32>
    %28 = arith.truncf %26 : vector<16x128xf32> to vector<16x128xbf16>
    %c0_13 = arith.constant 0 : index
    %c0_14 = arith.constant 0 : index
    %29 = vector.load %arg5[%c0_13, %c0_14] : memref<128x384xbf16, #tpu.memory_space<vmem>>, vector<128x384xbf16>
    %cst_15 = arith.constant dense<0.000000e+00> : vector<16x384xf32>
    %30 = tpu.matmul %28, %29, %cst_15 {dimension_numbers = #tpu.dot_dimension_numbers<[1], [0], [0], [1], [0, 0, 1, 1], [], []>} : vector<16x128xbf16>, vector<128x384xbf16>, vector<16x384xf32> -> vector<16x384xf32>
    %c0_16 = arith.constant 0 : index
    %c0_17 = arith.constant 0 : index
    %31 = vector.load %arg6[%c0_16, %c0_17] : memref<1x384xf32, #tpu.memory_space<vmem>>, vector<1x384xf32>
    %32 = vector.broadcast %31 : vector<1x384xf32> to vector<16x384xf32>
    %33 = arith.addf %30, %32 : vector<16x384xf32>
    %34 = arith.truncf %33 : vector<16x384xf32> to vector<16x384xbf16>
    %35 = vector.extract_strided_slice %34 {offsets = [0, 0], sizes = [16, 32], strides = [1, 1]} : vector<16x384xbf16> to vector<16x32xbf16>
    %36 = vector.shape_cast %35 : vector<16x32xbf16> to vector<2x8x32xbf16>
    %37 = vector.extract_strided_slice %34 {offsets = [0, 128], sizes = [16, 32], strides = [1, 1]} : vector<16x384xbf16> to vector<16x32xbf16>
    %38 = vector.shape_cast %37 : vector<16x32xbf16> to vector<2x8x32xbf16>
    %39 = vector.extract_strided_slice %34 {offsets = [0, 256], sizes = [16, 32], strides = [1, 1]} : vector<16x384xbf16> to vector<16x32xbf16>
    %40 = vector.shape_cast %39 : vector<16x32xbf16> to vector<2x8x32xbf16>
    "tpu.trace_start"() <{level = 10 : i32, message = "bqd,bkd->bqk"}> : () -> ()
    %cst_18 = arith.constant dense<0.000000e+00> : vector<2x8x8xf32>
    %41 = tpu.matmul %36, %38, %cst_18 {dimension_numbers = #tpu.dot_dimension_numbers<[2], [2], [1], [1], [0, 0, 0, 1, 1, 1], [0], [0]>} : vector<2x8x32xbf16>, vector<2x8x32xbf16>, vector<2x8x8xf32> -> vector<2x8x8xf32>
    "tpu.trace_stop"() : () -> ()
    %42 = vector.broadcast %27 : vector<2x1x8xf32> to vector<2x8x8xf32>
    %43 = arith.addf %41, %42 : vector<2x8x8xf32>
    %cst_19 = arith.constant dense<0xFF800000> : vector<2x8xf32>
    %44 = vector.multi_reduction <maximumf>, %43, %cst_19 [2] : vector<2x8x8xf32> to vector<2x8xf32>
    %45 = vector.shape_cast %44 : vector<2x8xf32> to vector<2x8x1xf32>
    %46 = vector.broadcast %45 : vector<2x8x1xf32> to vector<2x8x8xf32>
    %47 = arith.subf %43, %46 : vector<2x8x8xf32>
    %48 = math.exp %47 : vector<2x8x8xf32>
    %cst_20 = arith.constant dense<0.000000e+00> : vector<2x8xf32>
    %49 = vector.multi_reduction <add>, %48, %cst_20 [2] : vector<2x8x8xf32> to vector<2x8xf32>
    %50 = vector.shape_cast %49 : vector<2x8xf32> to vector<2x8x1xf32>
    %51 = tpu.reciprocal %50 {approx = true} : vector<2x8x1xf32> -> vector<2x8x1xf32>
    %52 = arith.truncf %48 : vector<2x8x8xf32> to vector<2x8x8xbf16>
    "tpu.trace_start"() <{level = 10 : i32, message = "bqk,bkd->bqd"}> : () -> ()
    %cst_21 = arith.constant dense<0.000000e+00> : vector<2x8x32xf32>
    %53 = tpu.matmul %52, %40, %cst_21 {dimension_numbers = #tpu.dot_dimension_numbers<[2], [1], [1], [2], [0, 0, 0, 1, 1, 2], [0], [0]>} : vector<2x8x8xbf16>, vector<2x8x32xbf16>, vector<2x8x32xf32> -> vector<2x8x32xf32>
    "tpu.trace_stop"() : () -> ()
    %54 = vector.broadcast %51 : vector<2x8x1xf32> to vector<2x8x32xf32>
    %55 = arith.mulf %53, %54 : vector<2x8x32xf32>
    %56 = vector.shape_cast %55 : vector<2x8x32xf32> to vector<16x32xf32>
    %57 = arith.truncf %56 : vector<16x32xf32> to vector<16x32xbf16>
    %c0_22 = arith.constant 0 : index
    %c0_23 = arith.constant 0 : index
    %58 = vector.load %arg18[%c0_22, %c0_23] : memref<16x128xbf16, #tpu.memory_space<vmem>>, vector<16x32xbf16>
    tpu.vector_store %arg18[%c0_22, %c0_23], %57 {strides = array<i32>} : memref<16x128xbf16, #tpu.memory_space<vmem>>, vector<16x32xbf16>,
    %59 = vector.extract_strided_slice %34 {offsets = [0, 32], sizes = [16, 32], strides = [1, 1]} : vector<16x384xbf16> to vector<16x32xbf16>
    %60 = vector.shape_cast %59 : vector<16x32xbf16> to vector<2x8x32xbf16>
    %61 = vector.extract_strided_slice %34 {offsets = [0, 160], sizes = [16, 32], strides = [1, 1]} : vector<16x384xbf16> to vector<16x32xbf16>
    %62 = vector.shape_cast %61 : vector<16x32xbf16> to vector<2x8x32xbf16>
    %63 = vector.extract_strided_slice %34 {offsets = [0, 288], sizes = [16, 32], strides = [1, 1]} : vector<16x384xbf16> to vector<16x32xbf16>
    %64 = vector.shape_cast %63 : vector<16x32xbf16> to vector<2x8x32xbf16>
    "tpu.trace_start"() <{level = 10 : i32, message = "bqd,bkd->bqk"}> : () -> ()
    %cst_24 = arith.constant dense<0.000000e+00> : vector<2x8x8xf32>
    %65 = tpu.matmul %60, %62, %cst_24 {dimension_numbers = #tpu.dot_dimension_numbers<[2], [2], [1], [1], [0, 0, 0, 1, 1, 1], [0], [0]>} : vector<2x8x32xbf16>, vector<2x8x32xbf16>, vector<2x8x8xf32> -> vector<2x8x8xf32>
    "tpu.trace_stop"() : () -> ()
    %66 = vector.broadcast %27 : vector<2x1x8xf32> to vector<2x8x8xf32>
    %67 = arith.addf %65, %66 : vector<2x8x8xf32>
    %cst_25 = arith.constant dense<0xFF800000> : vector<2x8xf32>
    %68 = vector.multi_reduction <maximumf>, %67, %cst_25 [2] : vector<2x8x8xf32> to vector<2x8xf32>
    %69 = vector.shape_cast %68 : vector<2x8xf32> to vector<2x8x1xf32>
    %70 = vector.broadcast %69 : vector<2x8x1xf32> to vector<2x8x8xf32>
    %71 = arith.subf %67, %70 : vector<2x8x8xf32>
    %72 = math.exp %71 : vector<2x8x8xf32>
    %cst_26 = arith.constant dense<0.000000e+00> : vector<2x8xf32>
    %73 = vector.multi_reduction <add>, %72, %cst_26 [2] : vector<2x8x8xf32> to vector<2x8xf32>
    %74 = vector.shape_cast %73 : vector<2x8xf32> to vector<2x8x1xf32>
    %75 = tpu.reciprocal %74 {approx = true} : vector<2x8x1xf32> -> vector<2x8x1xf32>
    %76 = arith.truncf %72 : vector<2x8x8xf32> to vector<2x8x8xbf16>
    "tpu.trace_start"() <{level = 10 : i32, message = "bqk,bkd->bqd"}> : () -> ()
    %cst_27 = arith.constant dense<0.000000e+00> : vector<2x8x32xf32>
    %77 = tpu.matmul %76, %64, %cst_27 {dimension_numbers = #tpu.dot_dimension_numbers<[2], [1], [1], [2], [0, 0, 0, 1, 1, 2], [0], [0]>} : vector<2x8x8xbf16>, vector<2x8x32xbf16>, vector<2x8x32xf32> -> vector<2x8x32xf32>
    "tpu.trace_stop"() : () -> ()
    %78 = vector.broadcast %75 : vector<2x8x1xf32> to vector<2x8x32xf32>
    %79 = arith.mulf %77, %78 : vector<2x8x32xf32>
    %80 = vector.shape_cast %79 : vector<2x8x32xf32> to vector<16x32xf32>
    %81 = arith.truncf %80 : vector<16x32xf32> to vector<16x32xbf16>
    %c0_28 = arith.constant 0 : index
    %c32 = arith.constant 32 : index
    %82 = vector.load %arg18[%c0_28, %c32] : memref<16x128xbf16, #tpu.memory_space<vmem>>, vector<16x32xbf16>
    tpu.vector_store %arg18[%c0_28, %c32], %81 {strides = array<i32>} : memref<16x128xbf16, #tpu.memory_space<vmem>>, vector<16x32xbf16>,
    %83 = vector.extract_strided_slice %34 {offsets = [0, 64], sizes = [16, 32], strides = [1, 1]} : vector<16x384xbf16> to vector<16x32xbf16>
    %84 = vector.shape_cast %83 : vector<16x32xbf16> to vector<2x8x32xbf16>
    %85 = vector.extract_strided_slice %34 {offsets = [0, 192], sizes = [16, 32], strides = [1, 1]} : vector<16x384xbf16> to vector<16x32xbf16>
    %86 = vector.shape_cast %85 : vector<16x32xbf16> to vector<2x8x32xbf16>
    %87 = vector.extract_strided_slice %34 {offsets = [0, 320], sizes = [16, 32], strides = [1, 1]} : vector<16x384xbf16> to vector<16x32xbf16>
    %88 = vector.shape_cast %87 : vector<16x32xbf16> to vector<2x8x32xbf16>
    "tpu.trace_start"() <{level = 10 : i32, message = "bqd,bkd->bqk"}> : () -> ()
    %cst_29 = arith.constant dense<0.000000e+00> : vector<2x8x8xf32>
    %89 = tpu.matmul %84, %86, %cst_29 {dimension_numbers = #tpu.dot_dimension_numbers<[2], [2], [1], [1], [0, 0, 0, 1, 1, 1], [0], [0]>} : vector<2x8x32xbf16>, vector<2x8x32xbf16>, vector<2x8x8xf32> -> vector<2x8x8xf32>
    "tpu.trace_stop"() : () -> ()
    %90 = vector.broadcast %27 : vector<2x1x8xf32> to vector<2x8x8xf32>
    %91 = arith.addf %89, %90 : vector<2x8x8xf32>
    %cst_30 = arith.constant dense<0xFF800000> : vector<2x8xf32>
    %92 = vector.multi_reduction <maximumf>, %91, %cst_30 [2] : vector<2x8x8xf32> to vector<2x8xf32>
    %93 = vector.shape_cast %92 : vector<2x8xf32> to vector<2x8x1xf32>
    %94 = vector.broadcast %93 : vector<2x8x1xf32> to vector<2x8x8xf32>
    %95 = arith.subf %91, %94 : vector<2x8x8xf32>
    %96 = math.exp %95 : vector<2x8x8xf32>
    %cst_31 = arith.constant dense<0.000000e+00> : vector<2x8xf32>
    %97 = vector.multi_reduction <add>, %96, %cst_31 [2] : vector<2x8x8xf32> to vector<2x8xf32>
    %98 = vector.shape_cast %97 : vector<2x8xf32> to vector<2x8x1xf32>
    %99 = tpu.reciprocal %98 {approx = true} : vector<2x8x1xf32> -> vector<2x8x1xf32>
    %100 = arith.truncf %96 : vector<2x8x8xf32> to vector<2x8x8xbf16>
    "tpu.trace_start"() <{level = 10 : i32, message = "bqk,bkd->bqd"}> : () -> ()
    %cst_32 = arith.constant dense<0.000000e+00> : vector<2x8x32xf32>
    %101 = tpu.matmul %100, %88, %cst_32 {dimension_numbers = #tpu.dot_dimension_numbers<[2], [1], [1], [2], [0, 0, 0, 1, 1, 2], [0], [0]>} : vector<2x8x8xbf16>, vector<2x8x32xbf16>, vector<2x8x32xf32> -> vector<2x8x32xf32>
    "tpu.trace_stop"() : () -> ()
    %102 = vector.broadcast %99 : vector<2x8x1xf32> to vector<2x8x32xf32>
    %103 = arith.mulf %101, %102 : vector<2x8x32xf32>
    %104 = vector.shape_cast %103 : vector<2x8x32xf32> to vector<16x32xf32>
    %105 = arith.truncf %104 : vector<16x32xf32> to vector<16x32xbf16>
    %c0_33 = arith.constant 0 : index
    %c64 = arith.constant 64 : index
    %106 = vector.load %arg18[%c0_33, %c64] : memref<16x128xbf16, #tpu.memory_space<vmem>>, vector<16x32xbf16>
    tpu.vector_store %arg18[%c0_33, %c64], %105 {strides = array<i32>} : memref<16x128xbf16, #tpu.memory_space<vmem>>, vector<16x32xbf16>,
    %107 = vector.extract_strided_slice %34 {offsets = [0, 96], sizes = [16, 32], strides = [1, 1]} : vector<16x384xbf16> to vector<16x32xbf16>
    %108 = vector.shape_cast %107 : vector<16x32xbf16> to vector<2x8x32xbf16>
    %109 = vector.extract_strided_slice %34 {offsets = [0, 224], sizes = [16, 32], strides = [1, 1]} : vector<16x384xbf16> to vector<16x32xbf16>
    %110 = vector.shape_cast %109 : vector<16x32xbf16> to vector<2x8x32xbf16>
    %111 = vector.extract_strided_slice %34 {offsets = [0, 352], sizes = [16, 32], strides = [1, 1]} : vector<16x384xbf16> to vector<16x32xbf16>
    %112 = vector.shape_cast %111 : vector<16x32xbf16> to vector<2x8x32xbf16>
    "tpu.trace_start"() <{level = 10 : i32, message = "bqd,bkd->bqk"}> : () -> ()
    %cst_34 = arith.constant dense<0.000000e+00> : vector<2x8x8xf32>
    %113 = tpu.matmul %108, %110, %cst_34 {dimension_numbers = #tpu.dot_dimension_numbers<[2], [2], [1], [1], [0, 0, 0, 1, 1, 1], [0], [0]>} : vector<2x8x32xbf16>, vector<2x8x32xbf16>, vector<2x8x8xf32> -> vector<2x8x8xf32>
    "tpu.trace_stop"() : () -> ()
    %114 = vector.broadcast %27 : vector<2x1x8xf32> to vector<2x8x8xf32>
    %115 = arith.addf %113, %114 : vector<2x8x8xf32>
    %cst_35 = arith.constant dense<0xFF800000> : vector<2x8xf32>
    %116 = vector.multi_reduction <maximumf>, %115, %cst_35 [2] : vector<2x8x8xf32> to vector<2x8xf32>
    %117 = vector.shape_cast %116 : vector<2x8xf32> to vector<2x8x1xf32>
    %118 = vector.broadcast %117 : vector<2x8x1xf32> to vector<2x8x8xf32>
    %119 = arith.subf %115, %118 : vector<2x8x8xf32>
    %120 = math.exp %119 : vector<2x8x8xf32>
    %cst_36 = arith.constant dense<0.000000e+00> : vector<2x8xf32>
    %121 = vector.multi_reduction <add>, %120, %cst_36 [2] : vector<2x8x8xf32> to vector<2x8xf32>
    %122 = vector.shape_cast %121 : vector<2x8xf32> to vector<2x8x1xf32>
    %123 = tpu.reciprocal %122 {approx = true} : vector<2x8x1xf32> -> vector<2x8x1xf32>
    %124 = arith.truncf %120 : vector<2x8x8xf32> to vector<2x8x8xbf16>
    "tpu.trace_start"() <{level = 10 : i32, message = "bqk,bkd->bqd"}> : () -> ()
    %cst_37 = arith.constant dense<0.000000e+00> : vector<2x8x32xf32>
    %125 = tpu.matmul %124, %112, %cst_37 {dimension_numbers = #tpu.dot_dimension_numbers<[2], [1], [1], [2], [0, 0, 0, 1, 1, 2], [0], [0]>} : vector<2x8x8xbf16>, vector<2x8x32xbf16>, vector<2x8x32xf32> -> vector<2x8x32xf32>
    "tpu.trace_stop"() : () -> ()
    %126 = vector.broadcast %123 : vector<2x8x1xf32> to vector<2x8x32xf32>
    %127 = arith.mulf %125, %126 : vector<2x8x32xf32>
    %128 = vector.shape_cast %127 : vector<2x8x32xf32> to vector<16x32xf32>
    %129 = arith.truncf %128 : vector<16x32xf32> to vector<16x32xbf16>
    %c0_38 = arith.constant 0 : index
    %c96 = arith.constant 96 : index
    %130 = vector.load %arg18[%c0_38, %c96] : memref<16x128xbf16, #tpu.memory_space<vmem>>, vector<16x32xbf16>
    tpu.vector_store %arg18[%c0_38, %c96], %129 {strides = array<i32>} : memref<16x128xbf16, #tpu.memory_space<vmem>>, vector<16x32xbf16>,
    %c0_39 = arith.constant 0 : index
    %c0_40 = arith.constant 0 : index
    %131 = vector.load %arg18[%c0_39, %c0_40] : memref<16x128xbf16, #tpu.memory_space<vmem>>, vector<16x128xbf16>
    %c0_41 = arith.constant 0 : index
    %c0_42 = arith.constant 0 : index
    %132 = vector.load %arg7[%c0_41, %c0_42] : memref<128x128xbf16, #tpu.memory_space<vmem>>, vector<128x128xbf16>
    %cst_43 = arith.constant dense<0.000000e+00> : vector<16x128xf32>
    %133 = tpu.matmul %131, %132, %cst_43 {dimension_numbers = #tpu.dot_dimension_numbers<[1], [0], [0], [1], [0, 0, 1, 1], [], []>} : vector<16x128xbf16>, vector<128x128xbf16>, vector<16x128xf32> -> vector<16x128xf32>
    %c0_44 = arith.constant 0 : index
    %c0_45 = arith.constant 0 : index
    %134 = vector.load %arg8[%c0_44, %c0_45] : memref<1x128xf32, #tpu.memory_space<vmem>>, vector<1x128xf32>
    %135 = vector.broadcast %134 : vector<1x128xf32> to vector<16x128xf32>
    %136 = arith.addf %133, %135 : vector<16x128xf32>
    %137 = arith.addf %136, %26 : vector<16x128xf32>
    %c0_46 = arith.constant 0 : index
    %c0_47 = arith.constant 0 : index
    %138 = vector.load %arg9[%c0_46, %c0_47] : memref<1x128xf32, #tpu.memory_space<vmem>>, vector<1x128xf32>
    %c0_48 = arith.constant 0 : index
    %c0_49 = arith.constant 0 : index
    %139 = vector.load %arg10[%c0_48, %c0_49] : memref<1x128xf32, #tpu.memory_space<vmem>>, vector<1x128xf32>
    %cst_50 = arith.constant dense<0.000000e+00> : vector<16xf32>
    %140 = vector.multi_reduction <add>, %137, %cst_50 [1] : vector<16x128xf32> to vector<16xf32>
    %141 = vector.shape_cast %140 : vector<16xf32> to vector<16x1xf32>
    %cst_51 = arith.constant 1.280000e+02 : f32
    %142 = vector.broadcast %cst_51 : f32 to vector<16x1xf32>
    %143 = arith.divf %141, %142 : vector<16x1xf32>
    %144 = vector.broadcast %143 : vector<16x1xf32> to vector<16x128xf32>
    %145 = arith.subf %137, %144 : vector<16x128xf32>
    %146 = arith.mulf %145, %145 : vector<16x128xf32>
    %cst_52 = arith.constant dense<0.000000e+00> : vector<16xf32>
    %147 = vector.multi_reduction <add>, %146, %cst_52 [1] : vector<16x128xf32> to vector<16xf32>
    %148 = vector.shape_cast %147 : vector<16xf32> to vector<16x1xf32>
    %cst_53 = arith.constant 1.280000e+02 : f32
    %149 = vector.broadcast %cst_53 : f32 to vector<16x1xf32>
    %150 = arith.divf %148, %149 : vector<16x1xf32>
    %151 = vector.broadcast %143 : vector<16x1xf32> to vector<16x128xf32>
    %152 = arith.subf %137, %151 : vector<16x128xf32>
    %cst_54 = arith.constant 9.99999996E-13 : f32
    %153 = vector.broadcast %cst_54 : f32 to vector<16x1xf32>
    %154 = arith.addf %150, %153 : vector<16x1xf32>
    %155 = math.rsqrt %154 : vector<16x1xf32>
    %156 = vector.broadcast %155 : vector<16x1xf32> to vector<16x128xf32>
    %157 = arith.mulf %152, %156 : vector<16x128xf32>
    %158 = vector.broadcast %138 : vector<1x128xf32> to vector<16x128xf32>
    %159 = arith.mulf %157, %158 : vector<16x128xf32>
    %160 = vector.broadcast %139 : vector<1x128xf32> to vector<16x128xf32>
    %161 = arith.addf %159, %160 : vector<16x128xf32>
    %162 = arith.truncf %161 : vector<16x128xf32> to vector<16x128xbf16>
    %cst_55 = arith.constant 0.000000e+00 : f32
    %163 = vector.broadcast %cst_55 : f32 to vector<16x128xf32>
    %c0_56 = arith.constant 0 : index
    %c0_57 = arith.constant 0 : index
    %164 = vector.load %arg11[%c0_56, %c0_57] : memref<128x256xbf16, #tpu.memory_space<vmem>>, vector<128x128xbf16>
    %cst_58 = arith.constant dense<0.000000e+00> : vector<16x128xf32>
    %165 = tpu.matmul %162, %164, %cst_58 {dimension_numbers = #tpu.dot_dimension_numbers<[1], [0], [0], [1], [0, 0, 1, 1], [], []>} : vector<16x128xbf16>, vector<128x128xbf16>, vector<16x128xf32> -> vector<16x128xf32>
    %c0_59 = arith.constant 0 : index
    %c0_60 = arith.constant 0 : index
    %166 = vector.load %arg12[%c0_59, %c0_60] : memref<1x256xf32, #tpu.memory_space<vmem>>, vector<1x128xf32>
    %167 = vector.broadcast %166 : vector<1x128xf32> to vector<16x128xf32>
    %168 = arith.addf %165, %167 : vector<16x128xf32>
    %169 = arith.mulf %168, %168 : vector<16x128xf32>
    %170 = arith.mulf %168, %169 : vector<16x128xf32>
    %cst_61 = arith.constant 4.471500e-02 : f32
    %171 = vector.broadcast %cst_61 : f32 to vector<16x128xf32>
    %172 = arith.mulf %171, %170 : vector<16x128xf32>
    %173 = arith.addf %168, %172 : vector<16x128xf32>
    %cst_62 = arith.constant 0.797884583 : f32
    %174 = vector.broadcast %cst_62 : f32 to vector<16x128xf32>
    %175 = arith.mulf %174, %173 : vector<16x128xf32>
    %176 = math.tanh %175 : vector<16x128xf32>
    %cst_63 = arith.constant 1.000000e+00 : f32
    %177 = vector.broadcast %cst_63 : f32 to vector<16x128xf32>
    %178 = arith.addf %177, %176 : vector<16x128xf32>
    %cst_64 = arith.constant 5.000000e-01 : f32
    %179 = vector.broadcast %cst_64 : f32 to vector<16x128xf32>
    %180 = arith.mulf %179, %178 : vector<16x128xf32>
    %181 = arith.mulf %168, %180 : vector<16x128xf32>
    %182 = arith.truncf %181 : vector<16x128xf32> to vector<16x128xbf16>
    %c0_65 = arith.constant 0 : index
    %c0_66 = arith.constant 0 : index
    %183 = vector.load %arg13[%c0_65, %c0_66] : memref<256x128xbf16, #tpu.memory_space<vmem>>, vector<128x128xbf16>
    %cst_67 = arith.constant dense<0.000000e+00> : vector<16x128xf32>
    %184 = tpu.matmul %182, %183, %cst_67 {dimension_numbers = #tpu.dot_dimension_numbers<[1], [0], [0], [1], [0, 0, 1, 1], [], []>} : vector<16x128xbf16>, vector<128x128xbf16>, vector<16x128xf32> -> vector<16x128xf32>
    %185 = arith.addf %163, %184 : vector<16x128xf32>
    %c0_68 = arith.constant 0 : index
    %c128 = arith.constant 128 : index
    %186 = vector.load %arg11[%c0_68, %c128] : memref<128x256xbf16, #tpu.memory_space<vmem>>, vector<128x128xbf16>
    %cst_69 = arith.constant dense<0.000000e+00> : vector<16x128xf32>
    %187 = tpu.matmul %162, %186, %cst_69 {dimension_numbers = #tpu.dot_dimension_numbers<[1], [0], [0], [1], [0, 0, 1, 1], [], []>} : vector<16x128xbf16>, vector<128x128xbf16>, vector<16x128xf32> -> vector<16x128xf32>
    %c0_70 = arith.constant 0 : index
    %c128_71 = arith.constant 128 : index
    %188 = vector.load %arg12[%c0_70, %c128_71] : memref<1x256xf32, #tpu.memory_space<vmem>>, vector<1x128xf32>
    %189 = vector.broadcast %188 : vector<1x128xf32> to vector<16x128xf32>
    %190 = arith.addf %187, %189 : vector<16x128xf32>
    %191 = arith.mulf %190, %190 : vector<16x128xf32>
    %192 = arith.mulf %190, %191 : vector<16x128xf32>
    %cst_72 = arith.constant 4.471500e-02 : f32
    %193 = vector.broadcast %cst_72 : f32 to vector<16x128xf32>
    %194 = arith.mulf %193, %192 : vector<16x128xf32>
    %195 = arith.addf %190, %194 : vector<16x128xf32>
    %cst_73 = arith.constant 0.797884583 : f32
    %196 = vector.broadcast %cst_73 : f32 to vector<16x128xf32>
    %197 = arith.mulf %196, %195 : vector<16x128xf32>
    %198 = math.tanh %197 : vector<16x128xf32>
    %cst_74 = arith.constant 1.000000e+00 : f32
    %199 = vector.broadcast %cst_74 : f32 to vector<16x128xf32>
    %200 = arith.addf %199, %198 : vector<16x128xf32>
    %cst_75 = arith.constant 5.000000e-01 : f32
    %201 = vector.broadcast %cst_75 : f32 to vector<16x128xf32>
    %202 = arith.mulf %201, %200 : vector<16x128xf32>
    %203 = arith.mulf %190, %202 : vector<16x128xf32>
    %204 = arith.truncf %203 : vector<16x128xf32> to vector<16x128xbf16>
    %c128_76 = arith.constant 128 : index
    %c0_77 = arith.constant 0 : index
    %205 = vector.load %arg13[%c128_76, %c0_77] : memref<256x128xbf16, #tpu.memory_space<vmem>>, vector<128x128xbf16>
    %cst_78 = arith.constant dense<0.000000e+00> : vector<16x128xf32>
    %206 = tpu.matmul %204, %205, %cst_78 {dimension_numbers = #tpu.dot_dimension_numbers<[1], [0], [0], [1], [0, 0, 1, 1], [], []>} : vector<16x128xbf16>, vector<128x128xbf16>, vector<16x128xf32> -> vector<16x128xf32>
    %207 = arith.addf %185, %206 : vector<16x128xf32>
    %c0_79 = arith.constant 0 : index
    %c0_80 = arith.constant 0 : index
    %208 = vector.load %arg14[%c0_79, %c0_80] : memref<1x128xf32, #tpu.memory_space<vmem>>, vector<1x128xf32>
    %209 = vector.broadcast %208 : vector<1x128xf32> to vector<16x128xf32>
    %210 = arith.addf %207, %209 : vector<16x128xf32>
    %211 = arith.addf %210, %161 : vector<16x128xf32>
    %c0_81 = arith.constant 0 : index
    %c0_82 = arith.constant 0 : index
    %212 = vector.load %arg15[%c0_81, %c0_82] : memref<1x128xf32, #tpu.memory_space<vmem>>, vector<1x128xf32>
    %c0_83 = arith.constant 0 : index
    %c0_84 = arith.constant 0 : index
    %213 = vector.load %arg16[%c0_83, %c0_84] : memref<1x128xf32, #tpu.memory_space<vmem>>, vector<1x128xf32>
    %cst_85 = arith.constant dense<0.000000e+00> : vector<16xf32>
    %214 = vector.multi_reduction <add>, %211, %cst_85 [1] : vector<16x128xf32> to vector<16xf32>
    %215 = vector.shape_cast %214 : vector<16xf32> to vector<16x1xf32>
    %cst_86 = arith.constant 1.280000e+02 : f32
    %216 = vector.broadcast %cst_86 : f32 to vector<16x1xf32>
    %217 = arith.divf %215, %216 : vector<16x1xf32>
    %218 = vector.broadcast %217 : vector<16x1xf32> to vector<16x128xf32>
    %219 = arith.subf %211, %218 : vector<16x128xf32>
    %220 = arith.mulf %219, %219 : vector<16x128xf32>
    %cst_87 = arith.constant dense<0.000000e+00> : vector<16xf32>
    %221 = vector.multi_reduction <add>, %220, %cst_87 [1] : vector<16x128xf32> to vector<16xf32>
    %222 = vector.shape_cast %221 : vector<16xf32> to vector<16x1xf32>
    %cst_88 = arith.constant 1.280000e+02 : f32
    %223 = vector.broadcast %cst_88 : f32 to vector<16x1xf32>
    %224 = arith.divf %222, %223 : vector<16x1xf32>
    %225 = vector.broadcast %217 : vector<16x1xf32> to vector<16x128xf32>
    %226 = arith.subf %211, %225 : vector<16x128xf32>
    %cst_89 = arith.constant 9.99999996E-13 : f32
    %227 = vector.broadcast %cst_89 : f32 to vector<16x1xf32>
    %228 = arith.addf %224, %227 : vector<16x1xf32>
    %229 = math.rsqrt %228 : vector<16x1xf32>
    %230 = vector.broadcast %229 : vector<16x1xf32> to vector<16x128xf32>
    %231 = arith.mulf %226, %230 : vector<16x128xf32>
    %232 = vector.broadcast %212 : vector<1x128xf32> to vector<16x128xf32>
    %233 = arith.mulf %231, %232 : vector<16x128xf32>
    %234 = vector.broadcast %213 : vector<1x128xf32> to vector<16x128xf32>
    %235 = arith.addf %233, %234 : vector<16x128xf32>
    %236 = vector.shape_cast %235 : vector<16x128xf32> to vector<2x8x128xf32>
    %237 = arith.truncf %236 : vector<2x8x128xf32> to vector<2x8x128xbf16>
    %c0_90 = arith.constant 0 : index
    %c0_91 = arith.constant 0 : index
    %c0_92 = arith.constant 0 : index
    %238 = vector.load %arg17[%c0_90, %c0_91, %c0_92] : memref<2x8x128xbf16, #tpu.memory_space<vmem>>, vector<2x8x128xbf16>
    tpu.vector_store %arg17[%c0_90, %c0_91, %c0_92], %237 {strides = array<i32>} : memref<2x8x128xbf16, #tpu.memory_space<vmem>>, vector<2x8x128xbf16>,
    return
  }
  func.func @transform_0(%arg0: i32) -> (i32, i32, i32) {
    %c0_i32 = arith.constant 0 : i32
    %c0_i32_0 = arith.constant 0 : i32
    %c0_i32_1 = arith.constant 0 : i32
    return %arg0, %c0_i32, %c0_i32_0 : i32, i32, i32
  }
  func.func @transform_1(%arg0: i32) -> (i32, i32, i32) {
    %c0_i32 = arith.constant 0 : i32
    %c0_i32_0 = arith.constant 0 : i32
    %c0_i32_1 = arith.constant 0 : i32
    return %arg0, %c0_i32, %c0_i32_0 : i32, i32, i32
  }
  func.func @transform_2(%arg0: i32) -> (i32, i32) {
    %c0_i32 = arith.constant 0 : i32
    %c0_i32_0 = arith.constant 0 : i32
    %c0_i32_1 = arith.constant 0 : i32
    return %c0_i32, %c0_i32_0 : i32, i32
  }
  func.func @transform_3(%arg0: i32) -> (i32, i32) {
    %c0_i32 = arith.constant 0 : i32
    %c0_i32_0 = arith.constant 0 : i32
    %c0_i32_1 = arith.constant 0 : i32
    return %c0_i32, %c0_i32_0 : i32, i32
  }
  func.func @transform_4(%arg0: i32) -> (i32, i32) {
    %c0_i32 = arith.constant 0 : i32
    %c0_i32_0 = arith.constant 0 : i32
    %c0_i32_1 = arith.constant 0 : i32
    return %c0_i32, %c0_i32_0 : i32, i32
  }
  func.func @transform_5(%arg0: i32) -> (i32, i32) {
    %c0_i32 = arith.constant 0 : i32
    %c0_i32_0 = arith.constant 0 : i32
    %c0_i32_1 = arith.constant 0 : i32
    return %c0_i32, %c0_i32_0 : i32, i32
  }
  func.func @transform_6(%arg0: i32) -> (i32, i32) {
    %c0_i32 = arith.constant 0 : i32
    %c0_i32_0 = arith.constant 0 : i32
    %c0_i32_1 = arith.constant 0 : i32
    return %c0_i32, %c0_i32_0 : i32, i32
  }
  func.func @transform_7(%arg0: i32) -> (i32, i32) {
    %c0_i32 = arith.constant 0 : i32
    %c0_i32_0 = arith.constant 0 : i32
    %c0_i32_1 = arith.constant 0 : i32
    return %c0_i32, %c0_i32_0 : i32, i32
  }
  func.func @transform_8(%arg0: i32) -> (i32, i32) {
    %c0_i32 = arith.constant 0 : i32
    %c0_i32_0 = arith.constant 0 : i32
    %c0_i32_1 = arith.constant 0 : i32
    return %c0_i32, %c0_i32_0 : i32, i32
  }
  func.func @transform_9(%arg0: i32) -> (i32, i32) {
    %c0_i32 = arith.constant 0 : i32
    %c0_i32_0 = arith.constant 0 : i32
    %c0_i32_1 = arith.constant 0 : i32
    return %c0_i32, %c0_i32_0 : i32, i32
  }
  func.func @transform_10(%arg0: i32) -> (i32, i32) {
    %c0_i32 = arith.constant 0 : i32
    %c0_i32_0 = arith.constant 0 : i32
    %c0_i32_1 = arith.constant 0 : i32
    return %c0_i32, %c0_i32_0 : i32, i32
  }
  func.func @transform_11(%arg0: i32) -> (i32, i32) {
    %c0_i32 = arith.constant 0 : i32
    %c0_i32_0 = arith.constant 0 : i32
    %c0_i32_1 = arith.constant 0 : i32
    return %c0_i32, %c0_i32_0 : i32, i32
  }
  func.func @transform_12(%arg0: i32) -> (i32, i32) {
    %c0_i32 = arith.constant 0 : i32
    %c0_i32_0 = arith.constant 0 : i32
    %c0_i32_1 = arith.constant 0 : i32
    return %c0_i32, %c0_i32_0 : i32, i32
  }
  func.func @transform_13(%arg0: i32) -> (i32, i32) {
    %c0_i32 = arith.constant 0 : i32
    %c0_i32_0 = arith.constant 0 : i32
    %c0_i32_1 = arith.constant 0 : i32
    return %c0_i32, %c0_i32_0 : i32, i32
  }
  func.func @transform_14(%arg0: i32) -> (i32, i32) {
    %c0_i32 = arith.constant 0 : i32
    %c0_i32_0 = arith.constant 0 : i32
    %c0_i32_1 = arith.constant 0 : i32
    return %c0_i32, %c0_i32_0 : i32, i32
  }
  func.func @transform_15(%arg0: i32) -> (i32, i32) {
    %c0_i32 = arith.constant 0 : i32
    %c0_i32_0 = arith.constant 0 : i32
    %c0_i32_1 = arith.constant 0 : i32
    return %c0_i32, %c0_i32_0 : i32, i32
  }
  func.func @transform_16(%arg0: i32) -> (i32, i32, i32) {
    %c0_i32 = arith.constant 0 : i32
    %c0_i32_0 = arith.constant 0 : i32
    %c0_i32_1 = arith.constant 0 : i32
    return %arg0, %c0_i32, %c0_i32_0 : i32, i32, i32
  }
}

</mosaic_0001>

<bundles_post_ra>
// kernel: tpu_custom_call.1
= control target key start
LH: loop header
LB: loop body
LE: loop exit
PB: predicated region body
PF: predicated region fallthrough
CT: control target
= control target key end

     0   :  { %s4547_s0 = inlined_call_operand.hbm [shape: bf16[4,8,128], index: 0, kind: input, shape index: {}]   ;;  %s4548_s1 = inlined_call_operand.hbm [shape: f32[4,1,8], index: 1, kind: input, shape index: {}]   ;;  %s4549_s2 = inlined_call_operand.hbm [shape: f32[1,128], index: 2, kind: input, shape index: {}]   ;;  %s4550_s3 = inlined_call_operand.hbm [shape: f32[1,128], index: 3, kind: input, shape index: {}]   ;;  %s4551_s4 = inlined_call_operand.hbm [shape: bf16[128,384], index: 4, kind: input, shape index: {}]   ;;  %s4552_s5 = inlined_call_operand.vmem [shape: f32[1,384], index: 5, kind: input, shape index: {}]   ;;  %s4553_s6 = inlined_call_operand.hbm [shape: bf16[128,128], index: 6, kind: input, shape index: {}]   ;;  %s4554_s7 = inlined_call_operand.vmem [shape: f32[1,128], index: 7, kind: input, shape index: {}]   ;;  %s4555_s8 = inlined_call_operand.vmem [shape: f32[1,128], index: 8, kind: input, shape index: {}]   ;;  %s4556_s9 = inlined_call_operand.vmem [shape: f32[1,128], index: 9, kind: input, shape index: {}]   ;;  %s4557_s10 = inlined_call_operand.hbm [shape: bf16[128,256], index: 10, kind: input, shape index: {}]   ;;  %s4558_s11 = inlined_call_operand.vmem [shape: f32[1,256], index: 11, kind: input, shape index: {}]   ;;  %s4559_s12 = inlined_call_operand.hbm [shape: bf16[256,128], index: 12, kind: input, shape index: {}]   ;;  %s4560_s13 = inlined_call_operand.vmem [shape: f32[1,128], index: 13, kind: input, shape index: {}]   ;;  %s4561_s14 = inlined_call_operand.vmem [shape: f32[1,128], index: 14, kind: input, shape index: {}]   ;;  %s4562_s15 = inlined_call_operand.vmem [shape: f32[1,128], index: 15, kind: input, shape index: {}]   ;;  %s4563_s16 = inlined_call_operand.hbm [shape: bf16[4,8,128], index: 16, kind: output, shape index: {}]  }
   0x1   :  { %4579 = sst [smem:[#allocation30_spill]] %s4547_s0 }
   0x2   :  { %4580 = sst [smem:[#allocation31_spill]] %s4549_s2 }
   0x3   :  { %4581 = sst [smem:[#allocation32_spill]] %s4550_s3 }
   0x4   :  { %4582 = sst [smem:[#allocation33_spill]] %s4551_s4 }
   0x5   :  { %4583 = sst [smem:[#allocation34_spill]] %s4553_s6 }
   0x6   :  { %4584 = sst [smem:[#allocation35_spill]] %s4557_s10 }
   0x7   :  { %4585 = sst [smem:[#allocation36_spill]] %s4559_s12 }
   0x8   :  { %4586 = sst [smem:[#allocation37_spill]] %s4562_s15 }
   0x9   :  { %4587 = sst [smem:[#allocation38_spill]] %s4563_s16 }
   0xa   :  { %21 = vsyncpa [#allocation4], 0 }
   0xb   :  { %23 = vsyncpa [#allocation4 + $0x1], 0 }
   0xc   :  { %24 = vsyncpa [#allocation7], 0 }
   0xd   :  { %26 = vsyncpa [#allocation7 + $0x1], 0 }
   0xe   :  { %27 = vsyncpa [#allocation10], 0 }
   0xf   :  { %28 = vsyncpa [#allocation13], 0 }
  0x10   :  { %29 = vsyncpa [#allocation16], 0 }
  0x11   :  { %30 = vsyncpa [#allocation5], 0 }
  0x12   :  { %32 = vsyncpa [#allocation5 + $0x1], 0  ;;  %s3914_s21 = smov 0   ;;  %s3916_s22 = smov 0  }
  0x13   :  { %s3918_s23 = smov 0   ;;  %s3920_s24 = smov 0  }
  0x14 LB: > { %4588 = sst [smem:[#allocation25_spill]] %s3791_s21  ;;  %s3805_s25 = smov [#allocation8]   ;;  %s3803_s24 = sphi %s3920_s24, %s4629_s24   ;;  %s3799_s23 = sphi %s3918_s23, %s4631_s23   ;;  %s3795_s22 = sphi %s3916_s22, %s4633_s22   ;;  %s3791_s21 = sphi %s3914_s21, %s4632_s21  }
  0x15   : > { %4589 = sst [smem:[#allocation26_spill]] %s3799_s23  ;;  %s428_s26 = sshll.u32 %s3805_s25, 4  ;;  %s429_s26 = int_to_ptr.vmem [resolvable:$true] %s428_s26 }
  0x16   : > { %s3935_s27 = sadd.s32 4294967295, %s3803_s24   ;;  %p2791_p0 = scmp.ge.s32.totalorder %s3803_s24, 1 }
  0x17   : > { %p4566_p1 = scmp.eq.s32.totalorder %s3935_s27, 0  ;;  %p415_p2 = scmp.lt.s32.totalorder %s3803_s24, 3 }
  0x18   : > { %s3806_s29 = smov [#allocation9]   ;;  %s3807_s0 = smov [#allocation12]  }
  0x19   : > { %p3940_p3 = pnand %p2791_p0, %p415_p2  ;;  %s439_s30 = sshll.u32 %s3806_s29, 4  ;;  %s440_s30 = int_to_ptr.vmem [resolvable:$true] %s439_s30 }
  0x1a   : > { %s465_s17 = sshll.u32 %s3807_s0, 4  ;;  %s3518_s20 = scalar_lea.vmem %s429_s26, 16  ;;  %s3953_s17 = int_to_ptr.vmem [resolvable:$true] %s465_s17 }
  0x1b   : > { %s4590_s28 = scalar_select %p3940_p3, 1, 0 }
  0x1c   : > { %p3285_p5 = pneg %p3940_p3  ;;  %p3519_p8 = scmp.ne.s32.totalorder %s429_s26, %s3518_s20 }
  0x1d   : > { %s3525_s25 = scalar_lea.vmem %s429_s26, 32  ;;  %p3526_p11 = scmp.lt.s32.totalorder %s429_s26, %s429_s26 }
  0x1e   : > { %p3949_p6 = pnand %p3285_p5, %p4566_p1  ;;  %p3527_p12 = scmp.lt.s32.totalorder %s3525_s25, %s3518_s20 }
  0x20   : > { %p3957_p7 = pneg %p3949_p6  ;;  %p3528_p13 = por %p3527_p12, %p3526_p11 }
  0x22   : > { %p3521_p9 = pnand %p3519_p8, %p3957_p7 }
  0x24   : > { %p3522_p10 = pneg %p3521_p9 }
  0x26   : > { %p3529_p0 = pnand %p3528_p13, %p3522_p10 }
  0x28   : > { %3532 = shalt.err (!%p3529_p0)
}
  0x29   : > { %s4593_s2 = sld [smem:[#allocation31_spill]]  ;;  %s3544_s16 = scalar_lea.vmem %s440_s30, 16 }
  0x2a   : > { %p3545_p2 = scmp.ne.s32.totalorder %s440_s30, %s3544_s16  ;;  %s3551_s15 = scalar_lea.vmem %s440_s30, 32 }
  0x2b   : > { %p3552_p8 = scmp.lt.s32.totalorder %s440_s30, %s440_s30  ;;  %p3553_p9 = scmp.lt.s32.totalorder %s3551_s15, %s3544_s16 }
  0x2c   : > { %p3547_p5 = pnand %p3545_p2, %p3957_p7 }
  0x2d   : > { %p3554_p1 = por %p3553_p9, %p3552_p8 }
  0x2e   : > { %p3548_p4 = pneg %p3547_p5 }
  0x2f   : > { %3288 = dma.hbm_to_vmem [thread:$0]  (!%p3949_p6), %s4593_s2, 16, %s429_s26, [#allocation7]  }
  0x30   : > { %p3555_p3 = pnand %p3554_p1, %p3548_p4 }
  0x32   : > { %3558 = shalt.err (!%p3555_p3)
}
  0x33   : > { %s4594_s3 = sld [smem:[#allocation32_spill]]  ;;  %s3570_s26 = scalar_lea.vmem %s3953_s17, 1024 }
  0x34   : > { %p3571_p10 = scmp.ne.s32.totalorder %s3953_s17, %s3570_s26  ;;  %p3578_p13 = scmp.lt.s32.totalorder %s3953_s17, %s3953_s17 }
  0x35   : > { %p3579_p0 = scmp.lt.s32.totalorder %s3570_s26, %s3570_s26 }
  0x36   : > { %p3573_p11 = pnand %p3571_p10, %p3957_p7 }
  0x37   : > { %p3580_p1 = por %p3579_p0, %p3578_p13 }
  0x38   : > { %p3574_p12 = pneg %p3573_p11 }
  0x39   : > { %3291 = dma.hbm_to_vmem [thread:$0]  (!%p3949_p6), %s4594_s3, 16, %s440_s30, [#allocation10]  }
  0x3a   : > { %p3581_p3 = pnand %p3580_p1, %p3574_p12 }
  0x3c   : > { %3584 = shalt.err (!%p3581_p3)
}
  0x3d   : > { %s4568_s15 = smov 64   ;;  %s4570_s16 = smov 4  }
  0x3e   : > { %s4595_s6 = sld [smem:[#allocation34_spill]]  ;;  %s3810_s0 = smov [#allocation11]  }
  0x3f   : > { %s449_s20 = sshll.u32 %s3810_s0, 4  ;;  %s450_s20 = int_to_ptr.vmem [resolvable:$true] %s449_s20 }
  0x40   : > { %s3596_s25 = scalar_lea.vmem %s450_s20, 3072  ;;  %p3604_p8 = scmp.lt.s32.totalorder %s450_s20, %s450_s20 }
  0x41   : > { %p3597_p4 = scmp.ne.s32.totalorder %s450_s20, %s3596_s25  ;;  %p3605_p9 = scmp.lt.s32.totalorder %s3596_s25, %s3596_s25 }
  0x43   : > { %p3599_p2 = pnand %p3597_p4, %p3957_p7  ;;  %p3606_p10 = por %p3605_p9, %p3604_p8 }
  0x44   : > { %3297 = dma.hbm_to_vmem [thread:$0]  (!%p3949_p6), %s4595_s6, 1024, %s3953_s17, [#allocation13], %s4568_s15, %s4568_s15, %s4570_s16  }
  0x45   : > { %p3600_p5 = pneg %p3599_p2 }
  0x47   : > { %p3607_p11 = pnand %p3606_p10, %p3600_p5 }
  0x49   : > { %3610 = shalt.err (!%p3607_p11)
}
  0x4a   : > { %s3811_s26 = smov 192   ;;  %s3812_s2 = smov 12  }
  0x4b   : > { %s4596_s4 = sld [smem:[#allocation33_spill]]  ;;  %s3813_s29 = smov [#allocation14]  }
  0x4c   : > { %s487_s0 = sshll.u32 %s3813_s29, 4  ;;  %s488_s0 = int_to_ptr.vmem [resolvable:$true] %s487_s0 }
  0x4d   : > { %s3622_s15 = scalar_lea.vmem %s488_s0, 2048  ;;  %p3630_p1 = scmp.lt.s32.totalorder %s488_s0, %s488_s0 }
  0x4e   : > { %p3623_p12 = scmp.ne.s32.totalorder %s488_s0, %s3622_s15  ;;  %p3631_p3 = scmp.lt.s32.totalorder %s3622_s15, %s3622_s15 }
  0x50   : > { %p3625_p13 = pnand %p3623_p12, %p3957_p7  ;;  %p3632_p4 = por %p3631_p3, %p3630_p1 }
  0x51   : > { %3294 = dma.hbm_to_vmem [thread:$0]  (!%p3949_p6), %s4596_s4, 3072, %s450_s20, [#allocation10], %s3811_s26, %s3811_s26, %s3812_s2  }
  0x52   : > { %p3626_p0 = pneg %p3625_p13 }
  0x54   : > { %p3633_p2 = pnand %p3632_p4, %p3626_p0 }
  0x56   : > { %3636 = shalt.err (!%p3633_p2)
}
  0x57   : > { %s3814_s25 = smov 128   ;;  %s3815_s16 = smov 8  }
  0x58   : > { %s4597_s10 = sld [smem:[#allocation35_spill]]  ;;  %s3816_s20 = smov [#allocation15]  }
  0x59   : > { %s503_s26 = sshll.u32 %s3816_s20, 4  ;;  %s504_s26 = int_to_ptr.vmem [resolvable:$true] %s503_s26 }
  0x5a   : > { %s3648_s17 = scalar_lea.vmem %s504_s26, 2048  ;;  %p3656_p10 = scmp.lt.s32.totalorder %s504_s26, %s504_s26 }
  0x5b   : > { %p3649_p5 = scmp.ne.s32.totalorder %s504_s26, %s3648_s17  ;;  %p3657_p11 = scmp.lt.s32.totalorder %s3648_s17, %s3648_s17 }
  0x5d   : > { %p3651_p8 = pnand %p3649_p5, %p3957_p7  ;;  %p3658_p12 = por %p3657_p11, %p3656_p10 }
  0x5e   : > { %3300 = dma.hbm_to_vmem [thread:$0]  (!%p3949_p6), %s4597_s10, 2048, %s488_s0, [#allocation13], %s3814_s25, %s3814_s25, %s3815_s16  }
  0x5f   : > { %p3652_p9 = pneg %p3651_p8 }
  0x61   : > { %p3659_p13 = pnand %p3658_p12, %p3652_p9 }
  0x63   : > { %3662 = shalt.err (!%p3659_p13)
}
  0x64   : > { %s4598_s15 = smov 4   ;;  %s4599_s29 = smov 64  }
  0x65   : > { %s4600_s12 = sld [smem:[#allocation36_spill]]  ;;  %s2790_s18 = sadd.s32 4294967294, %s3803_s24  }
  0x66   : > { %s4016_s19 = sadd.s32 1, %s3803_s24   ;;  %s45_s25 = sadd.s32 1, %s3799_s23 }
  0x67   : > { %4601 = sst [smem:[#allocation27_spill]] %s4016_s19  ;;  %s42_s0 = ssub.s32 %s3803_s24, %s4016_s19 }
  0x68   : > { %p43_p7 = scmp.eq.s32.totalorder %s42_s0, 0  ;;  %p52_p0 = scmp.ne.s32.totalorder %s3799_s23, %s3795_s22 }
  0x69   : > { %p53_p1 = scmp.eq.s32.totalorder %s3803_s24, 0  ;;  %p58_p3 = scmp.ne.s32.totalorder %s3795_s22, %s3791_s21 }
  0x6a   : > { %s4027_s2 = scalar_select %p43_p7, %s3799_s23, %s45_s25  }
  0x6b   : > { %3303 = dma.hbm_to_vmem [thread:$0]  (!%p3949_p6), %s4600_s12, 2048, %s504_s26, [#allocation16], %s4599_s29, %s4599_s29, %s4598_s15  }
  0x6c   : > { %4602 = sst [smem:[#allocation28_spill]] %s4027_s2  ;;  %p4029_p4 = por %p53_p1, %p52_p0 }
  0x6d   : > { %p4604_p2 = scmp.eq.s32.totalorder %s3935_s27, 0  ;;  %p402_p5 = scmp.eq.s32.totalorder %s3935_s27, 1 }
  0x6e   : > { %p408_p8 = scmp.eq.s32.totalorder %s2790_s18, 1  ;;  %p3321_p9 = scmp.lt.s32.totalorder %s3803_s24, 2 }
  0x6f   : > { %p4035_p6 = por %p4604_p2, %p58_p3  ;;  %s4042_s17 = sand.u32 1, %s3799_s23  }
  0x70   : > { %p4044_p10 = por %p402_p5, %p52_p0  ;;  %p4048_p11 = por %p408_p8, %p58_p3 }
  0x71   : > { %s2799_s0 = sshll.u32 %s4042_s17, 3  ;;  %s2927_s25 = sshll.u32 %s3803_s24, 7 }
  0x72   : > { %s4606_s30 = scalar_select %p4044_p10, 1, 0 }
  0x73   : > { %s4607_s16 = scalar_select %p4048_p11, 1, 0 }
  0x74   : > { %s4609_s6 = sld [smem:[#allocation30_spill]]  ;;  %s530_s10 = scalar_lea.vmem [#allocation3], %s2799_s0 }
  0x75   : > { %4608 = sst [smem:[#allocation29_spill]] %s4607_s16  ;;  %s537_s12 = sshll.u32 %s530_s10, 4  ;;  %s4059_s12 = int_to_ptr.vmem [resolvable:$true] %s537_s12 }
  0x76   : > { %p4063_p12 = pnand %p3321_p9, %p4029_p4  ;;  %s527_s16 = scalar_lea.sflag [#allocation4], %s4042_s17 }
  0x78   : > { %p3665_p7 = pneg %p4063_p12 }
  0x7a   : > { %s4057_s18 = scalar_lea.hbm %s4609_s6, %s2927_s25  ;;  %s3668_s20 = scalar_lea.hbm %s4609_s6, 256 }
  0x7b   : > { %s3663_s3 = scalar_lea.hbm %s4057_s18, 128  ;;  %p3669_p3 = scmp.lt.s32.totalorder %s4057_s18, %s4609_s6 }
  0x7c   : > { %p3664_p13 = scmp.ne.s32.totalorder %s4057_s18, %s3663_s3  ;;  %p3670_p4 = scmp.lt.s32.totalorder %s3668_s20, %s3663_s3 }
  0x7e   : > { %p3666_p0 = pnand %p3665_p7, %p3664_p13  ;;  %p3671_p2 = por %p3670_p4, %p3669_p3 }
  0x80   : > { %p3667_p1 = pneg %p3666_p0 }
  0x82   : > { %p3672_p5 = pnand %p3671_p2, %p3667_p1 }
  0x84   : > { %3675 = shalt.err (!%p3672_p5)
}
  0x85   : > { %s3676_s23 = scalar_lea.vmem %s4059_s12, 128  ;;  %s3817_s4 = smov [#allocation3]  }
  0x86   : > { %p3677_p8 = scmp.ne.s32.totalorder %s4059_s12, %s3676_s23  ;;  %s3681_s10 = sshll.u32 %s3817_s4, 4  ;;  %s3682_s10 = int_to_ptr.vmem [resolvable:$false] %s3681_s10 }
  0x87   : > { %s3683_s19 = scalar_lea.vmem %s3682_s10, 256  ;;  %p3684_p0 = scmp.lt.s32.totalorder %s4059_s12, %s3682_s10 }
  0x88   : > { %p3679_p9 = pnand %p3677_p8, %p3665_p7  ;;  %p3685_p11 = scmp.lt.s32.totalorder %s3683_s19, %s3676_s23 }
  0x8a   : > { %p3680_p13 = pneg %p3679_p9  ;;  %p3686_p10 = por %p3685_p11, %p3684_p0 }
  0x8c   : > { %p3687_p3 = pnand %p3686_p10, %p3680_p13 }
  0x8e   : > { %3690 = shalt.err (!%p3687_p3)
}
  0x8f   : > { %3307 = dma.hbm_to_vmem [thread:$0]  (!%p4063_p12), %s4057_s18, 128, %s4059_s12, %s527_s16, %s4599_s29, %s4599_s29, %s4598_s15  }
  0x90   : > { %s2928_s3 = sshll.u32 %s3803_s24, 5  ;;  %s4611_s0 = sshll.u32 %s4042_s17, 1 }
  0x91   : > { %s4103_s19 = scalar_lea.hbm %s4548_s1, %s2928_s3  ;;  %s551_s25 = scalar_lea.vmem [#allocation6], %s4611_s0 }
  0x92   : > { %s558_s4 = sshll.u32 %s551_s25, 4  ;;  %s4612_s10 = sand.u32 1, %s3803_s24   ;;  %s4107_s4 = int_to_ptr.vmem [resolvable:$true] %s558_s4 }
  0x93   : > { %s4111_s6 = scalar_lea.sflag [#allocation7], %s4612_s10  ;;  %s3691_s21 = scalar_lea.hbm %s4103_s19, 32 }
  0x94   : > { %p3692_p10 = scmp.ne.s32.totalorder %s4103_s19, %s3691_s21  ;;  %s3696_s29 = scalar_lea.hbm %s4548_s1, 64 }
  0x95   : > { %p3697_p4 = scmp.lt.s32.totalorder %s4103_s19, %s4548_s1  ;;  %p3698_p2 = scmp.lt.s32.totalorder %s3696_s29, %s3691_s21 }
  0x96   : > { %p3694_p11 = pnand %p3692_p10, %p3665_p7 }
  0x97   : > { %p3699_p5 = por %p3698_p2, %p3697_p4 }
  0x98   : > { %p3695_p1 = pneg %p3694_p11 }
  0x9a   : > { %p3700_p8 = pnand %p3699_p5, %p3695_p1 }
  0x9c   : > { %3703 = shalt.err (!%p3700_p8)
}
  0x9d   : > { %s3704_s18 = scalar_lea.vmem %s4107_s4, 32  ;;  %s3818_s3 = smov [#allocation6]  }
  0x9e   : > { %p3705_p9 = scmp.ne.s32.totalorder %s4107_s4, %s3704_s18  ;;  %s3709_s20 = sshll.u32 %s3818_s3, 4  ;;  %s3710_s20 = int_to_ptr.vmem [resolvable:$false] %s3709_s20 }
  0x9f   : > { %s3711_s23 = scalar_lea.vmem %s3710_s20, 64  ;;  %p3712_p3 = scmp.lt.s32.totalorder %s4107_s4, %s3710_s20 }
  0xa0   : > { %p3707_p13 = pnand %p3705_p9, %p3665_p7  ;;  %p3713_p10 = scmp.lt.s32.totalorder %s3711_s23, %s3704_s18 }
  0xa2   : > { %p3708_p0 = pneg %p3707_p13  ;;  %p3714_p11 = por %p3713_p10, %p3712_p3 }
  0xa4   : > { %p3715_p4 = pnand %p3714_p11, %p3708_p0 }
  0xa6   : > { %3718 = shalt.err (!%p3715_p4)
}
  0xa7   : > { %s3819_s21 = smov 16   ;;  %s3820_s0 = smov 1  }
  0xa8   : > { %3310 = dma.hbm_to_vmem [thread:$0]  (!%p4063_p12), %s4103_s19, 32, %s4107_s4, %s4111_s6, %s3819_s21, %s3819_s21, %s3820_s0  }
  0xa9   : > { %p4613_p7 = scmp.ne.s32.totalorder %s4590_s28, 0 }
  0xaa   : > { %s4139_s25 = sand.u32 (!%p4613_p7), 1, %s3795_s22  }
  0xab   : > { %570 = sbr.rel (%p4613_p7) target bundleno = 3749 (0xea5), region = 84  ;;  %s2806_s10 = sshll.u32 (!%p4613_p7), %s4139_s25, 3 }
  0xac   : > { %s573_s12 = scalar_lea.sflag (!%p4613_p7), [#allocation4], %s4139_s25  ;;  %s576_s15 = scalar_lea.vmem (!%p4613_p7), [#allocation3], %s2806_s10 }
  0xb0   : > { %3762 = dma.done.wait (%p4035_p6), %s573_s12, 128  }
  0xb1   : > { %3764 = vsyncadd (%p4035_p6), %s573_s12, 4294967168  ;;  %s581_s6 = sand.u32 1, %s3935_s27   ;;  %s2807_s28 = sshll.u32 %s4139_s25, 1 }
  0xb2   : > { %s582_s2 = scalar_lea.sflag [#allocation7], %s581_s6  ;;  %s4151_s19 = scalar_lea.vmem [#allocation6], %s2807_s28 }
  0xb3   : > { %3766 = dma.done.wait (%p4035_p6), %s582_s2, 32  }
  0xb4   : > { %3768 = vsyncadd (%p4035_p6), %s582_s2, 4294967264  ;;  %p4614_p12 = scmp.eq.s32.totalorder %s3935_s27, 0 }
  0xb6   : > { %3770 = dma.done.wait (%p4614_p12), [#allocation7], 16   ;;  %p4615_p1 = pmov %p4614_p12 }
  0xb8   : > { %3772 = vsyncadd (%p4615_p1), [#allocation7], 4294967280  ;;  %p4616_p2 = pmov %p4615_p1 }
  0xb9   : > { %p4617_p5 = pmov %p4615_p1 }
  0xba   : > { %3774 = dma.done.wait (%p4616_p2), [#allocation10], 3088  }
  0xbb   : > { %3776 = vsyncadd (%p4617_p5), [#allocation10], 4294964208  ;;  %p4618_p8 = pmov %p4615_p1 }
  0xbc   : > { %p4619_p9 = pmov %p4615_p1 }
  0xbd   : > { %3778 = dma.done.wait (%p4618_p8), [#allocation13], 3072  }
  0xbe   : > { %3780 = vsyncadd (%p4619_p9), [#allocation13], 4294964224  ;;  %p4620_p6 = pmov %p4615_p1 }
  0xbf   : > { %p4621_p13 = pmov %p4615_p1 }
  0xc0   : > { %3782 = dma.done.wait (%p4620_p6), [#allocation16], 2048  }
  0xc1   : > { %3784 = vsyncadd (%p4621_p13), [#allocation16], 4294965248  ;;  %v2945_v0 = vld [vmem:[%s576_s15] sm:$0xff]   ;;  %v3821_v5 = vmov 0.0   ;;  %v3389_v17 = vld [vmem:[#allocation11 + $0x98] ss:$12 sps:$4 sm:$0xff]   ;;  %v749_v54 = vlaneseq }
  0xc2   : > { %v2946_v1 = vunpack.c.l.bf16 %v2945_v0  ;;  %v2947_v2 = vunpack.c.h.bf16 %v2945_v0  ;;  %v3382_v3 = vld [vmem:[#allocation11 + $0xac] ss:$12 sps:$4 sm:$0xff]   ;;  %v3384_v4 = vld [vmem:[#allocation11 + $0xa8] ss:$12 sps:$4 sm:$0xff]   ;;  %3039 = vmatprep.subr.bf16.mxu1 %v3821_v5  ;;  %v3385_v6 = vld [vmem:[#allocation11 + $0xb0] ss:$12 sps:$4 sm:$0xff]  }
  0xc3   : > { %892 = vmatprep.subr.bf16.mxu0 %v3382_v3  ;;  %3040 = vmatpush3.bf16.msra.mxu1 %v3385_v6  ;;  %v3386_v15 = vld [vmem:[#allocation11 + $0x94] ss:$12 sps:$4 sm:$0xff]   ;;  %v3388_v16 = vld [vmem:[#allocation11 + $0x90] ss:$12 sps:$4 sm:$0xff]   ;;  %v3392_v19 = vld [vmem:[#allocation11 + $0x78] ss:$12 sps:$4 sm:$0xff]  }
  0xc4   : > { %673 = vadd.xlane.f32.xlu0 %v2946_v1  ;;  %893 = vmatpush1.bf16.msra.mxu0 %v3384_v4  ;;  %v3390_v18 = vld [vmem:[#allocation11 + $0x7c] ss:$12 sps:$4 sm:$0xff]   ;;  %v3393_v20 = vld [vmem:[#allocation11 + $0x80] ss:$12 sps:$4 sm:$0xff]   ;;  %v3394_v21 = vld [vmem:[#allocation11 + $0x64] ss:$12 sps:$4 sm:$0xff]  }
  0xc5   : > { %3041 = vmatprep.subr.bf16.mxu1 %v3821_v5  ;;  %894 = vmatprep.subr.bf16.mxu0 %v3386_v15  ;;  %v3396_v22 = vld [vmem:[#allocation11 + $0x60] ss:$12 sps:$4 sm:$0xff]   ;;  %v3397_v23 = vld [vmem:[#allocation11 + $0x68] ss:$12 sps:$4 sm:$0xff]   ;;  %v3401_v26 = vld [vmem:[#allocation11 + $0x50] ss:$12 sps:$4 sm:$0xff]  }
  0xc6   : > { %v3398_v24 = vld [vmem:[#allocation11 + $0x4c] ss:$12 sps:$4 sm:$0xff]   ;;  %v3400_v25 = vld [vmem:[#allocation11 + $0x48] ss:$12 sps:$4 sm:$0xff]   ;;  %v3822_v28 = vmov 0   ;;  %vm3823_vm0 = vmmov 0  }
  0xc7   : > { %3042 = vmatpush3.bf16.msra.mxu1 %v3389_v17  ;;  %v3402_v27 = vld [vmem:[#allocation11 + $0x34] ss:$12 sps:$4 sm:$0xff]   ;;  %924 = vmatprep.mubr.bf16.mxu0 %v3822_v28  ;;  %v3404_v29 = vld [vmem:[#allocation11 + $0x30] ss:$12 sps:$4 sm:$0xff]   ;;  %v3405_v30 = vld [vmem:[#allocation11 + $0x38] ss:$12 sps:$4 sm:$0xff]  }
  0xc8   : > { %675 = vadd.xlane.f32.xlu0 %v2947_v2  ;;  %895 = vmatpush1.bf16.msra.mxu0 %v3388_v16  ;;  %v3406_v31 = vld [vmem:[#allocation11 + $0x1c] ss:$12 sps:$4 sm:$0xff]   ;;  %v3408_v32 = vld [vmem:[#allocation11 + $0x18] ss:$12 sps:$4 sm:$0xff]   ;;  %v3409_v33 = vld [vmem:[#allocation11 + $0x20] ss:$12 sps:$4 sm:$0xff]  }
  0xc9   : > { %3043 = vmatprep.subr.bf16.mxu1 %v3821_v5  ;;  %896 = vmatprep.subr.bf16.mxu0 %v3390_v18  ;;  %v3410_v34 = vld [vmem:[#allocation11 + $0x4] ss:$12 sps:$4 sm:$0xff]   ;;  %v3412_v35 = vld [vmem:[#allocation11] ss:$12 sps:$4 sm:$0xff]   ;;  %v3413_v36 = vld [vmem:[#allocation11 + $0x8] ss:$12 sps:$4 sm:$0xff]  }
  0xca   : > { %3055 = vmatprep.mubr.msk.bf16.mxu1 %vm3823_vm0, %v3821_v5  ;;  %v2815_v45 = vld [vmem:[#allocation8] ss:$0 sm:$0xff]  ;;  %v2816_v49 = vld [vmem:[#allocation9] ss:$0 sm:$0xff]  ;;  %v750_v55 = vshrl.u32 %v749_v54, 7  ;;  %vm1006_vm1 = vcmask 261120  }
  0xcb   : > { %3044 = vmatpush3.bf16.msra.mxu1 %v3393_v20  ;;  %v747_v57 = vld [vmem:[%s4552_s5] sm:$0x7]  ;;  %s3824_s29 = smov 96   ;;  %vm1125_vm2 = vcmask 1043456   ;;  %vm1099_vm3 = vcmask 64512   ;;  %s3825_s17 = smov 64  }
  0xcc   : > { %897 = vmatpush1.bf16.msra.mxu0 %v3392_v19  ;;  %3045 = vmatprep.subr.bf16.mxu1 %v3821_v5  ;;  %v755_v56 = vsub.s32 1, %v750_v55  ;;  %v759_v58 = vsub.s32 2, %v750_v55  ;;  %v751_v62 = vsub.s32 0, %v750_v55  ;;  %s3826_s16 = smov 32   ;;  %vm1225_vm4 = vcmask 257024   ;;  %s4622_s18 = sld [smem:[#allocation37_spill]] }
  0xcd   : > { %898 = vmatprep.subr.bf16.mxu0 %v3394_v21  ;;  %vm1460_vm5 = vcmask 519424   ;;  %vm1695_vm6 = vcmask 781824   ;;  %vm1930_vm7 = vcmask 1044224   ;;  %s2943_s3 = sshll.u32 %s3935_s27, 7  ;;  %s662_s20 = scalar_lea.vmem [#allocation17], %s2806_s10 }
  0xce   : > { %v756_v59 = vrot.slane %v747_v57, %v755_v56  ;;  %v752_v6 = vrot.slane %v747_v57, %v751_v62  ;;  %s2637_s23 = sshll.u32 %s662_s20, 4  ;;  %s4623_s12 = sld [smem:[#allocation38_spill]]  ;;  %s4502_s23 = int_to_ptr.vmem [resolvable:$true] %s2637_s23 }
  0xcf   : > { %3046 = vmatpush3.bf16.msra.mxu1 %v3397_v23  ;;  %s2624_s6 = scalar_lea.sflag [#allocation5], %s4139_s25  ;;  %s3719_s28 = scalar_lea.vmem %s4502_s23, 128 }
  0xd0   : > { %899 = vmatpush1.bf16.msra.mxu0 %v3396_v22  ;;  %3047 = vmatprep.subr.bf16.mxu1 %v3821_v5  ;;  %v4238_v22 = vld [vmem:[%s4151_s19] ss:$0 sm:$0xff]  ;;  %p3720_p0 = scmp.ne.s32.totalorder %s4502_s23, %s3719_s28  ;;  %p4624_p3 = scmp.ne.s32.totalorder %s4606_s30, 0 }
  0xd1   : > { %900 = vmatprep.subr.bf16.mxu0 %v3398_v24  ;;  %s3827_s27 = smov [#allocation17]  }
  0xd2   : > { %p3721_p10 = pnand %p3720_p0, %p4624_p3  ;;  %s3723_s10 = sshll.u32 %s3827_s27, 4  ;;  %s3724_s10 = int_to_ptr.vmem [resolvable:$false] %s3723_s10 }
  0xd3   : > { %3048 = vmatpush3.bf16.msra.mxu1 %v3401_v26  ;;  %s3725_s2 = scalar_lea.vmem %s3724_s10, 256  ;;  %p3726_p4 = scmp.lt.s32.totalorder %s4502_s23, %s3724_s10 }
  0xd4   : > { %901 = vmatpush1.bf16.msra.mxu0 %v3400_v25  ;;  %3049 = vmatprep.subr.bf16.mxu1 %v3821_v5  ;;  %s4500_s15 = scalar_lea.hbm %s4623_s12, %s2943_s3  ;;  %p3722_p11 = pneg %p3721_p10 }
  0xd5   : > { %902 = vmatprep.subr.bf16.mxu0 %v3402_v27  ;;  %p3727_p7 = scmp.lt.s32.totalorder %s3725_s2, %s3719_s28 }
  0xd7   : > { %3050 = vmatpush3.bf16.msra.mxu1 %v3405_v30  ;;  %p3728_p12 = por %p3727_p7, %p3726_p4 }
  0xd8   : > { %903 = vmatpush1.bf16.msra.mxu0 %v3404_v29  ;;  %3051 = vmatprep.subr.bf16.mxu1 %v3821_v5  ;;  %v4243_v29 = vld [vmem:[%s4151_s19 + $0x1] ss:$0 sm:$0xff] }
  0xd9   : > { %904 = vmatprep.subr.bf16.mxu0 %v3406_v31  ;;  %p3729_p1 = pnand %p3728_p12, %p3722_p11 }
  0xdb   : > { %3052 = vmatpush3.bf16.msra.mxu1 %v3409_v33 }
  0xdc   : > { %905 = vmatpush1.bf16.msra.mxu0 %v3408_v32  ;;  %3053 = vmatprep.subr.bf16.mxu1 %v3821_v5 }
  0xdd   : > { %906 = vmatprep.subr.bf16.mxu0 %v3410_v34 }
  0xdf   : > { %3054 = vmatpush3.bf16.msra.mxu1 %v3413_v36 }
  0xe0   : > { %907 = vmatpush1.bf16.msra.mxu0 %v3412_v35  ;;  %3059 = vmatprep.subr.bf16.mxu1 %v3821_v5 }
  0xe1   : > { %3083 = vmatprep.subr.bf16.mxu0 %v3821_v5 }
 0x14d   : > { %v674_v7 = vpop.xlane.xlu0 %673 }
 0x14e   : > { %v678_v8 = vmul.f32 0.0078125, %v674_v7 }
 0x150   : > { %v4175_v9 = vsub.f32 %v2946_v1, %v678_v8  ;;  %v760_v1 = vrot.slane %v747_v57, %v759_v58 }
 0x151   : > { %v676_v10 = vpop.xlane.xlu0 %675 }
 0x152   : > { %v679_v11 = vmul.f32 0.0078125, %v676_v10  ;;  %v682_v12 = vmul.f32 %v4175_v9, %v4175_v9 }
 0x154   : > { %v4179_v13 = vsub.f32 %v2947_v2, %v679_v11  ;;  %684 = vadd.xlane.f32.xlu1 %v682_v12 }
 0x156   : > { %v683_v14 = vmul.f32 %v4179_v13, %v4179_v13 }
 0x158   : > { %686 = vadd.xlane.f32.xlu1 %v683_v14 }
 0x1dd   : > { %v685_v37 = vpop.xlane.xlu1 %684 }
 0x1de   : > { %v688_v38 = vmul.f32 0.0078125, %v685_v37 }
 0x1e0   : > { %v690_v39 = vadd.f32 1e-12, %v688_v38 }
 0x1e1   : > { %v687_v40 = vpop.xlane.xlu1 %686 }
 0x1e2   : > { %3455 = vrsqrt.f32 %v690_v39  ;;  %v689_v41 = vmul.f32 0.0078125, %v687_v40 }
 0x1e4   : > { %v691_v42 = vadd.f32 1e-12, %v689_v41 }
 0x1e6   : > { %3457 = vrsqrt.f32 %v691_v42 }
 0x1ef   : > { %v3456_v43 = vpop.eup %3455 }
 0x1f0   : > { %v694_v44 = vmul.f32 %v3456_v43, %v4175_v9 }
 0x1f2   : > { %v702_v48 = vmul.f32 %v2815_v45, %v694_v44 }
 0x1f3   : > { %v3458_v46 = vpop.eup %3457 }
 0x1f4   : > { %v695_v47 = vmul.f32 %v3458_v46, %v4179_v13  ;;  %v4195_v51 = vadd.f32 %v2816_v49, %v702_v48 }
 0x1f6   : > { %v703_v50 = vmul.f32 %v2815_v45, %v695_v47 }
 0x1f8   : > { %v4197_v52 = vadd.f32 %v2816_v49, %v703_v50 }
 0x1fa   : > { %v714_v53 = vpack.c.bf16 %v4197_v52, %v4195_v51 }
 0x1fc   : > { %925 = vmatmul.mubr.bf16.vlgmr.msra.gmra.mxu0 %v714_v53  ;;  %3056 = vmatmul.mubr.bf16.vlgmr.msra.gmra.mxu1 %v714_v53 }
 0x1fd   : > { %3061 = vmatprep.mubr.msk.bf16.mxu1 %vm3823_vm0, %v3821_v5  ;;  %3085 = vmatprep.mubr.msk.bf16.mxu0 %vm3823_vm0, %v3821_v5 }
 0x2bc   : > { %v926_v60 = vpop.f32.mrf.mxu0  ;;  %v969_v61 = vpop.f32.mrf.mxu1 }
 0x2bd   : > { %v927_v13 = vadd.f32 %v926_v60, %v752_v6  ;;  %v970_v16 = vadd.f32 %v969_v61, %v760_v1 }
 0x2be   : > { %v928_v63 = vpop.f32.mrf.mxu0  ;;  %v3057_v0 = vpop.f32.mrf.mxu1 }
 0x2bf   : > { %v929_v2 = vadd.f32 %v928_v63, %v756_v59  ;;  %v4217_v15 = vpack.c.bf16 %v927_v13, %v927_v13  ;;  %v4226_v19 = vpack.c.bf16 %v970_v16, %v970_v16 }
 0x2c0   : > { %v930_v3 = vpop.f32.mrf.mxu0  ;;  %v972_v4 = vpop.f32.mrf.mxu1 }
 0x2c1   : > { %v4208_v7 = vpack.c.bf16 %v929_v2, %v929_v2  ;;  %v973_v8 = vadd.f32 %v972_v4, %v760_v1  ;;  %v931_v18 = vadd.f32 %v930_v3, %v752_v6  ;;  %v1127_v21 = vsel %vm1125_vm2, %v4226_v19, 0 }
 0x2c2   : > { %v932_v9 = vpop.f32.mrf.mxu0  ;;  %v3058_v10 = vpop.f32.mrf.mxu1 }
 0x2c3   : > { %v933_v11 = vadd.f32 %v932_v9, %v756_v59  ;;  %v1011_v12 = vsel %vm1006_vm1, %v4208_v7, 0  ;;  %v4228_v20 = vpack.c.bf16 %v931_v18, %v931_v18  ;;  %v4253_v36 = vpack.c.bf16 %v973_v8, %v973_v8 }
 0x2c4   : > { %3060 = vmatpush3.bf16.xpose.msra.mxu1 %v1011_v12 }
 0x2c5   : > { %v4212_v14 = vpack.c.bf16 %v933_v11, %v933_v11  ;;  %3065 = vmatprep.subr.bf16.mxu1 %v3821_v5  ;;  %v1173_v49 = vsel %vm1125_vm2, %v4253_v36, 0 }
 0x2c7   : > { %1280 = vrot.lane.b32.xlu1 %v4212_v14, %s3824_s29  ;;  %v1057_v17 = vsel %vm1006_vm1, %v4212_v14, 0 }
 0x2cb   : > { %3062 = vmatmul.mubr.msk.bf16.vlgmr.msra.gmra.mxu1 %vm1006_vm1, %v4217_v15 }
 0x2cc   : > { %3066 = vmatpush3.bf16.xpose.msra.mxu1 %v1057_v17  ;;  %3067 = vmatprep.mubr.msk.bf16.mxu1 %vm3823_vm0, %v3821_v5 }
 0x2cd   : > { %3071 = vmatprep.subr.bf16.mxu1 %v3821_v5 }
 0x2d3   : > { %3068 = vmatmul.mubr.msk.bf16.vlgmr.msra.gmra.mxu1 %vm1006_vm1, %v4228_v20 }
 0x2d4   : > { %3072 = vmatpush3.bf16.msra.mxu1 %v1127_v21  ;;  %3073 = vmatprep.mubr.msk.bf16.mxu1 %vm3823_vm0, %v3821_v5 }
 0x2d5   : > { %3077 = vmatprep.subr.bf16.mxu1 %v3821_v5 }
 0x339   : > { %v1281_v40 = vpop.permute.xlu1 %1280 }
 0x33a   : > { %v1286_v55 = vsel %vm1006_vm1, %v1281_v40, 0 }
 0x38b   : > { %v1047_v23 = vpop.f32.mrf.mxu1 }
 0x38c   : > { %v1048_v24 = vadd.f32 %v4238_v22, %v1047_v23 }
 0x38d   : > { %v3063_v25 = vpop.f32.mrf.mxu1 }
 0x38e   : > { %v1100_v26 = vsel %vm1099_vm3, %v1048_v24, -inf }
 0x38f   : > { %1101 = vmax.xlane.f32.xlu0 %v1100_v26  ;;  %v1050_v27 = vpop.f32.mrf.mxu1 }
 0x391   : > { %v3064_v28 = vpop.f32.mrf.mxu1 }
 0x393   : > { %v1093_v30 = vpop.f32.mrf.mxu1 }
 0x394   : > { %v1094_v31 = vadd.f32 %v4243_v29, %v1093_v30 }
 0x395   : > { %v3069_v32 = vpop.f32.mrf.mxu1 }
 0x396   : > { %v1103_v33 = vsel %vm1099_vm3, %v1094_v31, -inf }
 0x397   : > { %1104 = vmax.xlane.f32.xlu1 %v1103_v33  ;;  %v1096_v34 = vpop.f32.mrf.mxu1 }
 0x399   : > { %v3070_v35 = vpop.f32.mrf.mxu1 }
 0x3a5   : > { %1230 = vrot.lane.b32.xlu0 %v4208_v7, %s3824_s29 }
 0x3a8   : > { %1228 = vrot.lane.b32.xlu1 %v4217_v15, %s3824_s29 }
 0x3ac   : > { %1278 = vrot.lane.b32.xlu1 %v4228_v20, %s3824_s29 }
 0x3b0   : > { %1398 = vrot.lane.b32.xlu1 %v4253_v36, %s3824_s29 }
 0x418   : > { %v1102_v37 = vpop.xlane.xlu0 %1101 }
 0x419   : > { %v1106_v38 = vsub.f32 %v1048_v24, %v1102_v37 }
 0x41b   : > { %v1108_v39 = vmul.f32 1.442695, %v1106_v38 }
 0x41c   : > { %v1231_v41 = vpop.permute.xlu0 %1230 }
 0x41d   : > { %3459 = vpow2.f32 %v1108_v39  ;;  %v1236_v42 = vsel %vm1006_vm1, %v1231_v41, 0 }
 0x41e   : > { %3084 = vmatpush3.bf16.xpose.msra.mxu0 %v1236_v42 }
 0x41f   : > { %3095 = vmatprep.subr.bf16.mxu0 %v3821_v5 }
 0x420   : > { %v1105_v43 = vpop.xlane.xlu1 %1104 }
 0x421   : > { %v1107_v44 = vsub.f32 %v1094_v31, %v1105_v43 }
 0x423   : > { %v1110_v45 = vmul.f32 1.442695, %v1107_v44 }
 0x424   : > { %v1229_v46 = vpop.permute.xlu1 %1228 }
 0x425   : > { %3461 = vpow2.f32 %v1110_v45  ;;  %3086 = vmatmul.mubr.msk.bf16.vlgmr.msra.gmra.mxu0 %vm1006_vm1, %v1229_v46 }
 0x426   : > { %3097 = vmatprep.mubr.msk.bf16.mxu0 %vm3823_vm0, %v3821_v5 }
 0x428   : > { %v1279_v54 = vpop.permute.xlu1 %1278 }
 0x42a   : > { %v4262_v47 = vpop.eup %3459 }
 0x42b   : > { %v1120_v48 = vpack.c.bf16 %v4262_v47, %v4262_v47 }
 0x42c   : > { %v1399_v56 = vpop.permute.xlu1 %1398 }
 0x42d   : > { %3074 = vmatmul.mubr.msk.bf16.vlgmr.msra.gmra.mxu1 %vm1099_vm3, %v1120_v48  ;;  %v1404_v57 = vsel %vm1125_vm2, %v1399_v56, 0 }
 0x42e   : > { %3078 = vmatpush3.bf16.msra.mxu1 %v1173_v49  ;;  %3079 = vmatprep.mubr.msk.bf16.mxu1 %vm3823_vm0, %v3821_v5 }
 0x42f   : > { %3089 = vmatprep.subr.bf16.mxu1 %v3821_v5 }
 0x432   : > { %v4272_v50 = vpop.eup %3461 }
 0x433   : > { %v1121_v53 = vpack.c.bf16 %v4272_v50, %v4272_v50 }
 0x435   : > { %3080 = vmatmul.mubr.msk.bf16.vlgmr.msra.gmra.mxu1 %vm1099_vm3, %v1121_v53 }
 0x436   : > { %3090 = vmatpush3.bf16.xpose.msra.mxu1 %v1286_v55  ;;  %3091 = vmatprep.mubr.msk.bf16.mxu1 %vm3823_vm0, %v3821_v5 }
 0x437   : > { %3101 = vmatprep.subr.bf16.mxu1 %v3821_v5 }
 0x43d   : > { %3092 = vmatmul.mubr.msk.bf16.vlgmr.msra.gmra.mxu1 %vm1006_vm1, %v1279_v54 }
 0x43e   : > { %3102 = vmatpush3.bf16.msra.mxu1 %v1404_v57  ;;  %3103 = vmatprep.mubr.msk.bf16.mxu1 %vm3823_vm0, %v3821_v5 }
 0x43f   : > { %3113 = vmatprep.subr.bf16.mxu1 %v3821_v5 }
 0x4e5   : > { %v1272_v58 = vpop.f32.mrf.mxu0 }
 0x4e6   : > { %v1273_v59 = vadd.f32 %v4238_v22, %v1272_v58 }
 0x4e7   : > { %v3087_v60 = vpop.f32.mrf.mxu0 }
 0x4e8   : > { %v1328_v61 = vsel %vm1099_vm3, %v1273_v59, -inf }
 0x4e9   : > { %1329 = vmax.xlane.f32.xlu0 %v1328_v61  ;;  %v1275_v62 = vpop.f32.mrf.mxu0 }
 0x4eb   : > { %v3088_v63 = vpop.f32.mrf.mxu0 }
 0x4ed   : > { %v4288_v0 = vpop.f32.mrf.mxu1 }
 0x4ef   : > { %v3075_v1 = vpop.f32.mrf.mxu1 }
 0x4f1   : > { %v1166_v2 = vpop.f32.mrf.mxu1 }
 0x4f3   : > { %v3076_v3 = vpop.f32.mrf.mxu1 }
 0x4f5   : > { %v4290_v4 = vpop.f32.mrf.mxu1 }
 0x4f7   : > { %v3081_v6 = vpop.f32.mrf.mxu1 }
 0x4f9   : > { %v1212_v8 = vpop.f32.mrf.mxu1 }
 0x4fb   : > { %v3082_v9 = vpop.f32.mrf.mxu1 }
 0x4fd   : > { %v1322_v10 = vpop.f32.mrf.mxu1 }
 0x4fe   : > { %v1323_v11 = vadd.f32 %v4243_v29, %v1322_v10 }
 0x4ff   : > { %1350 = vrot.lane.b32.xlu0 %v4226_v19, %s3824_s29  ;;  %v3093_v12 = vpop.f32.mrf.mxu1 }
 0x500   : > { %v1331_v13 = vsel %vm1099_vm3, %v1323_v11, -inf }
 0x501   : > { %1332 = vmax.xlane.f32.xlu1 %v1331_v13  ;;  %v1325_v16 = vpop.f32.mrf.mxu1 }
 0x503   : > { %1465 = vrot.lane.b32.xlu0 %v4208_v7, %s3825_s17  ;;  %v3094_v17 = vpop.f32.mrf.mxu1 }
 0x507   : > { %1463 = vrot.lane.b32.xlu0 %v4217_v15, %s3825_s17 }
 0x512   : > { %1515 = vrot.lane.b32.xlu1 %v4212_v14, %s3825_s17 }
 0x516   : > { %1513 = vrot.lane.b32.xlu1 %v4228_v20, %s3825_s17 }
 0x51a   : > { %1633 = vrot.lane.b32.xlu1 %v4253_v36, %s3825_s17 }
 0x572   : > { %v1330_v18 = vpop.xlane.xlu0 %1329 }
 0x573   : > { %v1334_v21 = vsub.f32 %v1273_v59, %v1330_v18 }
 0x575   : > { %v1336_v23 = vmul.f32 1.442695, %v1334_v21 }
 0x576   : > { %v1351_v24 = vpop.permute.xlu0 %1350 }
 0x577   : > { %3463 = vpow2.f32 %v1336_v23  ;;  %v1356_v25 = vsel %vm1125_vm2, %v1351_v24, 0 }
 0x578   : > { %3096 = vmatpush3.bf16.msra.mxu0 %v1356_v25 }
 0x579   : > { %3107 = vmatprep.subr.bf16.mxu0 %v3821_v5 }
 0x57a   : > { %v1466_v27 = vpop.permute.xlu0 %1465 }
 0x57b   : > { %v1471_v30 = vsel %vm1006_vm1, %v1466_v27, 0 }
 0x57e   : > { %v1464_v34 = vpop.permute.xlu0 %1463 }
 0x584   : > { %v4308_v26 = vpop.eup %3463 }
 0x585   : > { %v1348_v28 = vpack.c.bf16 %v4308_v26, %v4308_v26 }
 0x587   : > { %3098 = vmatmul.mubr.msk.bf16.vlgmr.msra.gmra.mxu0 %vm1099_vm3, %v1348_v28 }
 0x588   : > { %3108 = vmatpush3.bf16.xpose.msra.mxu0 %v1471_v30  ;;  %3109 = vmatprep.mubr.msk.bf16.mxu0 %vm3823_vm0, %v3821_v5 }
 0x589   : > { %3119 = vmatprep.subr.bf16.mxu0 %v3821_v5 }
 0x58a   : > { %v1333_v31 = vpop.xlane.xlu1 %1332 }
 0x58b   : > { %v1335_v32 = vsub.f32 %v1323_v11, %v1333_v31 }
 0x58d   : > { %v1338_v33 = vmul.f32 1.442695, %v1335_v32 }
 0x58e   : > { %v1516_v35 = vpop.permute.xlu1 %1515 }
 0x58f   : > { %3465 = vpow2.f32 %v1338_v33  ;;  %3110 = vmatmul.mubr.msk.bf16.vlgmr.msra.gmra.mxu0 %vm1006_vm1, %v1464_v34  ;;  %v1521_v40 = vsel %vm1006_vm1, %v1516_v35, 0 }
 0x590   : > { %3121 = vmatprep.mubr.msk.bf16.mxu0 %vm3823_vm0, %v3821_v5 }
 0x592   : > { %v1514_v39 = vpop.permute.xlu1 %1513 }
 0x596   : > { %v1634_v41 = vpop.permute.xlu1 %1633 }
 0x597   : > { %v1639_v42 = vsel %vm1125_vm2, %v1634_v41, 0 }
 0x59c   : > { %v4320_v37 = vpop.eup %3465 }
 0x59d   : > { %v1349_v38 = vpack.c.bf16 %v4320_v37, %v4320_v37 }
 0x59f   : > { %3104 = vmatmul.mubr.msk.bf16.vlgmr.msra.gmra.mxu1 %vm1099_vm3, %v1349_v38 }
 0x5a0   : > { %3114 = vmatpush3.bf16.xpose.msra.mxu1 %v1521_v40  ;;  %3115 = vmatprep.mubr.msk.bf16.mxu1 %vm3823_vm0, %v3821_v5 }
 0x5a1   : > { %3125 = vmatprep.subr.bf16.mxu1 %v3821_v5 }
 0x5a7   : > { %3116 = vmatmul.mubr.msk.bf16.vlgmr.msra.gmra.mxu1 %vm1006_vm1, %v1514_v39 }
 0x5a8   : > { %3126 = vmatpush3.bf16.msra.mxu1 %v1639_v42  ;;  %3127 = vmatprep.mubr.msk.bf16.mxu1 %vm3823_vm0, %v3821_v5 }
 0x5a9   : > { %3137 = vmatprep.subr.bf16.mxu1 %v3821_v5 }
 0x647   : > { %v4334_v43 = vpop.f32.mrf.mxu0 }
 0x649   : > { %v3099_v44 = vpop.f32.mrf.mxu0 }
 0x64b   : > { %v1395_v45 = vpop.f32.mrf.mxu0 }
 0x64d   : > { %v3100_v46 = vpop.f32.mrf.mxu0 }
 0x64f   : > { %v1507_v48 = vpop.f32.mrf.mxu0 }
 0x650   : > { %v1508_v49 = vadd.f32 %v4238_v22, %v1507_v48 }
 0x651   : > { %v3111_v53 = vpop.f32.mrf.mxu0 }
 0x652   : > { %v1563_v54 = vsel %vm1099_vm3, %v1508_v49, -inf }
 0x653   : > { %1564 = vmax.xlane.f32.xlu0 %v1563_v54  ;;  %v1510_v55 = vpop.f32.mrf.mxu0  ;;  %v1340_v54 = vsel %vm1099_vm3, %v4308_v26, 0.0 }
 0x655   : > { %v3112_v56 = vpop.f32.mrf.mxu0 }
 0x65f   : > { %v4338_v57 = vpop.f32.mrf.mxu1 }
 0x661   : > { %v3105_v58 = vpop.f32.mrf.mxu1 }
 0x663   : > { %v1443_v59 = vpop.f32.mrf.mxu1 }
 0x665   : > { %v3106_v60 = vpop.f32.mrf.mxu1 }
 0x667   : > { %v1557_v61 = vpop.f32.mrf.mxu1 }
 0x668   : > { %v1558_v62 = vadd.f32 %v4243_v29, %v1557_v61 }
 0x669   : > { %1585 = vrot.lane.b32.xlu0 %v4226_v19, %s3825_s17  ;;  %v3117_v63 = vpop.f32.mrf.mxu1 }
 0x66a   : > { %v1566_v1 = vsel %vm1099_vm3, %v1558_v62, -inf }
 0x66b   : > { %1567 = vmax.xlane.f32.xlu1 %v1566_v1  ;;  %v1560_v2 = vpop.f32.mrf.mxu1 }
 0x66d   : > { %1700 = vrot.lane.b32.xlu0 %v4208_v7, %s3826_s16  ;;  %v3118_v3 = vpop.f32.mrf.mxu1 }
 0x671   : > { %1698 = vrot.lane.b32.xlu0 %v4217_v15, %s3826_s16 }
 0x67c   : > { %1750 = vrot.lane.b32.xlu1 %v4212_v14, %s3826_s16 }
 0x680   : > { %1748 = vrot.lane.b32.xlu1 %v4228_v20, %s3826_s16 }
 0x6dc   : > { %v1565_v6 = vpop.xlane.xlu0 %1564 }
 0x6dd   : > { %v1569_v8 = vsub.f32 %v1508_v49, %v1565_v6 }
 0x6df   : > { %v1571_v9 = vmul.f32 1.442695, %v1569_v8 }
 0x6e0   : > { %v1586_v10 = vpop.permute.xlu0 %1585 }
 0x6e1   : > { %3467 = vpow2.f32 %v1571_v9  ;;  %v1591_v11 = vsel %vm1125_vm2, %v1586_v10, 0 }
 0x6e2   : > { %3120 = vmatpush3.bf16.msra.mxu0 %v1591_v11 }
 0x6e3   : > { %3131 = vmatprep.subr.bf16.mxu0 %v3821_v5 }
 0x6e4   : > { %v1701_v12 = vpop.permute.xlu0 %1700 }
 0x6e5   : > { %v1706_v15 = vsel %vm1006_vm1, %v1701_v12, 0 }
 0x6e8   : > { %v1699_v17 = vpop.permute.xlu0 %1698 }
 0x6ee   : > { %v3468_v7 = vpop.eup %3467 }
 0x6ef   : > { %v1583_v13 = vpack.c.bf16 %v3468_v7, %v3468_v7  ;;  %v1575_v55 = vsel %vm1099_vm3, %v3468_v7, 0.0 }
 0x6f1   : > { %3122 = vmatmul.mubr.msk.bf16.vlgmr.msra.gmra.mxu0 %vm1099_vm3, %v1583_v13 }
 0x6f2   : > { %3132 = vmatpush3.bf16.xpose.msra.mxu0 %v1706_v15  ;;  %3133 = vmatprep.mubr.msk.bf16.mxu0 %vm3823_vm0, %v3821_v5 }
 0x6f3   : > { %3143 = vmatprep.subr.bf16.mxu0 %v3821_v5 }
 0x6f4   : > { %v1568_v14 = vpop.xlane.xlu1 %1567 }
 0x6f5   : > { %v1570_v20 = vsub.f32 %v1558_v62, %v1568_v14 }
 0x6f7   : > { %v1573_v16 = vmul.f32 1.442695, %v1570_v20 }
 0x6f8   : > { %v1751_v21 = vpop.permute.xlu1 %1750 }
 0x6f9   : > { %3469 = vpow2.f32 %v1573_v16  ;;  %3134 = vmatmul.mubr.msk.bf16.vlgmr.msra.gmra.mxu0 %vm1006_vm1, %v1699_v17  ;;  %v1756_v24 = vsel %vm1006_vm1, %v1751_v21, 0 }
 0x6fa   : > { %3145 = vmatprep.mubr.msk.bf16.mxu0 %vm3823_vm0, %v3821_v5 }
 0x6fc   : > { %v1749_v25 = vpop.permute.xlu1 %1748 }
 0x706   : > { %v3470_v18 = vpop.eup %3469 }
 0x707   : > { %v1584_v23 = vpack.c.bf16 %v3470_v18, %v3470_v18 }
 0x709   : > { %3128 = vmatmul.mubr.msk.bf16.vlgmr.msra.gmra.mxu1 %vm1099_vm3, %v1584_v23 }
 0x70a   : > { %3138 = vmatpush3.bf16.xpose.msra.mxu1 %v1756_v24  ;;  %3139 = vmatprep.mubr.msk.bf16.mxu1 %vm3823_vm0, %v3821_v5 }
 0x70b   : > { %3149 = vmatprep.subr.bf16.mxu1 %v3821_v5 }
 0x711   : > { %3140 = vmatmul.mubr.msk.bf16.vlgmr.msra.gmra.mxu1 %vm1006_vm1, %v1749_v25 }
 0x712   : > { %3151 = vmatprep.mubr.msk.bf16.mxu1 %vm3823_vm0, %v3821_v5 }
 0x7b1   : > { %v4370_v27 = vpop.f32.mrf.mxu0 }
 0x7b3   : > { %v3123_v28 = vpop.f32.mrf.mxu0 }
 0x7b5   : > { %v1630_v30 = vpop.f32.mrf.mxu0 }
 0x7b7   : > { %v3124_v31 = vpop.f32.mrf.mxu0 }
 0x7b9   : > { %v1742_v32 = vpop.f32.mrf.mxu0 }
 0x7ba   : > { %v1743_v33 = vadd.f32 %v4238_v22, %v1742_v32 }
 0x7bb   : > { %v3135_v34 = vpop.f32.mrf.mxu0 }
 0x7bc   : > { %v1798_v35 = vsel %vm1099_vm3, %v1743_v33, -inf }
 0x7bd   : > { %1799 = vmax.xlane.f32.xlu0 %v1798_v35  ;;  %v1745_v38 = vpop.f32.mrf.mxu0 }
 0x7bf   : > { %v3136_v39 = vpop.f32.mrf.mxu0 }
 0x7c9   : > { %v4374_v40 = vpop.f32.mrf.mxu1 }
 0x7cb   : > { %v3129_v41 = vpop.f32.mrf.mxu1 }
 0x7cc   : > { %v3415_v41 = vld [vmem:[#allocation12 + $0x30] sm:$0xff]  }
 0x7cd   : > { %v1678_v42 = vpop.f32.mrf.mxu1 }
 0x7ce   : > { %v3416_v42 = vld [vmem:[#allocation12 + $0x28] sm:$0xff]  }
 0x7cf   : > { %v3130_v44 = vpop.f32.mrf.mxu1 }
 0x7d1   : > { %v1792_v45 = vpop.f32.mrf.mxu1 }
 0x7d2   : > { %v1793_v46 = vadd.f32 %v4243_v29, %v1792_v45  ;;  %v1578_v29 = vsel %vm1099_vm3, %v3470_v18, 0.0 }
 0x7d3   : > { %1820 = vrot.lane.b32.xlu0 %v4226_v19, %s3826_s16  ;;  %v3141_v48 = vpop.f32.mrf.mxu1  ;;  %v1343_v19 = vsel %vm1099_vm3, %v4320_v37, 0.0  ;;  %v1112_v37 = vsel %vm1099_vm3, %v4262_v47, 0.0  ;;  %v1115_v47 = vsel %vm1099_vm3, %v4272_v50, 0.0 }
 0x7d4   : > { %v1801_v22 = vsel %vm1099_vm3, %v1793_v46, -inf }
 0x7d5   : > { %1802 = vmax.xlane.f32.xlu1 %v1801_v22  ;;  %v1795_v49 = vpop.f32.mrf.mxu1  ;;  %v3417_v22 = vld [vmem:[#allocation12 + $0x20] sm:$0xff]  }
 0x7d7   : > { %v3142_v53 = vpop.f32.mrf.mxu1 }
 0x7e6   : > { %1868 = vrot.lane.b32.xlu1 %v4253_v36, %s3826_s16 }
 0x7f2   : > { %1341 = vadd.xlane.f32.xlu0 %v1340_v54 }
 0x7f6   : > { %1576 = vadd.xlane.f32.xlu0 %v1575_v55 }
 0x7fa   : > { %1579 = vadd.xlane.f32.xlu0 %v1578_v29  ;;  %v3418_v29 = vld [vmem:[#allocation12 + $0x18] sm:$0xff]  }
 0x80a   : > { %1344 = vadd.xlane.f32.xlu1 %v1343_v19  ;;  %v3419_v19 = vld [vmem:[#allocation12 + $0x10] sm:$0xff]  }
 0x846   : > { %v1800_v56 = vpop.xlane.xlu0 %1799 }
 0x847   : > { %v1804_v58 = vsub.f32 %v1743_v33, %v1800_v56  ;;  %v3420_v56 = vld [vmem:[#allocation12 + $0x8] sm:$0xff]  }
 0x849   : > { %v1806_v59 = vmul.f32 1.442695, %v1804_v58  ;;  %v3421_v58 = vld [vmem:[#allocation12] sm:$0xff]  }
 0x84a   : > { %v1821_v60 = vpop.permute.xlu0 %1820 }
 0x84b   : > { %3471 = vpow2.f32 %v1806_v59  ;;  %v1826_v36 = vsel %vm1125_vm2, %v1821_v60, 0 }
 0x84c   : > { %3144 = vmatpush3.bf16.msra.mxu0 %v1826_v36 }
 0x84d   : > { %3155 = vmatprep.subr.bf16.mxu0 %v3821_v5 }
 0x858   : > { %v3472_v26 = vpop.eup %3471 }
 0x859   : > { %v1810_v61 = vsel %vm1099_vm3, %v3472_v26, 0.0  ;;  %v1818_v62 = vpack.c.bf16 %v3472_v26, %v3472_v26 }
 0x85a   : > { %1811 = vadd.xlane.f32.xlu0 %v1810_v61 }
 0x85b   : > { %3146 = vmatmul.mubr.msk.bf16.vlgmr.msra.gmra.mxu0 %vm1099_vm3, %v1818_v62 }
 0x85c   : > { %3171 = vmatprep.mubr.msk.bf16.mxu0 %vm3823_vm0, %v3821_v5 }
 0x85e   : > { %1113 = vadd.xlane.f32.xlu0 %v1112_v37  ;;  %v1803_v63 = vpop.xlane.xlu1 %1802 }
 0x85f   : > { %v1805_v1 = vsub.f32 %v1793_v46, %v1803_v63 }
 0x861   : > { %v1808_v2 = vmul.f32 1.442695, %v1805_v1 }
 0x862   : > { %v1869_v3 = vpop.permute.xlu1 %1868 }
 0x863   : > { %3473 = vpow2.f32 %v1808_v2  ;;  %v1874_v6 = vsel %vm1125_vm2, %v1869_v3, 0  ;;  %v2873_v3 = vld [vmem:[%s4554_s7] ss:$0 sm:$0xff] }
 0x864   : > { %3150 = vmatpush3.bf16.msra.mxu1 %v1874_v6 }
 0x865   : > { %3175 = vmatprep.subr.bf16.mxu1 %v3821_v5 }
 0x870   : > { %v3474_v8 = vpop.eup %3473 }
 0x871   : > { %v1813_v9 = vsel %vm1099_vm3, %v3474_v8, 0.0  ;;  %v1819_v10 = vpack.c.bf16 %v3474_v8, %v3474_v8 }
 0x872   : > { %1814 = vadd.xlane.f32.xlu1 %v1813_v9 }
 0x873   : > { %3152 = vmatmul.mubr.msk.bf16.vlgmr.msra.gmra.mxu1 %vm1099_vm3, %v1819_v10 }
 0x874   : > { %3191 = vmatprep.mubr.msk.bf16.mxu1 %vm3823_vm0, %v3821_v5 }
 0x876   : > { %1116 = vadd.xlane.f32.xlu1 %v1115_v47 }
 0x87b   : > { %v1342_v11 = vpop.xlane.xlu0 %1341 }
 0x87c   : > { %3475 = vrcp.f32 %v1342_v11 }
 0x87f   : > { %v1577_v15 = vpop.xlane.xlu0 %1576 }
 0x880   : > { %3477 = vrcp.f32 %v1577_v15  ;;  %v3424_v15 = vld [vmem:[#allocation14 + $0x74] ss:$8 sps:$4 sm:$0xff]  }
 0x883   : > { %v1580_v20 = vpop.xlane.xlu0 %1579 }
 0x889   : > { %v3476_v7 = vpop.eup %3475 }
 0x88a   : > { %v1446_v12 = vmul.f32 %v3476_v7, %v4334_v43 }
 0x88c   : > { %v2937_v13 = vpack.c.bf16 %v1446_v12, %v1446_v12 }
 0x88d   : > { %v3478_v16 = vpop.eup %3477 }
 0x88e   : > { %1454 = vrot.lane.b32.xlu0 %v2937_v13, %s3826_s16  ;;  %v1681_v21 = vmul.f32 %v3478_v16, %v4370_v27  ;;  %v3423_v13 = vld [vmem:[#allocation14 + $0x70] ss:$8 sps:$4 sm:$0xff]  }
 0x88f   : > { %3176 = vmatpush3.bf16.msra.mxu1 %v3423_v13 }
 0x890   : > { %v2939_v43 = vpack.c.bf16 %v1681_v21, %v1681_v21  ;;  %3177 = vmatprep.subr.bf16.mxu1 %v3821_v5 }
 0x893   : > { %v1345_v14 = vpop.xlane.xlu1 %1344 }
 0x894   : > { %3479 = vrcp.f32 %v1345_v14 }
 0x895   : > { %3481 = vrcp.f32 %v1580_v20 }
 0x8a1   : > { %v3480_v17 = vpop.eup %3479 }
 0x8a2   : > { %v1447_v18 = vmul.f32 %v3480_v17, %v4338_v57  ;;  %v3482_v23 = vpop.eup %3481 }
 0x8a3   : > { %v1682_v24 = vmul.f32 %v3482_v23, %v4374_v40  ;;  %v3414_v40 = vld [vmem:[#allocation12 + $0x38] sm:$0xff]   ;;  %v3426_v23 = vld [vmem:[#allocation14 + $0x64] ss:$8 sps:$4 sm:$0xff]  }
 0x8a4   : > { %v2938_v50 = vpack.c.bf16 %v1447_v18, %v1447_v18  ;;  %3156 = vmatpush3.bf16.msra.mxu0 %v3414_v40 }
 0x8a5   : > { %v2940_v25 = vpack.c.bf16 %v1682_v24, %v1682_v24  ;;  %3157 = vmatprep.subr.bf16.mxu0 %v3821_v5  ;;  %v3428_v24 = vld [vmem:[#allocation14 + $0x54] ss:$8 sps:$4 sm:$0xff]  }
 0x8a6   : > { %1456 = vrot.lane.b32.xlu1 %v2938_v50, %s3826_s16 }
 0x8a8   : > { %3158 = vmatpush3.bf16.msra.mxu0 %v3415_v41 }
 0x8a9   : > { %3159 = vmatprep.subr.bf16.mxu0 %v3821_v5 }
 0x8aa   : > { %1689 = vrot.lane.b32.xlu1 %v2939_v43, %s3825_s17  ;;  %v3427_v43 = vld [vmem:[#allocation14 + $0x50] ss:$8 sps:$4 sm:$0xff]  }
 0x8ac   : > { %3160 = vmatpush3.bf16.msra.mxu0 %v3416_v42 }
 0x8ad   : > { %3161 = vmatprep.subr.bf16.mxu0 %v3821_v5 }
 0x8ae   : > { %1691 = vrot.lane.b32.xlu1 %v2940_v25, %s3825_s17  ;;  %v3429_v25 = vld [vmem:[#allocation14 + $0x40] ss:$8 sps:$4 sm:$0xff]  }
 0x8b0   : > { %3162 = vmatpush3.bf16.msra.mxu0 %v3417_v22 }
 0x8b1   : > { %3163 = vmatprep.subr.bf16.mxu0 %v3821_v5 }
 0x8b4   : > { %3164 = vmatpush3.bf16.msra.mxu0 %v3418_v29 }
 0x8b5   : > { %3165 = vmatprep.subr.bf16.mxu0 %v3821_v5 }
 0x8b8   : > { %3166 = vmatpush3.bf16.msra.mxu0 %v3419_v19  ;;  %v3439_v19 = vld [vmem:[#allocation15 + $0x78] sm:$0xff]  }
 0x8b9   : > { %3167 = vmatprep.subr.bf16.mxu0 %v3821_v5 }
 0x8bc   : > { %3168 = vmatpush3.bf16.msra.mxu0 %v3420_v56  ;;  %v3440_v56 = vld [vmem:[#allocation15 + $0x38] sm:$0xff]  }
 0x8bd   : > { %3169 = vmatprep.subr.bf16.mxu0 %v3821_v5 }
 0x8c0   : > { %3170 = vmatpush3.bf16.msra.mxu0 %v3421_v58  ;;  %v3441_v58 = vld [vmem:[#allocation15 + $0x70] sm:$0xff]  }
 0x8c1   : > { %3195 = vmatprep.subr.bf16.mxu0 %v3821_v5 }
 0x8e3   : > { %v1812_v28 = vpop.xlane.xlu0 %1811 }
 0x8e7   : > { %v1114_v30 = vpop.xlane.xlu0 %1113 }
 0x8e8   : > { %3483 = vrcp.f32 %v1114_v30  ;;  %v3431_v30 = vld [vmem:[#allocation14 + $0x30] ss:$8 sps:$4 sm:$0xff]  }
 0x8f5   : > { %v3484_v31 = vpop.eup %3483 }
 0x8f6   : > { %v1215_v57 = vmul.f32 %v3484_v31, %v4288_v0  ;;  %v3432_v31 = vld [vmem:[#allocation14 + $0x34] ss:$8 sps:$4 sm:$0xff]  }
 0x8f8   : > { %v2935_v32 = vpack.c.bf16 %v1215_v57, %v1215_v57  ;;  %v3433_v57 = vld [vmem:[#allocation14 + $0x20] ss:$8 sps:$4 sm:$0xff]  }
 0x8fa   : > { %1226 = vst.msk [vmem:[#allocation2] sm:$0xf] %vm1225_vm4, %v2935_v32  ;;  %v3434_v32 = vld [vmem:[#allocation14 + $0x24] ss:$8 sps:$4 sm:$0xff]  }
 0x8fb   : > { %v1815_v27 = vpop.xlane.xlu1 %1814 }
 0x8ff   : > { %v1117_v33 = vpop.xlane.xlu1 %1116 }
 0x900   : > { %3485 = vrcp.f32 %v1117_v33  ;;  %v1455_v34 = vpop.permute.xlu0 %1454  ;;  %v3436_v33 = vld [vmem:[#allocation14 + $0x14] ss:$8 sps:$4 sm:$0xff]  }
 0x901   : > { %1461 = vst.msk [vmem:[#allocation2] sm:$0xf] %vm1460_vm5, %v1455_v34  ;;  %3487 = vrcp.f32 %v1812_v28  ;;  %v3430_v28 = vld [vmem:[#allocation14 + $0x44] ss:$8 sps:$4 sm:$0xff]   ;;  %v3437_v34 = vld [vmem:[#allocation14] ss:$8 sps:$4 sm:$0xff]  }
 0x902   : > { %3489 = vrcp.f32 %v1815_v27  ;;  %v3435_v27 = vld [vmem:[#allocation14 + $0x10] ss:$8 sps:$4 sm:$0xff]  }
 0x90d   : > { %v3486_v35 = vpop.eup %3485 }
 0x90e   : > { %v1216_v38 = vmul.f32 %v3486_v35, %v4290_v4  ;;  %v3488_v44 = vpop.eup %3487  ;;  %v3438_v35 = vld [vmem:[#allocation14 + $0x4] ss:$8 sps:$4 sm:$0xff]  }
 0x90f   : > { %v3490_v59 = vpop.eup %3489 }
 0x910   : > { %v2936_v39 = vpack.c.bf16 %v1216_v38, %v1216_v38 }
 0x912   : > { %1227 = vst.msk [vmem:[#allocation2 + $0x4] sm:$0xf] %vm1225_vm4, %v2936_v39 }
 0x918   : > { %v1457_v0 = vpop.permute.xlu1 %1456 }
 0x919   : > { %1462 = vst.msk [vmem:[#allocation2 + $0x4] sm:$0xf] %vm1460_vm5, %v1457_v0 }
 0x91b   : > { %v1862_v45 = vpop.f32.mrf.mxu0 }
 0x91c   : > { %v1916_v46 = vmul.f32 %v3488_v44, %v1862_v45  ;;  %v1690_v48 = vpop.permute.xlu1 %1689 }
 0x91d   : > { %1696 = vst.msk [vmem:[#allocation2] sm:$0xf] %vm1695_vm6, %v1690_v48  ;;  %v3147_v4 = vpop.f32.mrf.mxu0 }
 0x91e   : > { %v2941_v49 = vpack.c.bf16 %v1916_v46, %v1916_v46  ;;  %v2883_v46 = vld [vmem:[%s4555_s8] ss:$0 sm:$0xff] }
 0x91f   : > { %v1865_v53 = vpop.f32.mrf.mxu0 }
 0x920   : > { %1924 = vrot.lane.b32.xlu0 %v2941_v49, %s3824_s29  ;;  %v1692_v54 = vpop.permute.xlu1 %1691  ;;  %v2884_v49 = vld [vmem:[%s4556_s9] ss:$0 sm:$0xff] }
 0x921   : > { %1697 = vst.msk [vmem:[#allocation2 + $0x4] sm:$0xf] %vm1695_vm6, %v1692_v54  ;;  %v3148_v55 = vpop.f32.mrf.mxu0 }
 0x933   : > { %v1910_v60 = vpop.f32.mrf.mxu1 }
 0x934   : > { %v1917_v36 = vmul.f32 %v3490_v59, %v1910_v60  ;;  %v3442_v59 = vld [vmem:[#allocation15 + $0x30] sm:$0xff]   ;;  %v3443_v60 = vld [vmem:[#allocation15 + $0x68] sm:$0xff]  }
 0x935   : > { %v3153_v26 = vpop.f32.mrf.mxu1 }
 0x936   : > { %v2942_v61 = vpack.c.bf16 %v1917_v36, %v1917_v36  ;;  %v3444_v36 = vld [vmem:[#allocation15 + $0x28] sm:$0xff]   ;;  %v3445_v26 = vld [vmem:[#allocation15 + $0x60] sm:$0xff]  }
 0x937   : > { %v1913_v62 = vpop.f32.mrf.mxu1 }
 0x938   : > { %1926 = vrot.lane.b32.xlu1 %v2942_v61, %s3824_s29  ;;  %v3446_v61 = vld [vmem:[#allocation15 + $0x20] sm:$0xff]   ;;  %v3447_v62 = vld [vmem:[#allocation15 + $0x58] sm:$0xff]  }
 0x939   : > { %v3154_v37 = vpop.f32.mrf.mxu1 }
 0x93a   : > { %v3448_v37 = vld [vmem:[#allocation15 + $0x18] sm:$0xff]  }
 0x992   : > { %v1925_v63 = vpop.permute.xlu0 %1924 }
 0x993   : > { %1931 = vst.msk [vmem:[#allocation2] sm:$0xf] %vm1930_vm7, %v1925_v63  ;;  %v3449_v63 = vld [vmem:[#allocation15 + $0x50] sm:$0xff]  }
 0x9aa   : > { %v1927_v1 = vpop.permute.xlu1 %1926 }
 0x9ab   : > { %1932 = vst.msk [vmem:[#allocation2 + $0x4] sm:$0xf] %vm1930_vm7, %v1927_v1  ;;  %v3450_v1 = vld [vmem:[#allocation15 + $0x10] sm:$0xff]  }
 0x9b2   : > { %v3422_v2 = vld [vmem:[#allocation2] sm:$0xff]  }
 0x9b3   : > { %3172 = vmatmul.mubr.bf16.vlgmr.msra.gmra.mxu0 %v3422_v2  ;;  %v3451_v2 = vld [vmem:[#allocation15 + $0x48] sm:$0xff]  }
 0x9b4   : > { %3211 = vmatprep.mubr.msk.bf16.mxu0 %vm3823_vm0, %v3821_v5  ;;  %3196 = vmatpush3.bf16.msra.mxu0 %v3424_v15 }
 0x9b5   : > { %3197 = vmatprep.subr.bf16.mxu0 %v3821_v5 }
 0x9b8   : > { %3198 = vmatpush3.bf16.msra.mxu0 %v3426_v23 }
 0x9b9   : > { %3199 = vmatprep.subr.bf16.mxu0 %v3821_v5 }
 0x9bc   : > { %3200 = vmatpush3.bf16.msra.mxu0 %v3428_v24 }
 0x9bd   : > { %3201 = vmatprep.subr.bf16.mxu0 %v3821_v5 }
 0x9c0   : > { %3202 = vmatpush3.bf16.msra.mxu0 %v3430_v28 }
 0x9c1   : > { %3203 = vmatprep.subr.bf16.mxu0 %v3821_v5 }
 0x9c4   : > { %3204 = vmatpush3.bf16.msra.mxu0 %v3432_v31 }
 0x9c5   : > { %3205 = vmatprep.subr.bf16.mxu0 %v3821_v5 }
 0x9c8   : > { %3206 = vmatpush3.bf16.msra.mxu0 %v3434_v32 }
 0x9c9   : > { %3207 = vmatprep.subr.bf16.mxu0 %v3821_v5 }
 0x9cc   : > { %3208 = vmatpush3.bf16.msra.mxu0 %v3436_v33 }
 0x9cd   : > { %3209 = vmatprep.subr.bf16.mxu0 %v3821_v5 }
 0x9d0   : > { %3210 = vmatpush3.bf16.msra.mxu0 %v3438_v35 }
 0x9d1   : > { %3235 = vmatprep.subr.bf16.mxu0 %v3821_v5 }
 0xa73   : > { %v2046_v6 = vpop.f32.mrf.mxu0 }
 0xa74   : > { %v2047_v8 = vadd.f32 %v2873_v3, %v2046_v6  ;;  %v3453_v6 = vld [vmem:[#allocation15 + $0x40] sm:$0xff]  }
 0xa75   : > { %v3173_v9 = vpop.f32.mrf.mxu0 }
 0xa76   : > { %v2053_v10 = vadd.f32 %v2047_v8, %v4195_v51  ;;  %v3454_v8 = vld [vmem:[#allocation15] sm:$0xff]  }
 0xa77   : > { %v2049_v47 = vpop.f32.mrf.mxu0  ;;  %v2885_v9 = vld [vmem:[%s4558_s11] ss:$0 sm:$0xff] }
 0xa78   : > { %v2050_v11 = vadd.f32 %v2873_v3, %v2049_v47  ;;  %2057 = vadd.xlane.f32.xlu0 %v2053_v10  ;;  %v3452_v3 = vld [vmem:[#allocation15 + $0x8] sm:$0xff]  }
 0xa79   : > { %v3174_v7 = vpop.f32.mrf.mxu0 }
 0xa7a   : > { %v2054_v12 = vadd.f32 %v2050_v11, %v4197_v52  ;;  %v3425_v52 = vld [vmem:[#allocation14 + $0x60] ss:$8 sps:$4 sm:$0xff]  }
 0xa7b   : > { %3178 = vmatpush3.bf16.msra.mxu1 %v3425_v52 }
 0xa7c   : > { %2059 = vadd.xlane.f32.xlu1 %v2054_v12  ;;  %3179 = vmatprep.subr.bf16.mxu1 %v3821_v5 }
 0xa7f   : > { %3180 = vmatpush3.bf16.msra.mxu1 %v3427_v43 }
 0xa80   : > { %3181 = vmatprep.subr.bf16.mxu1 %v3821_v5 }
 0xa83   : > { %3182 = vmatpush3.bf16.msra.mxu1 %v3429_v25 }
 0xa84   : > { %3183 = vmatprep.subr.bf16.mxu1 %v3821_v5 }
 0xa87   : > { %3184 = vmatpush3.bf16.msra.mxu1 %v3431_v30 }
 0xa88   : > { %3185 = vmatprep.subr.bf16.mxu1 %v3821_v5 }
 0xa8b   : > { %3186 = vmatpush3.bf16.msra.mxu1 %v3433_v57 }
 0xa8c   : > { %3187 = vmatprep.subr.bf16.mxu1 %v3821_v5 }
 0xa8f   : > { %3188 = vmatpush3.bf16.msra.mxu1 %v3435_v27 }
 0xa90   : > { %3189 = vmatprep.subr.bf16.mxu1 %v3821_v5 }
 0xa93   : > { %3190 = vmatpush3.bf16.msra.mxu1 %v3437_v34 }
 0xa94   : > { %3215 = vmatprep.subr.bf16.mxu1 %v3821_v5 }
 0xb01   : > { %v2058_v14 = vpop.xlane.xlu0 %2057 }
 0xb02   : > { %v2061_v20 = vmul.f32 0.0078125, %v2058_v14 }
 0xb04   : > { %v2063_v16 = vsub.f32 %v2053_v10, %v2061_v20  ;;  %v2894_v10 = vld [vmem:[%s4558_s11 + $0x1] ss:$0 sm:$0xff] }
 0xb05   : > { %v2060_v17 = vpop.xlane.xlu1 %2059 }
 0xb06   : > { %v2062_v51 = vmul.f32 0.0078125, %v2060_v17  ;;  %v2065_v18 = vmul.f32 %v2063_v16, %v2063_v16 }
 0xb08   : > { %v2064_v50 = vsub.f32 %v2054_v12, %v2062_v51  ;;  %2067 = vadd.xlane.f32.xlu0 %v2065_v18 }
 0xb0a   : > { %v2066_v21 = vmul.f32 %v2064_v50, %v2064_v50 }
 0xb0c   : > { %2069 = vadd.xlane.f32.xlu0 %v2066_v21 }
 0xb91   : > { %v2068_v38 = vpop.xlane.xlu0 %2067 }
 0xb92   : > { %v2071_v39 = vmul.f32 0.0078125, %v2068_v38 }
 0xb94   : > { %v2073_v40 = vadd.f32 1e-12, %v2071_v39 }
 0xb95   : > { %v2070_v41 = vpop.xlane.xlu0 %2069 }
 0xb96   : > { %3491 = vrsqrt.f32 %v2073_v40  ;;  %v2072_v0 = vmul.f32 0.0078125, %v2070_v41 }
 0xb98   : > { %v2074_v42 = vadd.f32 1e-12, %v2072_v0 }
 0xb9a   : > { %3493 = vrsqrt.f32 %v2074_v42 }
 0xba3   : > { %v3492_v44 = vpop.eup %3491 }
 0xba4   : > { %v2077_v45 = vmul.f32 %v3492_v44, %v2063_v16 }
 0xba6   : > { %v2085_v22 = vmul.f32 %v2883_v46, %v2077_v45 }
 0xba7   : > { %v3494_v48 = vpop.eup %3493 }
 0xba8   : > { %v2078_v4 = vmul.f32 %v3494_v48, %v2064_v50  ;;  %v4453_v54 = vadd.f32 %v2884_v49, %v2085_v22 }
 0xbaa   : > { %v2086_v53 = vmul.f32 %v2883_v46, %v2078_v4 }
 0xbac   : > { %v4455_v55 = vadd.f32 %v2884_v49, %v2086_v53 }
 0xbae   : > { %v2095_v29 = vpack.c.bf16 %v4455_v55, %v4453_v54 }
 0xbb0   : > { %3192 = vmatmul.mubr.bf16.vlgmr.msra.gmra.mxu1 %v2095_v29  ;;  %3212 = vmatmul.mubr.bf16.vlgmr.msra.gmra.mxu0 %v2095_v29 }
 0xbb1   : > { %3231 = vmatprep.mubr.msk.bf16.mxu1 %vm3823_vm0, %v3821_v5  ;;  %3251 = vmatprep.mubr.msk.bf16.mxu0 %vm3823_vm0, %v3821_v5 }
 0xbb2   : > { %3216 = vmatpush3.bf16.msra.mxu1 %v3439_v19  ;;  %3236 = vmatpush3.bf16.msra.mxu0 %v3440_v56 }
 0xbb3   : > { %3217 = vmatprep.subr.bf16.mxu1 %v3821_v5  ;;  %3237 = vmatprep.subr.bf16.mxu0 %v3821_v5 }
 0xbb6   : > { %3218 = vmatpush3.bf16.msra.mxu1 %v3441_v58  ;;  %3238 = vmatpush3.bf16.msra.mxu0 %v3442_v59 }
 0xbb7   : > { %3219 = vmatprep.subr.bf16.mxu1 %v3821_v5  ;;  %3239 = vmatprep.subr.bf16.mxu0 %v3821_v5 }
 0xbba   : > { %3220 = vmatpush3.bf16.msra.mxu1 %v3443_v60  ;;  %3240 = vmatpush3.bf16.msra.mxu0 %v3444_v36 }
 0xbbb   : > { %3221 = vmatprep.subr.bf16.mxu1 %v3821_v5  ;;  %3241 = vmatprep.subr.bf16.mxu0 %v3821_v5 }
 0xbbe   : > { %3222 = vmatpush3.bf16.msra.mxu1 %v3445_v26  ;;  %3242 = vmatpush3.bf16.msra.mxu0 %v3446_v61 }
 0xbbf   : > { %3223 = vmatprep.subr.bf16.mxu1 %v3821_v5  ;;  %3243 = vmatprep.subr.bf16.mxu0 %v3821_v5 }
 0xbc2   : > { %3224 = vmatpush3.bf16.msra.mxu1 %v3447_v62  ;;  %3244 = vmatpush3.bf16.msra.mxu0 %v3448_v37  ;;  %v2919_v62 = vld [vmem:[%s4560_s13] ss:$0 sm:$0xff] }
 0xbc3   : > { %3225 = vmatprep.subr.bf16.mxu1 %v3821_v5  ;;  %3245 = vmatprep.subr.bf16.mxu0 %v3821_v5 }
 0xbc6   : > { %3226 = vmatpush3.bf16.msra.mxu1 %v3449_v63  ;;  %3246 = vmatpush3.bf16.msra.mxu0 %v3450_v1 }
 0xbc7   : > { %3227 = vmatprep.subr.bf16.mxu1 %v3821_v5  ;;  %3247 = vmatprep.subr.bf16.mxu0 %v3821_v5 }
 0xbca   : > { %3228 = vmatpush3.bf16.msra.mxu1 %v3451_v2  ;;  %3248 = vmatpush3.bf16.msra.mxu0 %v3452_v3 }
 0xbcb   : > { %3229 = vmatprep.subr.bf16.mxu1 %v3821_v5  ;;  %3249 = vmatprep.subr.bf16.mxu0 %v3821_v5 }
 0xbce   : > { %3230 = vmatpush3.bf16.msra.mxu1 %v3453_v6  ;;  %3250 = vmatpush3.bf16.msra.mxu0 %v3454_v8 }
 0xc70   : > { %v2201_v47 = vpop.f32.mrf.mxu1  ;;  %v2348_v11 = vpop.f32.mrf.mxu0 }
 0xc71   : > { %v2202_v7 = vadd.f32 %v2885_v9, %v2201_v47  ;;  %v2349_v12 = vadd.f32 %v2894_v10, %v2348_v11 }
 0xc72   : > { %v3193_v13 = vpop.f32.mrf.mxu1  ;;  %v3213_v15 = vpop.f32.mrf.mxu0 }
 0xc73   : > { %v2208_v14 = vmul.f32 %v2202_v7, %v2202_v7  ;;  %v2355_v5 = vmul.f32 %v2349_v12, %v2349_v12 }
 0xc74   : > { %v2204_v20 = vpop.f32.mrf.mxu1  ;;  %v2351_v16 = vpop.f32.mrf.mxu0 }
 0xc75   : > { %v2210_v17 = vmul.f32 %v2208_v14, %v2202_v7  ;;  %v2357_v51 = vmul.f32 %v2355_v5, %v2349_v12  ;;  %v2205_v18 = vadd.f32 %v2885_v9, %v2204_v20  ;;  %v2352_v50 = vadd.f32 %v2894_v10, %v2351_v16 }
 0xc76   : > { %v3194_v21 = vpop.f32.mrf.mxu1  ;;  %v3214_v52 = vpop.f32.mrf.mxu0 }
 0xc77   : > { %v2212_v23 = vmul.f32 0.044715, %v2210_v17  ;;  %v2359_v43 = vmul.f32 0.044715, %v2357_v51  ;;  %v2209_v24 = vmul.f32 %v2205_v18, %v2205_v18  ;;  %v2356_v25 = vmul.f32 %v2352_v50, %v2352_v50 }
 0xc79   : > { %v2214_v28 = vadd.f32 %v2212_v23, %v2202_v7  ;;  %v2361_v30 = vadd.f32 %v2359_v43, %v2349_v12  ;;  %v2211_v31 = vmul.f32 %v2209_v24, %v2205_v18  ;;  %v2358_v57 = vmul.f32 %v2356_v25, %v2352_v50  ;;  %v2920_v43 = vld [vmem:[%s4561_s14] ss:$0 sm:$0xff] }
 0xc7b   : > { %v2216_v32 = vmul.f32 0.7978846, %v2214_v28  ;;  %v2363_v27 = vmul.f32 0.7978846, %v2361_v30  ;;  %v2213_v33 = vmul.f32 0.044715, %v2211_v31 }
 0xc7c   : > { %v2360_v34 = vmul.f32 0.044715, %v2358_v57  ;;  %v2921_v30 = vld [vmem:[%s4622_s18] ss:$0 sm:$0xff] }
 0xc7d   : > { %3495 = vtanh.f32 %v2216_v32  ;;  %v2215_v35 = vadd.f32 %v2213_v33, %v2205_v18 }
 0xc7e   : > { %3497 = vtanh.f32 %v2363_v27  ;;  %v2362_v38 = vadd.f32 %v2360_v34, %v2352_v50 }
 0xc7f   : > { %v2217_v39 = vmul.f32 0.7978846, %v2215_v35 }
 0xc80   : > { %v2364_v40 = vmul.f32 0.7978846, %v2362_v38 }
 0xc81   : > { %3499 = vtanh.f32 %v2217_v39 }
 0xc82   : > { %3501 = vtanh.f32 %v2364_v40 }
 0xc8a   : > { %v3496_v41 = vpop.eup %3495 }
 0xc8b   : > { %v3498_v0 = vpop.eup %3497  ;;  %v2220_v42 = vadd.f32 1.0, %v3496_v41 }
 0xc8c   : > { %v2367_v44 = vadd.f32 1.0, %v3498_v0 }
 0xc8d   : > { %v2222_v48 = vmul.f32 0.5, %v2220_v42 }
 0xc8e   : > { %v3500_v45 = vpop.eup %3499  ;;  %v2369_v22 = vmul.f32 0.5, %v2367_v44 }
 0xc8f   : > { %v3502_v46 = vpop.eup %3501  ;;  %v2221_v4 = vadd.f32 1.0, %v3500_v45  ;;  %v2224_v19 = vmul.f32 %v2222_v48, %v2202_v7 }
 0xc90   : > { %v2368_v49 = vadd.f32 1.0, %v3502_v46  ;;  %v2371_v58 = vmul.f32 %v2369_v22, %v2349_v12 }
 0xc91   : > { %v2223_v53 = vmul.f32 0.5, %v2221_v4 }
 0xc92   : > { %v2370_v29 = vmul.f32 0.5, %v2368_v49 }
 0xc93   : > { %v2225_v56 = vmul.f32 %v2223_v53, %v2205_v18 }
 0xc94   : > { %v2372_v59 = vmul.f32 %v2370_v29, %v2352_v50 }
 0xc95   : > { %v2226_v60 = vpack.c.bf16 %v2225_v56, %v2224_v19 }
 0xc96   : > { %v2373_v36 = vpack.c.bf16 %v2372_v59, %v2371_v58 }
 0xc97   : > { %3252 = vmatmul.mubr.bf16.vlgmr.msra.gmra.mxu0 %v2226_v60 }
 0xc98   : > { %3232 = vmatmul.mubr.bf16.vlgmr.msra.gmra.mxu1 %v2373_v36 }
 0xd57   : > { %v2561_v26 = vpop.f32.mrf.mxu0 }
 0xd58   : > { %v2472_v61 = vpop.f32.mrf.mxu1 }
 0xd59   : > { %v2562_v37 = vadd.f32 %v2561_v26, %v2472_v61  ;;  %v3253_v63 = vpop.f32.mrf.mxu0 }
 0xd5a   : > { %v3233_v1 = vpop.f32.mrf.mxu1 }
 0xd5b   : > { %v2575_v2 = vadd.f32 %v2919_v62, %v2562_v37  ;;  %v2564_v3 = vpop.f32.mrf.mxu0 }
 0xd5c   : > { %v2475_v6 = vpop.f32.mrf.mxu1 }
 0xd5d   : > { %v2565_v8 = vadd.f32 %v2564_v3, %v2475_v6  ;;  %v3254_v9 = vpop.f32.mrf.mxu0  ;;  %v2577_v10 = vadd.f32 %v2575_v2, %v4453_v54 }
 0xd5e   : > { %v3234_v47 = vpop.f32.mrf.mxu1 }
 0xd5f   : > { %v2576_v11 = vadd.f32 %v2919_v62, %v2565_v8  ;;  %2581 = vadd.xlane.f32.xlu0 %v2577_v10 }
 0xd61   : > { %v2578_v7 = vadd.f32 %v2576_v11, %v4455_v55 }
 0xd63   : > { %2583 = vadd.xlane.f32.xlu1 %v2578_v7 }
 0xde8   : > { %v2582_v12 = vpop.xlane.xlu0 %2581 }
 0xde9   : > { %v2585_v13 = vmul.f32 0.0078125, %v2582_v12 }
 0xdeb   : > { %v2587_v15 = vsub.f32 %v2577_v10, %v2585_v13 }
 0xdec   : > { %v2584_v14 = vpop.xlane.xlu1 %2583 }
 0xded   : > { %v2586_v5 = vmul.f32 0.0078125, %v2584_v14  ;;  %v2589_v20 = vmul.f32 %v2587_v15, %v2587_v15 }
 0xdef   : > { %v2588_v16 = vsub.f32 %v2578_v7, %v2586_v5  ;;  %2591 = vadd.xlane.f32.xlu0 %v2589_v20 }
 0xdf1   : > { %v2590_v17 = vmul.f32 %v2588_v16, %v2588_v16 }
 0xdf3   : > { %2593 = vadd.xlane.f32.xlu1 %v2590_v17 }
 0xe78   : > { %v2592_v51 = vpop.xlane.xlu0 %2591 }
 0xe79   : > { %v2595_v18 = vmul.f32 0.0078125, %v2592_v51 }
 0xe7b   : > { %v2597_v54 = vadd.f32 1e-12, %v2595_v18 }
 0xe7c   : > { %v2594_v50 = vpop.xlane.xlu1 %2593 }
 0xe7d   : > { %3503 = vrsqrt.f32 %v2597_v54  ;;  %v2596_v21 = vmul.f32 0.0078125, %v2594_v50 }
 0xe7f   : > { %v2598_v55 = vadd.f32 1e-12, %v2596_v21 }
 0xe81   : > { %3505 = vrsqrt.f32 %v2598_v55 }
 0xe8a   : > { %v3504_v52 = vpop.eup %3503 }
 0xe8b   : > { %v2601_v23 = vmul.f32 %v3504_v52, %v2587_v15 }
 0xe8d   : > { %v2609_v25 = vmul.f32 %v2920_v43, %v2601_v23 }
 0xe8e   : > { %v3506_v24 = vpop.eup %3505 }
 0xe8f   : > { %v2602_v28 = vmul.f32 %v3506_v24, %v2588_v16  ;;  %v2617_v57 = vadd.f32 %v2921_v30, %v2609_v25 }
 0xe91   : > { %v2610_v31 = vmul.f32 %v2920_v43, %v2602_v28 }
 0xe93   : > { %v2618_v32 = vadd.f32 %v2921_v30, %v2610_v31 }
 0xe95   : > { %v2951_v27 = vpack.c.bf16 %v2618_v32, %v2617_v57 }
 0xe97   : > { %2952 = vst [vmem:[%s662_s20] sm:$0xff] %v2951_v27  }
 0xe98   : > { %3732 = shalt.err (!%p3729_p1)
}
 0xe99   : > { %s3733_s19 = scalar_lea.hbm %s4500_s15, 128  ;;  %s3737_s29 = scalar_lea.hbm %s4623_s12, 256 }
 0xe9a   : > { %p3734_p2 = scmp.ne.s32.totalorder %s4500_s15, %s3733_s19  ;;  %p3738_p9 = scmp.lt.s32.totalorder %s4500_s15, %s4623_s12 }
 0xe9b   : > { %p3739_p6 = scmp.lt.s32.totalorder %s3737_s29, %s3733_s19 }
 0xe9c   : > { %p3735_p5 = pnand %p3734_p2, %p4624_p3 }
 0xe9d   : > { %p3740_p13 = por %p3739_p6, %p3738_p9 }
 0xe9e   : > { %p3736_p8 = pneg %p3735_p5 }
 0xea0   : > { %p3741_p0 = pnand %p3740_p13, %p3736_p8 }
 0xea2   : > { %3744 = shalt.err (!%p3741_p0)
}
 0xea3   : > { %s3828_s3 = smov 4  }
 0xea4   : > { %3283 = dma.vmem_to_hbm [thread:$0]  (%p4624_p3), %s4502_s23, 128, %s4500_s15, %s2624_s6, %s3825_s17, %s3825_s17, %s3828_s3  }
 0xea5 PF: > { %s4625_s20 = sld [smem:[#allocation25_spill]]  ;;  %p4628_p11 = scmp.ge.s32.totalorder %s3803_s24, 2 }
 0xea6   : > { %s4626_s21 = sld [smem:[#allocation29_spill]] }
 0xeab   : > { %s2652_s0 = sand.u32 1, %s4625_s20  }
 0xeac   : > { %p4627_p10 = scmp.ne.s32.totalorder %s4626_s21, 0  ;;  %s2653_s28 = scalar_lea.sflag [#allocation5], %s2652_s0 }
 0xeae   : > { %p3312_p4 = pnand %p4628_p11, %p4627_p10 }
 0xeb0   : > { %p3313_p7 = pneg %p3312_p4 }
 0xeb2   : > { %3786 = dma.done.wait (%p3313_p7), %s2653_s28, 128  }
 0xeb3   : > { %3788 = vsyncadd (%p3313_p7), %s2653_s28, 4294967168  ;;  %s4629_s24 = sld [smem:[#allocation27_spill]]  ;;  %s4632_s21 = smov %s3795_s22 }
 0xeb4   : > { %s4630_s30 = sld [smem:[#allocation26_spill]] }
 0xeb5   : > { %s4631_s23 = sld [smem:[#allocation28_spill]] }
 0xeb9   : > { %p35_p12 = scmp.ge.s32.totalorder %s4629_s24, 4  }
 0xeba   : > { %s4633_s22 = smov %s4630_s30 }
 0xebb   :  { %37 = sbr.rel (!%p35_p12) target bundleno = 20 (0x14), region = 166 }
 0xec0   :  { %2658 = vsyncpa [#allocation4], 1 }
 0xec1   :  { %2660 = vsyncpa [#allocation4 + $0x1], 1 }
 0xec2   :  { %2661 = vsyncpa [#allocation7], 1 }
 0xec3   :  { %2663 = vsyncpa [#allocation7 + $0x1], 1 }
 0xec4   :  { %2664 = vsyncpa [#allocation10], 1 }
 0xec5   :  { %2665 = vsyncpa [#allocation13], 1 }
 0xec6   :  { %2666 = vsyncpa [#allocation16], 1 }
 0xec7   :  { %2667 = vsyncpa [#allocation5], 1 }
 0xec8   :  { %2669 = vsyncpa [#allocation5 + $0x1], 1 }

// kernel: tpu_custom_call.1
= control target key start
LH: loop header
LB: loop body
LE: loop exit
PB: predicated region body
PF: predicated region fallthrough
CT: control target
= control target key end

     0   :  { %s4547_s0 = inlined_call_operand.hbm [shape: bf16[4,8,128], index: 0, kind: input, shape index: {}]   ;;  %s4548_s1 = inlined_call_operand.hbm [shape: f32[4,1,8], index: 1, kind: input, shape index: {}]   ;;  %s4549_s2 = inlined_call_operand.hbm [shape: f32[1,128], index: 2, kind: input, shape index: {}]   ;;  %s4550_s3 = inlined_call_operand.hbm [shape: f32[1,128], index: 3, kind: input, shape index: {}]   ;;  %s4551_s4 = inlined_call_operand.hbm [shape: bf16[128,384], index: 4, kind: input, shape index: {}]   ;;  %s4552_s5 = inlined_call_operand.vmem [shape: f32[1,384], index: 5, kind: input, shape index: {}]   ;;  %s4553_s6 = inlined_call_operand.hbm [shape: bf16[128,128], index: 6, kind: input, shape index: {}]   ;;  %s4554_s7 = inlined_call_operand.vmem [shape: f32[1,128], index: 7, kind: input, shape index: {}]   ;;  %s4555_s8 = inlined_call_operand.vmem [shape: f32[1,128], index: 8, kind: input, shape index: {}]   ;;  %s4556_s9 = inlined_call_operand.vmem [shape: f32[1,128], index: 9, kind: input, shape index: {}]   ;;  %s4557_s10 = inlined_call_operand.hbm [shape: bf16[128,256], index: 10, kind: input, shape index: {}]   ;;  %s4558_s11 = inlined_call_operand.vmem [shape: f32[1,256], index: 11, kind: input, shape index: {}]   ;;  %s4559_s12 = inlined_call_operand.hbm [shape: bf16[256,128], index: 12, kind: input, shape index: {}]   ;;  %s4560_s13 = inlined_call_operand.vmem [shape: f32[1,128], index: 13, kind: input, shape index: {}]   ;;  %s4561_s14 = inlined_call_operand.vmem [shape: f32[1,128], index: 14, kind: input, shape index: {}]   ;;  %s4562_s15 = inlined_call_operand.vmem [shape: f32[1,128], index: 15, kind: input, shape index: {}]   ;;  %s4563_s16 = inlined_call_operand.hbm [shape: bf16[4,8,128], index: 16, kind: output, shape index: {}]  }
   0x1   :  { %4579 = sst [smem:[#allocation30_spill]] %s4547_s0 }
   0x2   :  { %4580 = sst [smem:[#allocation31_spill]] %s4549_s2 }
   0x3   :  { %4581 = sst [smem:[#allocation32_spill]] %s4550_s3 }
   0x4   :  { %4582 = sst [smem:[#allocation33_spill]] %s4551_s4 }
   0x5   :  { %4583 = sst [smem:[#allocation34_spill]] %s4553_s6 }
   0x6   :  { %4584 = sst [smem:[#allocation35_spill]] %s4557_s10 }
   0x7   :  { %4585 = sst [smem:[#allocation36_spill]] %s4559_s12 }
   0x8   :  { %4586 = sst [smem:[#allocation37_spill]] %s4562_s15 }
   0x9   :  { %4587 = sst [smem:[#allocation38_spill]] %s4563_s16 }
   0xa   :  { %21 = vsyncpa [#allocation4], 0 }
   0xb   :  { %23 = vsyncpa [#allocation4 + $0x1], 0 }
   0xc   :  { %24 = vsyncpa [#allocation7], 0 }
   0xd   :  { %26 = vsyncpa [#allocation7 + $0x1], 0 }
   0xe   :  { %27 = vsyncpa [#allocation10], 0 }
   0xf   :  { %28 = vsyncpa [#allocation13], 0 }
  0x10   :  { %29 = vsyncpa [#allocation16], 0 }
  0x11   :  { %30 = vsyncpa [#allocation5], 0 }
  0x12   :  { %32 = vsyncpa [#allocation5 + $0x1], 0  ;;  %s3914_s21 = smov 0   ;;  %s3916_s22 = smov 0  }
  0x13   :  { %s3918_s23 = smov 0   ;;  %s3920_s24 = smov 0  }
  0x14 LB: > { %4588 = sst [smem:[#allocation25_spill]] %s3791_s21  ;;  %s3805_s25 = smov [#allocation8]   ;;  %s3803_s24 = sphi %s3920_s24, %s4629_s24   ;;  %s3799_s23 = sphi %s3918_s23, %s4631_s23   ;;  %s3795_s22 = sphi %s3916_s22, %s4633_s22   ;;  %s3791_s21 = sphi %s3914_s21, %s4632_s21  }
  0x15   : > { %4589 = sst [smem:[#allocation26_spill]] %s3799_s23  ;;  %s428_s26 = sshll.u32 %s3805_s25, 4  ;;  %s429_s26 = int_to_ptr.vmem [resolvable:$true] %s428_s26 }
  0x16   : > { %s3935_s27 = sadd.s32 4294967295, %s3803_s24   ;;  %p2791_p0 = scmp.ge.s32.totalorder %s3803_s24, 1 }
  0x17   : > { %p4566_p1 = scmp.eq.s32.totalorder %s3935_s27, 0  ;;  %p415_p2 = scmp.lt.s32.totalorder %s3803_s24, 3 }
  0x18   : > { %s3806_s29 = smov [#allocation9]   ;;  %s3807_s0 = smov [#allocation12]  }
  0x19   : > { %p3940_p3 = pnand %p2791_p0, %p415_p2  ;;  %s439_s30 = sshll.u32 %s3806_s29, 4  ;;  %s440_s30 = int_to_ptr.vmem [resolvable:$true] %s439_s30 }
  0x1a   : > { %s465_s17 = sshll.u32 %s3807_s0, 4  ;;  %s3518_s20 = scalar_lea.vmem %s429_s26, 16  ;;  %s3953_s17 = int_to_ptr.vmem [resolvable:$true] %s465_s17 }
  0x1b   : > { %s4590_s28 = scalar_select %p3940_p3, 1, 0 }
  0x1c   : > { %p3285_p5 = pneg %p3940_p3  ;;  %p3519_p8 = scmp.ne.s32.totalorder %s429_s26, %s3518_s20 }
  0x1d   : > { %s3525_s25 = scalar_lea.vmem %s429_s26, 32  ;;  %p3526_p11 = scmp.lt.s32.totalorder %s429_s26, %s429_s26 }
  0x1e   : > { %p3949_p6 = pnand %p3285_p5, %p4566_p1  ;;  %p3527_p12 = scmp.lt.s32.totalorder %s3525_s25, %s3518_s20 }
  0x20   : > { %p3957_p7 = pneg %p3949_p6  ;;  %p3528_p13 = por %p3527_p12, %p3526_p11 }
  0x22   : > { %p3521_p9 = pnand %p3519_p8, %p3957_p7 }
  0x24   : > { %p3522_p10 = pneg %p3521_p9 }
  0x26   : > { %p3529_p0 = pnand %p3528_p13, %p3522_p10 }
  0x28   : > { %3532 = shalt.err (!%p3529_p0)
}
  0x29   : > { %s4593_s2 = sld [smem:[#allocation31_spill]]  ;;  %s3544_s16 = scalar_lea.vmem %s440_s30, 16 }
  0x2a   : > { %p3545_p2 = scmp.ne.s32.totalorder %s440_s30, %s3544_s16  ;;  %s3551_s15 = scalar_lea.vmem %s440_s30, 32 }
  0x2b   : > { %p3552_p8 = scmp.lt.s32.totalorder %s440_s30, %s440_s30  ;;  %p3553_p9 = scmp.lt.s32.totalorder %s3551_s15, %s3544_s16 }
  0x2c   : > { %p3547_p5 = pnand %p3545_p2, %p3957_p7 }
  0x2d   : > { %p3554_p1 = por %p3553_p9, %p3552_p8 }
  0x2e   : > { %p3548_p4 = pneg %p3547_p5 }
  0x2f   : > { %3288 = dma.hbm_to_vmem [thread:$0]  (!%p3949_p6), %s4593_s2, 16, %s429_s26, [#allocation7]  }
  0x30   : > { %p3555_p3 = pnand %p3554_p1, %p3548_p4 }
  0x32   : > { %3558 = shalt.err (!%p3555_p3)
}
  0x33   : > { %s4594_s3 = sld [smem:[#allocation32_spill]]  ;;  %s3570_s26 = scalar_lea.vmem %s3953_s17, 1024 }
  0x34   : > { %p3571_p10 = scmp.ne.s32.totalorder %s3953_s17, %s3570_s26  ;;  %p3578_p13 = scmp.lt.s32.totalorder %s3953_s17, %s3953_s17 }
  0x35   : > { %p3579_p0 = scmp.lt.s32.totalorder %s3570_s26, %s3570_s26 }
  0x36   : > { %p3573_p11 = pnand %p3571_p10, %p3957_p7 }
  0x37   : > { %p3580_p1 = por %p3579_p0, %p3578_p13 }
  0x38   : > { %p3574_p12 = pneg %p3573_p11 }
  0x39   : > { %3291 = dma.hbm_to_vmem [thread:$0]  (!%p3949_p6), %s4594_s3, 16, %s440_s30, [#allocation10]  }
  0x3a   : > { %p3581_p3 = pnand %p3580_p1, %p3574_p12 }
  0x3c   : > { %3584 = shalt.err (!%p3581_p3)
}
  0x3d   : > { %s4568_s15 = smov 64   ;;  %s4570_s16 = smov 4  }
  0x3e   : > { %s4595_s6 = sld [smem:[#allocation34_spill]]  ;;  %s3810_s0 = smov [#allocation11]  }
  0x3f   : > { %s449_s20 = sshll.u32 %s3810_s0, 4  ;;  %s450_s20 = int_to_ptr.vmem [resolvable:$true] %s449_s20 }
  0x40   : > { %s3596_s25 = scalar_lea.vmem %s450_s20, 3072  ;;  %p3604_p8 = scmp.lt.s32.totalorder %s450_s20, %s450_s20 }
  0x41   : > { %p3597_p4 = scmp.ne.s32.totalorder %s450_s20, %s3596_s25  ;;  %p3605_p9 = scmp.lt.s32.totalorder %s3596_s25, %s3596_s25 }
  0x43   : > { %p3599_p2 = pnand %p3597_p4, %p3957_p7  ;;  %p3606_p10 = por %p3605_p9, %p3604_p8 }
  0x44   : > { %3297 = dma.hbm_to_vmem [thread:$0]  (!%p3949_p6), %s4595_s6, 1024, %s3953_s17, [#allocation13], %s4568_s15, %s4568_s15, %s4570_s16  }
  0x45   : > { %p3600_p5 = pneg %p3599_p2 }
  0x47   : > { %p3607_p11 = pnand %p3606_p10, %p3600_p5 }
  0x49   : > { %3610 = shalt.err (!%p3607_p11)
}
  0x4a   : > { %s3811_s26 = smov 192   ;;  %s3812_s2 = smov 12  }
  0x4b   : > { %s4596_s4 = sld [smem:[#allocation33_spill]]  ;;  %s3813_s29 = smov [#allocation14]  }
  0x4c   : > { %s487_s0 = sshll.u32 %s3813_s29, 4  ;;  %s488_s0 = int_to_ptr.vmem [resolvable:$true] %s487_s0 }
  0x4d   : > { %s3622_s15 = scalar_lea.vmem %s488_s0, 2048  ;;  %p3630_p1 = scmp.lt.s32.totalorder %s488_s0, %s488_s0 }
  0x4e   : > { %p3623_p12 = scmp.ne.s32.totalorder %s488_s0, %s3622_s15  ;;  %p3631_p3 = scmp.lt.s32.totalorder %s3622_s15, %s3622_s15 }
  0x50   : > { %p3625_p13 = pnand %p3623_p12, %p3957_p7  ;;  %p3632_p4 = por %p3631_p3, %p3630_p1 }
  0x51   : > { %3294 = dma.hbm_to_vmem [thread:$0]  (!%p3949_p6), %s4596_s4, 3072, %s450_s20, [#allocation10], %s3811_s26, %s3811_s26, %s3812_s2  }
  0x52   : > { %p3626_p0 = pneg %p3625_p13 }
  0x54   : > { %p3633_p2 = pnand %p3632_p4, %p3626_p0 }
  0x56   : > { %3636 = shalt.err (!%p3633_p2)
}
  0x57   : > { %s3814_s25 = smov 128   ;;  %s3815_s16 = smov 8  }
  0x58   : > { %s4597_s10 = sld [smem:[#allocation35_spill]]  ;;  %s3816_s20 = smov [#allocation15]  }
  0x59   : > { %s503_s26 = sshll.u32 %s3816_s20, 4  ;;  %s504_s26 = int_to_ptr.vmem [resolvable:$true] %s503_s26 }
  0x5a   : > { %s3648_s17 = scalar_lea.vmem %s504_s26, 2048  ;;  %p3656_p10 = scmp.lt.s32.totalorder %s504_s26, %s504_s26 }
  0x5b   : > { %p3649_p5 = scmp.ne.s32.totalorder %s504_s26, %s3648_s17  ;;  %p3657_p11 = scmp.lt.s32.totalorder %s3648_s17, %s3648_s17 }
  0x5d   : > { %p3651_p8 = pnand %p3649_p5, %p3957_p7  ;;  %p3658_p12 = por %p3657_p11, %p3656_p10 }
  0x5e   : > { %3300 = dma.hbm_to_vmem [thread:$0]  (!%p3949_p6), %s4597_s10, 2048, %s488_s0, [#allocation13], %s3814_s25, %s3814_s25, %s3815_s16  }
  0x5f   : > { %p3652_p9 = pneg %p3651_p8 }
  0x61   : > { %p3659_p13 = pnand %p3658_p12, %p3652_p9 }
  0x63   : > { %3662 = shalt.err (!%p3659_p13)
}
  0x64   : > { %s4598_s15 = smov 4   ;;  %s4599_s29 = smov 64  }
  0x65   : > { %s4600_s12 = sld [smem:[#allocation36_spill]]  ;;  %s2790_s18 = sadd.s32 4294967294, %s3803_s24  }
  0x66   : > { %s4016_s19 = sadd.s32 1, %s3803_s24   ;;  %s45_s25 = sadd.s32 1, %s3799_s23 }
  0x67   : > { %4601 = sst [smem:[#allocation27_spill]] %s4016_s19  ;;  %s42_s0 = ssub.s32 %s3803_s24, %s4016_s19 }
  0x68   : > { %p43_p7 = scmp.eq.s32.totalorder %s42_s0, 0  ;;  %p52_p0 = scmp.ne.s32.totalorder %s3799_s23, %s3795_s22 }
  0x69   : > { %p53_p1 = scmp.eq.s32.totalorder %s3803_s24, 0  ;;  %p58_p3 = scmp.ne.s32.totalorder %s3795_s22, %s3791_s21 }
  0x6a   : > { %s4027_s2 = scalar_select %p43_p7, %s3799_s23, %s45_s25  }
  0x6b   : > { %3303 = dma.hbm_to_vmem [thread:$0]  (!%p3949_p6), %s4600_s12, 2048, %s504_s26, [#allocation16], %s4599_s29, %s4599_s29, %s4598_s15  }
  0x6c   : > { %4602 = sst [smem:[#allocation28_spill]] %s4027_s2  ;;  %p4029_p4 = por %p53_p1, %p52_p0 }
  0x6d   : > { %p4604_p2 = scmp.eq.s32.totalorder %s3935_s27, 0  ;;  %p402_p5 = scmp.eq.s32.totalorder %s3935_s27, 1 }
  0x6e   : > { %p408_p8 = scmp.eq.s32.totalorder %s2790_s18, 1  ;;  %p3321_p9 = scmp.lt.s32.totalorder %s3803_s24, 2 }
  0x6f   : > { %p4035_p6 = por %p4604_p2, %p58_p3  ;;  %s4042_s17 = sand.u32 1, %s3799_s23  }
  0x70   : > { %p4044_p10 = por %p402_p5, %p52_p0  ;;  %p4048_p11 = por %p408_p8, %p58_p3 }
  0x71   : > { %s2799_s0 = sshll.u32 %s4042_s17, 3  ;;  %s2927_s25 = sshll.u32 %s3803_s24, 7 }
  0x72   : > { %s4606_s30 = scalar_select %p4044_p10, 1, 0 }
  0x73   : > { %s4607_s16 = scalar_select %p4048_p11, 1, 0 }
  0x74   : > { %s4609_s6 = sld [smem:[#allocation30_spill]]  ;;  %s530_s10 = scalar_lea.vmem [#allocation3], %s2799_s0 }
  0x75   : > { %4608 = sst [smem:[#allocation29_spill]] %s4607_s16  ;;  %s537_s12 = sshll.u32 %s530_s10, 4  ;;  %s4059_s12 = int_to_ptr.vmem [resolvable:$true] %s537_s12 }
  0x76   : > { %p4063_p12 = pnand %p3321_p9, %p4029_p4  ;;  %s527_s16 = scalar_lea.sflag [#allocation4], %s4042_s17 }
  0x78   : > { %p3665_p7 = pneg %p4063_p12 }
  0x7a   : > { %s4057_s18 = scalar_lea.hbm %s4609_s6, %s2927_s25  ;;  %s3668_s20 = scalar_lea.hbm %s4609_s6, 256 }
  0x7b   : > { %s3663_s3 = scalar_lea.hbm %s4057_s18, 128  ;;  %p3669_p3 = scmp.lt.s32.totalorder %s4057_s18, %s4609_s6 }
  0x7c   : > { %p3664_p13 = scmp.ne.s32.totalorder %s4057_s18, %s3663_s3  ;;  %p3670_p4 = scmp.lt.s32.totalorder %s3668_s20, %s3663_s3 }
  0x7e   : > { %p3666_p0 = pnand %p3665_p7, %p3664_p13  ;;  %p3671_p2 = por %p3670_p4, %p3669_p3 }
  0x80   : > { %p3667_p1 = pneg %p3666_p0 }
  0x82   : > { %p3672_p5 = pnand %p3671_p2, %p3667_p1 }
  0x84   : > { %3675 = shalt.err (!%p3672_p5)
}
  0x85   : > { %s3676_s23 = scalar_lea.vmem %s4059_s12, 128  ;;  %s3817_s4 = smov [#allocation3]  }
  0x86   : > { %p3677_p8 = scmp.ne.s32.totalorder %s4059_s12, %s3676_s23  ;;  %s3681_s10 = sshll.u32 %s3817_s4, 4  ;;  %s3682_s10 = int_to_ptr.vmem [resolvable:$false] %s3681_s10 }
  0x87   : > { %s3683_s19 = scalar_lea.vmem %s3682_s10, 256  ;;  %p3684_p0 = scmp.lt.s32.totalorder %s4059_s12, %s3682_s10 }
  0x88   : > { %p3679_p9 = pnand %p3677_p8, %p3665_p7  ;;  %p3685_p11 = scmp.lt.s32.totalorder %s3683_s19, %s3676_s23 }
  0x8a   : > { %p3680_p13 = pneg %p3679_p9  ;;  %p3686_p10 = por %p3685_p11, %p3684_p0 }
  0x8c   : > { %p3687_p3 = pnand %p3686_p10, %p3680_p13 }
  0x8e   : > { %3690 = shalt.err (!%p3687_p3)
}
  0x8f   : > { %3307 = dma.hbm_to_vmem [thread:$0]  (!%p4063_p12), %s4057_s18, 128, %s4059_s12, %s527_s16, %s4599_s29, %s4599_s29, %s4598_s15  }
  0x90   : > { %s2928_s3 = sshll.u32 %s3803_s24, 5  ;;  %s4611_s0 = sshll.u32 %s4042_s17, 1 }
  0x91   : > { %s4103_s19 = scalar_lea.hbm %s4548_s1, %s2928_s3  ;;  %s551_s25 = scalar_lea.vmem [#allocation6], %s4611_s0 }
  0x92   : > { %s558_s4 = sshll.u32 %s551_s25, 4  ;;  %s4612_s10 = sand.u32 1, %s3803_s24   ;;  %s4107_s4 = int_to_ptr.vmem [resolvable:$true] %s558_s4 }
  0x93   : > { %s4111_s6 = scalar_lea.sflag [#allocation7], %s4612_s10  ;;  %s3691_s21 = scalar_lea.hbm %s4103_s19, 32 }
  0x94   : > { %p3692_p10 = scmp.ne.s32.totalorder %s4103_s19, %s3691_s21  ;;  %s3696_s29 = scalar_lea.hbm %s4548_s1, 64 }
  0x95   : > { %p3697_p4 = scmp.lt.s32.totalorder %s4103_s19, %s4548_s1  ;;  %p3698_p2 = scmp.lt.s32.totalorder %s3696_s29, %s3691_s21 }
  0x96   : > { %p3694_p11 = pnand %p3692_p10, %p3665_p7 }
  0x97   : > { %p3699_p5 = por %p3698_p2, %p3697_p4 }
  0x98   : > { %p3695_p1 = pneg %p3694_p11 }
  0x9a   : > { %p3700_p8 = pnand %p3699_p5, %p3695_p1 }
  0x9c   : > { %3703 = shalt.err (!%p3700_p8)
}
  0x9d   : > { %s3704_s18 = scalar_lea.vmem %s4107_s4, 32  ;;  %s3818_s3 = smov [#allocation6]  }
  0x9e   : > { %p3705_p9 = scmp.ne.s32.totalorder %s4107_s4, %s3704_s18  ;;  %s3709_s20 = sshll.u32 %s3818_s3, 4  ;;  %s3710_s20 = int_to_ptr.vmem [resolvable:$false] %s3709_s20 }
  0x9f   : > { %s3711_s23 = scalar_lea.vmem %s3710_s20, 64  ;;  %p3712_p3 = scmp.lt.s32.totalorder %s4107_s4, %s3710_s20 }
  0xa0   : > { %p3707_p13 = pnand %p3705_p9, %p3665_p7  ;;  %p3713_p10 = scmp.lt.s32.totalorder %s3711_s23, %s3704_s18 }
  0xa2   : > { %p3708_p0 = pneg %p3707_p13  ;;  %p3714_p11 = por %p3713_p10, %p3712_p3 }
  0xa4   : > { %p3715_p4 = pnand %p3714_p11, %p3708_p0 }
  0xa6   : > { %3718 = shalt.err (!%p3715_p4)
}
  0xa7   : > { %s3819_s21 = smov 16   ;;  %s3820_s0 = smov 1  }
  0xa8   : > { %3310 = dma.hbm_to_vmem [thread:$0]  (!%p4063_p12), %s4103_s19, 32, %s4107_s4, %s4111_s6, %s3819_s21, %s3819_s21, %s3820_s0  }
  0xa9   : > { %p4613_p7 = scmp.ne.s32.totalorder %s4590_s28, 0 }
  0xaa   : > { %s4139_s25 = sand.u32 (!%p4613_p7), 1, %s3795_s22  }
  0xab   : > { %570 = sbr.rel (%p4613_p7) target bundleno = 3749 (0xea5), region = 84  ;;  %s2806_s10 = sshll.u32 (!%p4613_p7), %s4139_s25, 3 }
  0xac   : > { %s573_s12 = scalar_lea.sflag (!%p4613_p7), [#allocation4], %s4139_s25  ;;  %s576_s15 = scalar_lea.vmem (!%p4613_p7), [#allocation3], %s2806_s10 }
  0xb0   : > { %3762 = dma.done.wait (%p4035_p6), %s573_s12, 128  }
  0xb1   : > { %3764 = vsyncadd (%p4035_p6), %s573_s12, 4294967168  ;;  %s581_s6 = sand.u32 1, %s3935_s27   ;;  %s2807_s28 = sshll.u32 %s4139_s25, 1 }
  0xb2   : > { %s582_s2 = scalar_lea.sflag [#allocation7], %s581_s6  ;;  %s4151_s19 = scalar_lea.vmem [#allocation6], %s2807_s28 }
  0xb3   : > { %3766 = dma.done.wait (%p4035_p6), %s582_s2, 32  }
  0xb4   : > { %3768 = vsyncadd (%p4035_p6), %s582_s2, 4294967264  ;;  %p4614_p12 = scmp.eq.s32.totalorder %s3935_s27, 0 }
  0xb6   : > { %3770 = dma.done.wait (%p4614_p12), [#allocation7], 16   ;;  %p4615_p1 = pmov %p4614_p12 }
  0xb8   : > { %3772 = vsyncadd (%p4615_p1), [#allocation7], 4294967280  ;;  %p4616_p2 = pmov %p4615_p1 }
  0xb9   : > { %p4617_p5 = pmov %p4615_p1 }
  0xba   : > { %3774 = dma.done.wait (%p4616_p2), [#allocation10], 3088  }
  0xbb   : > { %3776 = vsyncadd (%p4617_p5), [#allocation10], 4294964208  ;;  %p4618_p8 = pmov %p4615_p1 }
  0xbc   : > { %p4619_p9 = pmov %p4615_p1 }
  0xbd   : > { %3778 = dma.done.wait (%p4618_p8), [#allocation13], 3072  }
  0xbe   : > { %3780 = vsyncadd (%p4619_p9), [#allocation13], 4294964224  ;;  %p4620_p6 = pmov %p4615_p1 }
  0xbf   : > { %p4621_p13 = pmov %p4615_p1 }
  0xc0   : > { %3782 = dma.done.wait (%p4620_p6), [#allocation16], 2048  }
  0xc1   : > { %3784 = vsyncadd (%p4621_p13), [#allocation16], 4294965248  ;;  %v2945_v0 = vld [vmem:[%s576_s15] sm:$0xff]   ;;  %v3821_v5 = vmov 0.0   ;;  %v3389_v17 = vld [vmem:[#allocation11 + $0x98] ss:$12 sps:$4 sm:$0xff]   ;;  %v749_v54 = vlaneseq }
  0xc2   : > { %v2946_v1 = vunpack.c.l.bf16 %v2945_v0  ;;  %v2947_v2 = vunpack.c.h.bf16 %v2945_v0  ;;  %v3382_v3 = vld [vmem:[#allocation11 + $0xac] ss:$12 sps:$4 sm:$0xff]   ;;  %v3384_v4 = vld [vmem:[#allocation11 + $0xa8] ss:$12 sps:$4 sm:$0xff]   ;;  %3039 = vmatprep.subr.bf16.mxu1 %v3821_v5  ;;  %v3385_v6 = vld [vmem:[#allocation11 + $0xb0] ss:$12 sps:$4 sm:$0xff]  }
  0xc3   : > { %892 = vmatprep.subr.bf16.mxu0 %v3382_v3  ;;  %3040 = vmatpush3.bf16.msra.mxu1 %v3385_v6  ;;  %v3386_v15 = vld [vmem:[#allocation11 + $0x94] ss:$12 sps:$4 sm:$0xff]   ;;  %v3388_v16 = vld [vmem:[#allocation11 + $0x90] ss:$12 sps:$4 sm:$0xff]   ;;  %v3392_v19 = vld [vmem:[#allocation11 + $0x78] ss:$12 sps:$4 sm:$0xff]  }
  0xc4   : > { %673 = vadd.xlane.f32.xlu0 %v2946_v1  ;;  %893 = vmatpush1.bf16.msra.mxu0 %v3384_v4  ;;  %v3390_v18 = vld [vmem:[#allocation11 + $0x7c] ss:$12 sps:$4 sm:$0xff]   ;;  %v3393_v20 = vld [vmem:[#allocation11 + $0x80] ss:$12 sps:$4 sm:$0xff]   ;;  %v3394_v21 = vld [vmem:[#allocation11 + $0x64] ss:$12 sps:$4 sm:$0xff]  }
  0xc5   : > { %3041 = vmatprep.subr.bf16.mxu1 %v3821_v5  ;;  %894 = vmatprep.subr.bf16.mxu0 %v3386_v15  ;;  %v3396_v22 = vld [vmem:[#allocation11 + $0x60] ss:$12 sps:$4 sm:$0xff]   ;;  %v3397_v23 = vld [vmem:[#allocation11 + $0x68] ss:$12 sps:$4 sm:$0xff]   ;;  %v3401_v26 = vld [vmem:[#allocation11 + $0x50] ss:$12 sps:$4 sm:$0xff]  }
  0xc6   : > { %v3398_v24 = vld [vmem:[#allocation11 + $0x4c] ss:$12 sps:$4 sm:$0xff]   ;;  %v3400_v25 = vld [vmem:[#allocation11 + $0x48] ss:$12 sps:$4 sm:$0xff]   ;;  %v3822_v28 = vmov 0   ;;  %vm3823_vm0 = vmmov 0  }
  0xc7   : > { %3042 = vmatpush3.bf16.msra.mxu1 %v3389_v17  ;;  %v3402_v27 = vld [vmem:[#allocation11 + $0x34] ss:$12 sps:$4 sm:$0xff]   ;;  %924 = vmatprep.mubr.bf16.mxu0 %v3822_v28  ;;  %v3404_v29 = vld [vmem:[#allocation11 + $0x30] ss:$12 sps:$4 sm:$0xff]   ;;  %v3405_v30 = vld [vmem:[#allocation11 + $0x38] ss:$12 sps:$4 sm:$0xff]  }
  0xc8   : > { %675 = vadd.xlane.f32.xlu0 %v2947_v2  ;;  %895 = vmatpush1.bf16.msra.mxu0 %v3388_v16  ;;  %v3406_v31 = vld [vmem:[#allocation11 + $0x1c] ss:$12 sps:$4 sm:$0xff]   ;;  %v3408_v32 = vld [vmem:[#allocation11 + $0x18] ss:$12 sps:$4 sm:$0xff]   ;;  %v3409_v33 = vld [vmem:[#allocation11 + $0x20] ss:$12 sps:$4 sm:$0xff]  }
  0xc9   : > { %3043 = vmatprep.subr.bf16.mxu1 %v3821_v5  ;;  %896 = vmatprep.subr.bf16.mxu0 %v3390_v18  ;;  %v3410_v34 = vld [vmem:[#allocation11 + $0x4] ss:$12 sps:$4 sm:$0xff]   ;;  %v3412_v35 = vld [vmem:[#allocation11] ss:$12 sps:$4 sm:$0xff]   ;;  %v3413_v36 = vld [vmem:[#allocation11 + $0x8] ss:$12 sps:$4 sm:$0xff]  }
  0xca   : > { %3055 = vmatprep.mubr.msk.bf16.mxu1 %vm3823_vm0, %v3821_v5  ;;  %v2815_v45 = vld [vmem:[#allocation8] ss:$0 sm:$0xff]  ;;  %v2816_v49 = vld [vmem:[#allocation9] ss:$0 sm:$0xff]  ;;  %v750_v55 = vshrl.u32 %v749_v54, 7  ;;  %vm1006_vm1 = vcmask 261120  }
  0xcb   : > { %3044 = vmatpush3.bf16.msra.mxu1 %v3393_v20  ;;  %v747_v57 = vld [vmem:[%s4552_s5] sm:$0x7]  ;;  %s3824_s29 = smov 96   ;;  %vm1125_vm2 = vcmask 1043456   ;;  %vm1099_vm3 = vcmask 64512   ;;  %s3825_s17 = smov 64  }
  0xcc   : > { %897 = vmatpush1.bf16.msra.mxu0 %v3392_v19  ;;  %3045 = vmatprep.subr.bf16.mxu1 %v3821_v5  ;;  %v755_v56 = vsub.s32 1, %v750_v55  ;;  %v759_v58 = vsub.s32 2, %v750_v55  ;;  %v751_v62 = vsub.s32 0, %v750_v55  ;;  %s3826_s16 = smov 32   ;;  %vm1225_vm4 = vcmask 257024   ;;  %s4622_s18 = sld [smem:[#allocation37_spill]] }
  0xcd   : > { %898 = vmatprep.subr.bf16.mxu0 %v3394_v21  ;;  %vm1460_vm5 = vcmask 519424   ;;  %vm1695_vm6 = vcmask 781824   ;;  %vm1930_vm7 = vcmask 1044224   ;;  %s2943_s3 = sshll.u32 %s3935_s27, 7  ;;  %s662_s20 = scalar_lea.vmem [#allocation17], %s2806_s10 }
  0xce   : > { %v756_v59 = vrot.slane %v747_v57, %v755_v56  ;;  %v752_v6 = vrot.slane %v747_v57, %v751_v62  ;;  %s2637_s23 = sshll.u32 %s662_s20, 4  ;;  %s4623_s12 = sld [smem:[#allocation38_spill]]  ;;  %s4502_s23 = int_to_ptr.vmem [resolvable:$true] %s2637_s23 }
  0xcf   : > { %3046 = vmatpush3.bf16.msra.mxu1 %v3397_v23  ;;  %s2624_s6 = scalar_lea.sflag [#allocation5], %s4139_s25  ;;  %s3719_s28 = scalar_lea.vmem %s4502_s23, 128 }
  0xd0   : > { %899 = vmatpush1.bf16.msra.mxu0 %v3396_v22  ;;  %3047 = vmatprep.subr.bf16.mxu1 %v3821_v5  ;;  %v4238_v22 = vld [vmem:[%s4151_s19] ss:$0 sm:$0xff]  ;;  %p3720_p0 = scmp.ne.s32.totalorder %s4502_s23, %s3719_s28  ;;  %p4624_p3 = scmp.ne.s32.totalorder %s4606_s30, 0 }
  0xd1   : > { %900 = vmatprep.subr.bf16.mxu0 %v3398_v24  ;;  %s3827_s27 = smov [#allocation17]  }
  0xd2   : > { %p3721_p10 = pnand %p3720_p0, %p4624_p3  ;;  %s3723_s10 = sshll.u32 %s3827_s27, 4  ;;  %s3724_s10 = int_to_ptr.vmem [resolvable:$false] %s3723_s10 }
  0xd3   : > { %3048 = vmatpush3.bf16.msra.mxu1 %v3401_v26  ;;  %s3725_s2 = scalar_lea.vmem %s3724_s10, 256  ;;  %p3726_p4 = scmp.lt.s32.totalorder %s4502_s23, %s3724_s10 }
  0xd4   : > { %901 = vmatpush1.bf16.msra.mxu0 %v3400_v25  ;;  %3049 = vmatprep.subr.bf16.mxu1 %v3821_v5  ;;  %s4500_s15 = scalar_lea.hbm %s4623_s12, %s2943_s3  ;;  %p3722_p11 = pneg %p3721_p10 }
  0xd5   : > { %902 = vmatprep.subr.bf16.mxu0 %v3402_v27  ;;  %p3727_p7 = scmp.lt.s32.totalorder %s3725_s2, %s3719_s28 }
  0xd7   : > { %3050 = vmatpush3.bf16.msra.mxu1 %v3405_v30  ;;  %p3728_p12 = por %p3727_p7, %p3726_p4 }
  0xd8   : > { %903 = vmatpush1.bf16.msra.mxu0 %v3404_v29  ;;  %3051 = vmatprep.subr.bf16.mxu1 %v3821_v5  ;;  %v4243_v29 = vld [vmem:[%s4151_s19 + $0x1] ss:$0 sm:$0xff] }
  0xd9   : > { %904 = vmatprep.subr.bf16.mxu0 %v3406_v31  ;;  %p3729_p1 = pnand %p3728_p12, %p3722_p11 }
  0xdb   : > { %3052 = vmatpush3.bf16.msra.mxu1 %v3409_v33 }
  0xdc   : > { %905 = vmatpush1.bf16.msra.mxu0 %v3408_v32  ;;  %3053 = vmatprep.subr.bf16.mxu1 %v3821_v5 }
  0xdd   : > { %906 = vmatprep.subr.bf16.mxu0 %v3410_v34 }
  0xdf   : > { %3054 = vmatpush3.bf16.msra.mxu1 %v3413_v36 }
  0xe0   : > { %907 = vmatpush1.bf16.msra.mxu0 %v3412_v35  ;;  %3059 = vmatprep.subr.bf16.mxu1 %v3821_v5 }
  0xe1   : > { %3083 = vmatprep.subr.bf16.mxu0 %v3821_v5 }
 0x14d   : > { %v674_v7 = vpop.xlane.xlu0 %673 }
 0x14e   : > { %v678_v8 = vmul.f32 0.0078125, %v674_v7 }
 0x150   : > { %v4175_v9 = vsub.f32 %v2946_v1, %v678_v8  ;;  %v760_v1 = vrot.slane %v747_v57, %v759_v58 }
 0x151   : > { %v676_v10 = vpop.xlane.xlu0 %675 }
 0x152   : > { %v679_v11 = vmul.f32 0.0078125, %v676_v10  ;;  %v682_v12 = vmul.f32 %v4175_v9, %v4175_v9 }
 0x154   : > { %v4179_v13 = vsub.f32 %v2947_v2, %v679_v11  ;;  %684 = vadd.xlane.f32.xlu1 %v682_v12 }
 0x156   : > { %v683_v14 = vmul.f32 %v4179_v13, %v4179_v13 }
 0x158   : > { %686 = vadd.xlane.f32.xlu1 %v683_v14 }
 0x1dd   : > { %v685_v37 = vpop.xlane.xlu1 %684 }
 0x1de   : > { %v688_v38 = vmul.f32 0.0078125, %v685_v37 }
 0x1e0   : > { %v690_v39 = vadd.f32 1e-12, %v688_v38 }
 0x1e1   : > { %v687_v40 = vpop.xlane.xlu1 %686 }
 0x1e2   : > { %3455 = vrsqrt.f32 %v690_v39  ;;  %v689_v41 = vmul.f32 0.0078125, %v687_v40 }
 0x1e4   : > { %v691_v42 = vadd.f32 1e-12, %v689_v41 }
 0x1e6   : > { %3457 = vrsqrt.f32 %v691_v42 }
 0x1ef   : > { %v3456_v43 = vpop.eup %3455 }
 0x1f0   : > { %v694_v44 = vmul.f32 %v3456_v43, %v4175_v9 }
 0x1f2   : > { %v702_v48 = vmul.f32 %v2815_v45, %v694_v44 }
 0x1f3   : > { %v3458_v46 = vpop.eup %3457 }
 0x1f4   : > { %v695_v47 = vmul.f32 %v3458_v46, %v4179_v13  ;;  %v4195_v51 = vadd.f32 %v2816_v49, %v702_v48 }
 0x1f6   : > { %v703_v50 = vmul.f32 %v2815_v45, %v695_v47 }
 0x1f8   : > { %v4197_v52 = vadd.f32 %v2816_v49, %v703_v50 }
 0x1fa   : > { %v714_v53 = vpack.c.bf16 %v4197_v52, %v4195_v51 }
 0x1fc   : > { %925 = vmatmul.mubr.bf16.vlgmr.msra.gmra.mxu0 %v714_v53  ;;  %3056 = vmatmul.mubr.bf16.vlgmr.msra.gmra.mxu1 %v714_v53 }
 0x1fd   : > { %3061 = vmatprep.mubr.msk.bf16.mxu1 %vm3823_vm0, %v3821_v5  ;;  %3085 = vmatprep.mubr.msk.bf16.mxu0 %vm3823_vm0, %v3821_v5 }
 0x2bc   : > { %v926_v60 = vpop.f32.mrf.mxu0  ;;  %v969_v61 = vpop.f32.mrf.mxu1 }
 0x2bd   : > { %v927_v13 = vadd.f32 %v926_v60, %v752_v6  ;;  %v970_v16 = vadd.f32 %v969_v61, %v760_v1 }
 0x2be   : > { %v928_v63 = vpop.f32.mrf.mxu0  ;;  %v3057_v0 = vpop.f32.mrf.mxu1 }
 0x2bf   : > { %v929_v2 = vadd.f32 %v928_v63, %v756_v59  ;;  %v4217_v15 = vpack.c.bf16 %v927_v13, %v927_v13  ;;  %v4226_v19 = vpack.c.bf16 %v970_v16, %v970_v16 }
 0x2c0   : > { %v930_v3 = vpop.f32.mrf.mxu0  ;;  %v972_v4 = vpop.f32.mrf.mxu1 }
 0x2c1   : > { %v4208_v7 = vpack.c.bf16 %v929_v2, %v929_v2  ;;  %v973_v8 = vadd.f32 %v972_v4, %v760_v1  ;;  %v931_v18 = vadd.f32 %v930_v3, %v752_v6  ;;  %v1127_v21 = vsel %vm1125_vm2, %v4226_v19, 0 }
 0x2c2   : > { %v932_v9 = vpop.f32.mrf.mxu0  ;;  %v3058_v10 = vpop.f32.mrf.mxu1 }
 0x2c3   : > { %v933_v11 = vadd.f32 %v932_v9, %v756_v59  ;;  %v1011_v12 = vsel %vm1006_vm1, %v4208_v7, 0  ;;  %v4228_v20 = vpack.c.bf16 %v931_v18, %v931_v18  ;;  %v4253_v36 = vpack.c.bf16 %v973_v8, %v973_v8 }
 0x2c4   : > { %3060 = vmatpush3.bf16.xpose.msra.mxu1 %v1011_v12 }
 0x2c5   : > { %v4212_v14 = vpack.c.bf16 %v933_v11, %v933_v11  ;;  %3065 = vmatprep.subr.bf16.mxu1 %v3821_v5  ;;  %v1173_v49 = vsel %vm1125_vm2, %v4253_v36, 0 }
 0x2c7   : > { %1280 = vrot.lane.b32.xlu1 %v4212_v14, %s3824_s29  ;;  %v1057_v17 = vsel %vm1006_vm1, %v4212_v14, 0 }
 0x2cb   : > { %3062 = vmatmul.mubr.msk.bf16.vlgmr.msra.gmra.mxu1 %vm1006_vm1, %v4217_v15 }
 0x2cc   : > { %3066 = vmatpush3.bf16.xpose.msra.mxu1 %v1057_v17  ;;  %3067 = vmatprep.mubr.msk.bf16.mxu1 %vm3823_vm0, %v3821_v5 }
 0x2cd   : > { %3071 = vmatprep.subr.bf16.mxu1 %v3821_v5 }
 0x2d3   : > { %3068 = vmatmul.mubr.msk.bf16.vlgmr.msra.gmra.mxu1 %vm1006_vm1, %v4228_v20 }
 0x2d4   : > { %3072 = vmatpush3.bf16.msra.mxu1 %v1127_v21  ;;  %3073 = vmatprep.mubr.msk.bf16.mxu1 %vm3823_vm0, %v3821_v5 }
 0x2d5   : > { %3077 = vmatprep.subr.bf16.mxu1 %v3821_v5 }
 0x339   : > { %v1281_v40 = vpop.permute.xlu1 %1280 }
 0x33a   : > { %v1286_v55 = vsel %vm1006_vm1, %v1281_v40, 0 }
 0x38b   : > { %v1047_v23 = vpop.f32.mrf.mxu1 }
 0x38c   : > { %v1048_v24 = vadd.f32 %v4238_v22, %v1047_v23 }
 0x38d   : > { %v3063_v25 = vpop.f32.mrf.mxu1 }
 0x38e   : > { %v1100_v26 = vsel %vm1099_vm3, %v1048_v24, -inf }
 0x38f   : > { %1101 = vmax.xlane.f32.xlu0 %v1100_v26  ;;  %v1050_v27 = vpop.f32.mrf.mxu1 }
 0x391   : > { %v3064_v28 = vpop.f32.mrf.mxu1 }
 0x393   : > { %v1093_v30 = vpop.f32.mrf.mxu1 }
 0x394   : > { %v1094_v31 = vadd.f32 %v4243_v29, %v1093_v30 }
 0x395   : > { %v3069_v32 = vpop.f32.mrf.mxu1 }
 0x396   : > { %v1103_v33 = vsel %vm1099_vm3, %v1094_v31, -inf }
 0x397   : > { %1104 = vmax.xlane.f32.xlu1 %v1103_v33  ;;  %v1096_v34 = vpop.f32.mrf.mxu1 }
 0x399   : > { %v3070_v35 = vpop.f32.mrf.mxu1 }
 0x3a5   : > { %1230 = vrot.lane.b32.xlu0 %v4208_v7, %s3824_s29 }
 0x3a8   : > { %1228 = vrot.lane.b32.xlu1 %v4217_v15, %s3824_s29 }
 0x3ac   : > { %1278 = vrot.lane.b32.xlu1 %v4228_v20, %s3824_s29 }
 0x3b0   : > { %1398 = vrot.lane.b32.xlu1 %v4253_v36, %s3824_s29 }
 0x418   : > { %v1102_v37 = vpop.xlane.xlu0 %1101 }
 0x419   : > { %v1106_v38 = vsub.f32 %v1048_v24, %v1102_v37 }
 0x41b   : > { %v1108_v39 = vmul.f32 1.442695, %v1106_v38 }
 0x41c   : > { %v1231_v41 = vpop.permute.xlu0 %1230 }
 0x41d   : > { %3459 = vpow2.f32 %v1108_v39  ;;  %v1236_v42 = vsel %vm1006_vm1, %v1231_v41, 0 }
 0x41e   : > { %3084 = vmatpush3.bf16.xpose.msra.mxu0 %v1236_v42 }
 0x41f   : > { %3095 = vmatprep.subr.bf16.mxu0 %v3821_v5 }
 0x420   : > { %v1105_v43 = vpop.xlane.xlu1 %1104 }
 0x421   : > { %v1107_v44 = vsub.f32 %v1094_v31, %v1105_v43 }
 0x423   : > { %v1110_v45 = vmul.f32 1.442695, %v1107_v44 }
 0x424   : > { %v1229_v46 = vpop.permute.xlu1 %1228 }
 0x425   : > { %3461 = vpow2.f32 %v1110_v45  ;;  %3086 = vmatmul.mubr.msk.bf16.vlgmr.msra.gmra.mxu0 %vm1006_vm1, %v1229_v46 }
 0x426   : > { %3097 = vmatprep.mubr.msk.bf16.mxu0 %vm3823_vm0, %v3821_v5 }
 0x428   : > { %v1279_v54 = vpop.permute.xlu1 %1278 }
 0x42a   : > { %v4262_v47 = vpop.eup %3459 }
 0x42b   : > { %v1120_v48 = vpack.c.bf16 %v4262_v47, %v4262_v47 }
 0x42c   : > { %v1399_v56 = vpop.permute.xlu1 %1398 }
 0x42d   : > { %3074 = vmatmul.mubr.msk.bf16.vlgmr.msra.gmra.mxu1 %vm1099_vm3, %v1120_v48  ;;  %v1404_v57 = vsel %vm1125_vm2, %v1399_v56, 0 }
 0x42e   : > { %3078 = vmatpush3.bf16.msra.mxu1 %v1173_v49  ;;  %3079 = vmatprep.mubr.msk.bf16.mxu1 %vm3823_vm0, %v3821_v5 }
 0x42f   : > { %3089 = vmatprep.subr.bf16.mxu1 %v3821_v5 }
 0x432   : > { %v4272_v50 = vpop.eup %3461 }
 0x433   : > { %v1121_v53 = vpack.c.bf16 %v4272_v50, %v4272_v50 }
 0x435   : > { %3080 = vmatmul.mubr.msk.bf16.vlgmr.msra.gmra.mxu1 %vm1099_vm3, %v1121_v53 }
 0x436   : > { %3090 = vmatpush3.bf16.xpose.msra.mxu1 %v1286_v55  ;;  %3091 = vmatprep.mubr.msk.bf16.mxu1 %vm3823_vm0, %v3821_v5 }
 0x437   : > { %3101 = vmatprep.subr.bf16.mxu1 %v3821_v5 }
 0x43d   : > { %3092 = vmatmul.mubr.msk.bf16.vlgmr.msra.gmra.mxu1 %vm1006_vm1, %v1279_v54 }
 0x43e   : > { %3102 = vmatpush3.bf16.msra.mxu1 %v1404_v57  ;;  %3103 = vmatprep.mubr.msk.bf16.mxu1 %vm3823_vm0, %v3821_v5 }
 0x43f   : > { %3113 = vmatprep.subr.bf16.mxu1 %v3821_v5 }
 0x4e5   : > { %v1272_v58 = vpop.f32.mrf.mxu0 }
 0x4e6   : > { %v1273_v59 = vadd.f32 %v4238_v22, %v1272_v58 }
 0x4e7   : > { %v3087_v60 = vpop.f32.mrf.mxu0 }
 0x4e8   : > { %v1328_v61 = vsel %vm1099_vm3, %v1273_v59, -inf }
 0x4e9   : > { %1329 = vmax.xlane.f32.xlu0 %v1328_v61  ;;  %v1275_v62 = vpop.f32.mrf.mxu0 }
 0x4eb   : > { %v3088_v63 = vpop.f32.mrf.mxu0 }
 0x4ed   : > { %v4288_v0 = vpop.f32.mrf.mxu1 }
 0x4ef   : > { %v3075_v1 = vpop.f32.mrf.mxu1 }
 0x4f1   : > { %v1166_v2 = vpop.f32.mrf.mxu1 }
 0x4f3   : > { %v3076_v3 = vpop.f32.mrf.mxu1 }
 0x4f5   : > { %v4290_v4 = vpop.f32.mrf.mxu1 }
 0x4f7   : > { %v3081_v6 = vpop.f32.mrf.mxu1 }
 0x4f9   : > { %v1212_v8 = vpop.f32.mrf.mxu1 }
 0x4fb   : > { %v3082_v9 = vpop.f32.mrf.mxu1 }
 0x4fd   : > { %v1322_v10 = vpop.f32.mrf.mxu1 }
 0x4fe   : > { %v1323_v11 = vadd.f32 %v4243_v29, %v1322_v10 }
 0x4ff   : > { %1350 = vrot.lane.b32.xlu0 %v4226_v19, %s3824_s29  ;;  %v3093_v12 = vpop.f32.mrf.mxu1 }
 0x500   : > { %v1331_v13 = vsel %vm1099_vm3, %v1323_v11, -inf }
 0x501   : > { %1332 = vmax.xlane.f32.xlu1 %v1331_v13  ;;  %v1325_v16 = vpop.f32.mrf.mxu1 }
 0x503   : > { %1465 = vrot.lane.b32.xlu0 %v4208_v7, %s3825_s17  ;;  %v3094_v17 = vpop.f32.mrf.mxu1 }
 0x507   : > { %1463 = vrot.lane.b32.xlu0 %v4217_v15, %s3825_s17 }
 0x512   : > { %1515 = vrot.lane.b32.xlu1 %v4212_v14, %s3825_s17 }
 0x516   : > { %1513 = vrot.lane.b32.xlu1 %v4228_v20, %s3825_s17 }
 0x51a   : > { %1633 = vrot.lane.b32.xlu1 %v4253_v36, %s3825_s17 }
 0x572   : > { %v1330_v18 = vpop.xlane.xlu0 %1329 }
 0x573   : > { %v1334_v21 = vsub.f32 %v1273_v59, %v1330_v18 }
 0x575   : > { %v1336_v23 = vmul.f32 1.442695, %v1334_v21 }
 0x576   : > { %v1351_v24 = vpop.permute.xlu0 %1350 }
 0x577   : > { %3463 = vpow2.f32 %v1336_v23  ;;  %v1356_v25 = vsel %vm1125_vm2, %v1351_v24, 0 }
 0x578   : > { %3096 = vmatpush3.bf16.msra.mxu0 %v1356_v25 }
 0x579   : > { %3107 = vmatprep.subr.bf16.mxu0 %v3821_v5 }
 0x57a   : > { %v1466_v27 = vpop.permute.xlu0 %1465 }
 0x57b   : > { %v1471_v30 = vsel %vm1006_vm1, %v1466_v27, 0 }
 0x57e   : > { %v1464_v34 = vpop.permute.xlu0 %1463 }
 0x584   : > { %v4308_v26 = vpop.eup %3463 }
 0x585   : > { %v1348_v28 = vpack.c.bf16 %v4308_v26, %v4308_v26 }
 0x587   : > { %3098 = vmatmul.mubr.msk.bf16.vlgmr.msra.gmra.mxu0 %vm1099_vm3, %v1348_v28 }
 0x588   : > { %3108 = vmatpush3.bf16.xpose.msra.mxu0 %v1471_v30  ;;  %3109 = vmatprep.mubr.msk.bf16.mxu0 %vm3823_vm0, %v3821_v5 }
 0x589   : > { %3119 = vmatprep.subr.bf16.mxu0 %v3821_v5 }
 0x58a   : > { %v1333_v31 = vpop.xlane.xlu1 %1332 }
 0x58b   : > { %v1335_v32 = vsub.f32 %v1323_v11, %v1333_v31 }
 0x58d   : > { %v1338_v33 = vmul.f32 1.442695, %v1335_v32 }
 0x58e   : > { %v1516_v35 = vpop.permute.xlu1 %1515 }
 0x58f   : > { %3465 = vpow2.f32 %v1338_v33  ;;  %3110 = vmatmul.mubr.msk.bf16.vlgmr.msra.gmra.mxu0 %vm1006_vm1, %v1464_v34  ;;  %v1521_v40 = vsel %vm1006_vm1, %v1516_v35, 0 }
 0x590   : > { %3121 = vmatprep.mubr.msk.bf16.mxu0 %vm3823_vm0, %v3821_v5 }
 0x592   : > { %v1514_v39 = vpop.permute.xlu1 %1513 }
 0x596   : > { %v1634_v41 = vpop.permute.xlu1 %1633 }
 0x597   : > { %v1639_v42 = vsel %vm1125_vm2, %v1634_v41, 0 }
 0x59c   : > { %v4320_v37 = vpop.eup %3465 }
 0x59d   : > { %v1349_v38 = vpack.c.bf16 %v4320_v37, %v4320_v37 }
 0x59f   : > { %3104 = vmatmul.mubr.msk.bf16.vlgmr.msra.gmra.mxu1 %vm1099_vm3, %v1349_v38 }
 0x5a0   : > { %3114 = vmatpush3.bf16.xpose.msra.mxu1 %v1521_v40  ;;  %3115 = vmatprep.mubr.msk.bf16.mxu1 %vm3823_vm0, %v3821_v5 }
 0x5a1   : > { %3125 = vmatprep.subr.bf16.mxu1 %v3821_v5 }
 0x5a7   : > { %3116 = vmatmul.mubr.msk.bf16.vlgmr.msra.gmra.mxu1 %vm1006_vm1, %v1514_v39 }
 0x5a8   : > { %3126 = vmatpush3.bf16.msra.mxu1 %v1639_v42  ;;  %3127 = vmatprep.mubr.msk.bf16.mxu1 %vm3823_vm0, %v3821_v5 }
 0x5a9   : > { %3137 = vmatprep.subr.bf16.mxu1 %v3821_v5 }
 0x647   : > { %v4334_v43 = vpop.f32.mrf.mxu0 }
 0x649   : > { %v3099_v44 = vpop.f32.mrf.mxu0 }
 0x64b   : > { %v1395_v45 = vpop.f32.mrf.mxu0 }
 0x64d   : > { %v3100_v46 = vpop.f32.mrf.mxu0 }
 0x64f   : > { %v1507_v48 = vpop.f32.mrf.mxu0 }
 0x650   : > { %v1508_v49 = vadd.f32 %v4238_v22, %v1507_v48 }
 0x651   : > { %v3111_v53 = vpop.f32.mrf.mxu0 }
 0x652   : > { %v1563_v54 = vsel %vm1099_vm3, %v1508_v49, -inf }
 0x653   : > { %1564 = vmax.xlane.f32.xlu0 %v1563_v54  ;;  %v1510_v55 = vpop.f32.mrf.mxu0  ;;  %v1340_v54 = vsel %vm1099_vm3, %v4308_v26, 0.0 }
 0x655   : > { %v3112_v56 = vpop.f32.mrf.mxu0 }
 0x65f   : > { %v4338_v57 = vpop.f32.mrf.mxu1 }
 0x661   : > { %v3105_v58 = vpop.f32.mrf.mxu1 }
 0x663   : > { %v1443_v59 = vpop.f32.mrf.mxu1 }
 0x665   : > { %v3106_v60 = vpop.f32.mrf.mxu1 }
 0x667   : > { %v1557_v61 = vpop.f32.mrf.mxu1 }
 0x668   : > { %v1558_v62 = vadd.f32 %v4243_v29, %v1557_v61 }
 0x669   : > { %1585 = vrot.lane.b32.xlu0 %v4226_v19, %s3825_s17  ;;  %v3117_v63 = vpop.f32.mrf.mxu1 }
 0x66a   : > { %v1566_v1 = vsel %vm1099_vm3, %v1558_v62, -inf }
 0x66b   : > { %1567 = vmax.xlane.f32.xlu1 %v1566_v1  ;;  %v1560_v2 = vpop.f32.mrf.mxu1 }
 0x66d   : > { %1700 = vrot.lane.b32.xlu0 %v4208_v7, %s3826_s16  ;;  %v3118_v3 = vpop.f32.mrf.mxu1 }
 0x671   : > { %1698 = vrot.lane.b32.xlu0 %v4217_v15, %s3826_s16 }
 0x67c   : > { %1750 = vrot.lane.b32.xlu1 %v4212_v14, %s3826_s16 }
 0x680   : > { %1748 = vrot.lane.b32.xlu1 %v4228_v20, %s3826_s16 }
 0x6dc   : > { %v1565_v6 = vpop.xlane.xlu0 %1564 }
 0x6dd   : > { %v1569_v8 = vsub.f32 %v1508_v49, %v1565_v6 }
 0x6df   : > { %v1571_v9 = vmul.f32 1.442695, %v1569_v8 }
 0x6e0   : > { %v1586_v10 = vpop.permute.xlu0 %1585 }
 0x6e1   : > { %3467 = vpow2.f32 %v1571_v9  ;;  %v1591_v11 = vsel %vm1125_vm2, %v1586_v10, 0 }
 0x6e2   : > { %3120 = vmatpush3.bf16.msra.mxu0 %v1591_v11 }
 0x6e3   : > { %3131 = vmatprep.subr.bf16.mxu0 %v3821_v5 }
 0x6e4   : > { %v1701_v12 = vpop.permute.xlu0 %1700 }
 0x6e5   : > { %v1706_v15 = vsel %vm1006_vm1, %v1701_v12, 0 }
 0x6e8   : > { %v1699_v17 = vpop.permute.xlu0 %1698 }
 0x6ee   : > { %v3468_v7 = vpop.eup %3467 }
 0x6ef   : > { %v1583_v13 = vpack.c.bf16 %v3468_v7, %v3468_v7  ;;  %v1575_v55 = vsel %vm1099_vm3, %v3468_v7, 0.0 }
 0x6f1   : > { %3122 = vmatmul.mubr.msk.bf16.vlgmr.msra.gmra.mxu0 %vm1099_vm3, %v1583_v13 }
 0x6f2   : > { %3132 = vmatpush3.bf16.xpose.msra.mxu0 %v1706_v15  ;;  %3133 = vmatprep.mubr.msk.bf16.mxu0 %vm3823_vm0, %v3821_v5 }
 0x6f3   : > { %3143 = vmatprep.subr.bf16.mxu0 %v3821_v5 }
 0x6f4   : > { %v1568_v14 = vpop.xlane.xlu1 %1567 }
 0x6f5   : > { %v1570_v20 = vsub.f32 %v1558_v62, %v1568_v14 }
 0x6f7   : > { %v1573_v16 = vmul.f32 1.442695, %v1570_v20 }
 0x6f8   : > { %v1751_v21 = vpop.permute.xlu1 %1750 }
 0x6f9   : > { %3469 = vpow2.f32 %v1573_v16  ;;  %3134 = vmatmul.mubr.msk.bf16.vlgmr.msra.gmra.mxu0 %vm1006_vm1, %v1699_v17  ;;  %v1756_v24 = vsel %vm1006_vm1, %v1751_v21, 0 }
 0x6fa   : > { %3145 = vmatprep.mubr.msk.bf16.mxu0 %vm3823_vm0, %v3821_v5 }
 0x6fc   : > { %v1749_v25 = vpop.permute.xlu1 %1748 }
 0x706   : > { %v3470_v18 = vpop.eup %3469 }
 0x707   : > { %v1584_v23 = vpack.c.bf16 %v3470_v18, %v3470_v18 }
 0x709   : > { %3128 = vmatmul.mubr.msk.bf16.vlgmr.msra.gmra.mxu1 %vm1099_vm3, %v1584_v23 }
 0x70a   : > { %3138 = vmatpush3.bf16.xpose.msra.mxu1 %v1756_v24  ;;  %3139 = vmatprep.mubr.msk.bf16.mxu1 %vm3823_vm0, %v3821_v5 }
 0x70b   : > { %3149 = vmatprep.subr.bf16.mxu1 %v3821_v5 }
 0x711   : > { %3140 = vmatmul.mubr.msk.bf16.vlgmr.msra.gmra.mxu1 %vm1006_vm1, %v1749_v25 }
 0x712   : > { %3151 = vmatprep.mubr.msk.bf16.mxu1 %vm3823_vm0, %v3821_v5 }
 0x7b1   : > { %v4370_v27 = vpop.f32.mrf.mxu0 }
 0x7b3   : > { %v3123_v28 = vpop.f32.mrf.mxu0 }
 0x7b5   : > { %v1630_v30 = vpop.f32.mrf.mxu0 }
 0x7b7   : > { %v3124_v31 = vpop.f32.mrf.mxu0 }
 0x7b9   : > { %v1742_v32 = vpop.f32.mrf.mxu0 }
 0x7ba   : > { %v1743_v33 = vadd.f32 %v4238_v22, %v1742_v32 }
 0x7bb   : > { %v3135_v34 = vpop.f32.mrf.mxu0 }
 0x7bc   : > { %v1798_v35 = vsel %vm1099_vm3, %v1743_v33, -inf }
 0x7bd   : > { %1799 = vmax.xlane.f32.xlu0 %v1798_v35  ;;  %v1745_v38 = vpop.f32.mrf.mxu0 }
 0x7bf   : > { %v3136_v39 = vpop.f32.mrf.mxu0 }
 0x7c9   : > { %v4374_v40 = vpop.f32.mrf.mxu1 }
 0x7cb   : > { %v3129_v41 = vpop.f32.mrf.mxu1 }
 0x7cc   : > { %v3415_v41 = vld [vmem:[#allocation12 + $0x30] sm:$0xff]  }
 0x7cd   : > { %v1678_v42 = vpop.f32.mrf.mxu1 }
 0x7ce   : > { %v3416_v42 = vld [vmem:[#allocation12 + $0x28] sm:$0xff]  }
 0x7cf   : > { %v3130_v44 = vpop.f32.mrf.mxu1 }
 0x7d1   : > { %v1792_v45 = vpop.f32.mrf.mxu1 }
 0x7d2   : > { %v1793_v46 = vadd.f32 %v4243_v29, %v1792_v45  ;;  %v1578_v29 = vsel %vm1099_vm3, %v3470_v18, 0.0 }
 0x7d3   : > { %1820 = vrot.lane.b32.xlu0 %v4226_v19, %s3826_s16  ;;  %v3141_v48 = vpop.f32.mrf.mxu1  ;;  %v1343_v19 = vsel %vm1099_vm3, %v4320_v37, 0.0  ;;  %v1112_v37 = vsel %vm1099_vm3, %v4262_v47, 0.0  ;;  %v1115_v47 = vsel %vm1099_vm3, %v4272_v50, 0.0 }
 0x7d4   : > { %v1801_v22 = vsel %vm1099_vm3, %v1793_v46, -inf }
 0x7d5   : > { %1802 = vmax.xlane.f32.xlu1 %v1801_v22  ;;  %v1795_v49 = vpop.f32.mrf.mxu1  ;;  %v3417_v22 = vld [vmem:[#allocation12 + $0x20] sm:$0xff]  }
 0x7d7   : > { %v3142_v53 = vpop.f32.mrf.mxu1 }
 0x7e6   : > { %1868 = vrot.lane.b32.xlu1 %v4253_v36, %s3826_s16 }
 0x7f2   : > { %1341 = vadd.xlane.f32.xlu0 %v1340_v54 }
 0x7f6   : > { %1576 = vadd.xlane.f32.xlu0 %v1575_v55 }
 0x7fa   : > { %1579 = vadd.xlane.f32.xlu0 %v1578_v29  ;;  %v3418_v29 = vld [vmem:[#allocation12 + $0x18] sm:$0xff]  }
 0x80a   : > { %1344 = vadd.xlane.f32.xlu1 %v1343_v19  ;;  %v3419_v19 = vld [vmem:[#allocation12 + $0x10] sm:$0xff]  }
 0x846   : > { %v1800_v56 = vpop.xlane.xlu0 %1799 }
 0x847   : > { %v1804_v58 = vsub.f32 %v1743_v33, %v1800_v56  ;;  %v3420_v56 = vld [vmem:[#allocation12 + $0x8] sm:$0xff]  }
 0x849   : > { %v1806_v59 = vmul.f32 1.442695, %v1804_v58  ;;  %v3421_v58 = vld [vmem:[#allocation12] sm:$0xff]  }
 0x84a   : > { %v1821_v60 = vpop.permute.xlu0 %1820 }
 0x84b   : > { %3471 = vpow2.f32 %v1806_v59  ;;  %v1826_v36 = vsel %vm1125_vm2, %v1821_v60, 0 }
 0x84c   : > { %3144 = vmatpush3.bf16.msra.mxu0 %v1826_v36 }
 0x84d   : > { %3155 = vmatprep.subr.bf16.mxu0 %v3821_v5 }
 0x858   : > { %v3472_v26 = vpop.eup %3471 }
 0x859   : > { %v1810_v61 = vsel %vm1099_vm3, %v3472_v26, 0.0  ;;  %v1818_v62 = vpack.c.bf16 %v3472_v26, %v3472_v26 }
 0x85a   : > { %1811 = vadd.xlane.f32.xlu0 %v1810_v61 }
 0x85b   : > { %3146 = vmatmul.mubr.msk.bf16.vlgmr.msra.gmra.mxu0 %vm1099_vm3, %v1818_v62 }
 0x85c   : > { %3171 = vmatprep.mubr.msk.bf16.mxu0 %vm3823_vm0, %v3821_v5 }
 0x85e   : > { %1113 = vadd.xlane.f32.xlu0 %v1112_v37  ;;  %v1803_v63 = vpop.xlane.xlu1 %1802 }
 0x85f   : > { %v1805_v1 = vsub.f32 %v1793_v46, %v1803_v63 }
 0x861   : > { %v1808_v2 = vmul.f32 1.442695, %v1805_v1 }
 0x862   : > { %v1869_v3 = vpop.permute.xlu1 %1868 }
 0x863   : > { %3473 = vpow2.f32 %v1808_v2  ;;  %v1874_v6 = vsel %vm1125_vm2, %v1869_v3, 0  ;;  %v2873_v3 = vld [vmem:[%s4554_s7] ss:$0 sm:$0xff] }
 0x864   : > { %3150 = vmatpush3.bf16.msra.mxu1 %v1874_v6 }
 0x865   : > { %3175 = vmatprep.subr.bf16.mxu1 %v3821_v5 }
 0x870   : > { %v3474_v8 = vpop.eup %3473 }
 0x871   : > { %v1813_v9 = vsel %vm1099_vm3, %v3474_v8, 0.0  ;;  %v1819_v10 = vpack.c.bf16 %v3474_v8, %v3474_v8 }
 0x872   : > { %1814 = vadd.xlane.f32.xlu1 %v1813_v9 }
 0x873   : > { %3152 = vmatmul.mubr.msk.bf16.vlgmr.msra.gmra.mxu1 %vm1099_vm3, %v1819_v10 }
 0x874   : > { %3191 = vmatprep.mubr.msk.bf16.mxu1 %vm3823_vm0, %v3821_v5 }
 0x876   : > { %1116 = vadd.xlane.f32.xlu1 %v1115_v47 }
 0x87b   : > { %v1342_v11 = vpop.xlane.xlu0 %1341 }
 0x87c   : > { %3475 = vrcp.f32 %v1342_v11 }
 0x87f   : > { %v1577_v15 = vpop.xlane.xlu0 %1576 }
 0x880   : > { %3477 = vrcp.f32 %v1577_v15  ;;  %v3424_v15 = vld [vmem:[#allocation14 + $0x74] ss:$8 sps:$4 sm:$0xff]  }
 0x883   : > { %v1580_v20 = vpop.xlane.xlu0 %1579 }
 0x889   : > { %v3476_v7 = vpop.eup %3475 }
 0x88a   : > { %v1446_v12 = vmul.f32 %v3476_v7, %v4334_v43 }
 0x88c   : > { %v2937_v13 = vpack.c.bf16 %v1446_v12, %v1446_v12 }
 0x88d   : > { %v3478_v16 = vpop.eup %3477 }
 0x88e   : > { %1454 = vrot.lane.b32.xlu0 %v2937_v13, %s3826_s16  ;;  %v1681_v21 = vmul.f32 %v3478_v16, %v4370_v27  ;;  %v3423_v13 = vld [vmem:[#allocation14 + $0x70] ss:$8 sps:$4 sm:$0xff]  }
 0x88f   : > { %3176 = vmatpush3.bf16.msra.mxu1 %v3423_v13 }
 0x890   : > { %v2939_v43 = vpack.c.bf16 %v1681_v21, %v1681_v21  ;;  %3177 = vmatprep.subr.bf16.mxu1 %v3821_v5 }
 0x893   : > { %v1345_v14 = vpop.xlane.xlu1 %1344 }
 0x894   : > { %3479 = vrcp.f32 %v1345_v14 }
 0x895   : > { %3481 = vrcp.f32 %v1580_v20 }
 0x8a1   : > { %v3480_v17 = vpop.eup %3479 }
 0x8a2   : > { %v1447_v18 = vmul.f32 %v3480_v17, %v4338_v57  ;;  %v3482_v23 = vpop.eup %3481 }
 0x8a3   : > { %v1682_v24 = vmul.f32 %v3482_v23, %v4374_v40  ;;  %v3414_v40 = vld [vmem:[#allocation12 + $0x38] sm:$0xff]   ;;  %v3426_v23 = vld [vmem:[#allocation14 + $0x64] ss:$8 sps:$4 sm:$0xff]  }
 0x8a4   : > { %v2938_v50 = vpack.c.bf16 %v1447_v18, %v1447_v18  ;;  %3156 = vmatpush3.bf16.msra.mxu0 %v3414_v40 }
 0x8a5   : > { %v2940_v25 = vpack.c.bf16 %v1682_v24, %v1682_v24  ;;  %3157 = vmatprep.subr.bf16.mxu0 %v3821_v5  ;;  %v3428_v24 = vld [vmem:[#allocation14 + $0x54] ss:$8 sps:$4 sm:$0xff]  }
 0x8a6   : > { %1456 = vrot.lane.b32.xlu1 %v2938_v50, %s3826_s16 }
 0x8a8   : > { %3158 = vmatpush3.bf16.msra.mxu0 %v3415_v41 }
 0x8a9   : > { %3159 = vmatprep.subr.bf16.mxu0 %v3821_v5 }
 0x8aa   : > { %1689 = vrot.lane.b32.xlu1 %v2939_v43, %s3825_s17  ;;  %v3427_v43 = vld [vmem:[#allocation14 + $0x50] ss:$8 sps:$4 sm:$0xff]  }
 0x8ac   : > { %3160 = vmatpush3.bf16.msra.mxu0 %v3416_v42 }
 0x8ad   : > { %3161 = vmatprep.subr.bf16.mxu0 %v3821_v5 }
 0x8ae   : > { %1691 = vrot.lane.b32.xlu1 %v2940_v25, %s3825_s17  ;;  %v3429_v25 = vld [vmem:[#allocation14 + $0x40] ss:$8 sps:$4 sm:$0xff]  }
 0x8b0   : > { %3162 = vmatpush3.bf16.msra.mxu0 %v3417_v22 }
 0x8b1   : > { %3163 = vmatprep.subr.bf16.mxu0 %v3821_v5 }
 0x8b4   : > { %3164 = vmatpush3.bf16.msra.mxu0 %v3418_v29 }
 0x8b5   : > { %3165 = vmatprep.subr.bf16.mxu0 %v3821_v5 }
 0x8b8   : > { %3166 = vmatpush3.bf16.msra.mxu0 %v3419_v19  ;;  %v3439_v19 = vld [vmem:[#allocation15 + $0x78] sm:$0xff]  }
 0x8b9   : > { %3167 = vmatprep.subr.bf16.mxu0 %v3821_v5 }
 0x8bc   : > { %3168 = vmatpush3.bf16.msra.mxu0 %v3420_v56  ;;  %v3440_v56 = vld [vmem:[#allocation15 + $0x38] sm:$0xff]  }
 0x8bd   : > { %3169 = vmatprep.subr.bf16.mxu0 %v3821_v5 }
 0x8c0   : > { %3170 = vmatpush3.bf16.msra.mxu0 %v3421_v58  ;;  %v3441_v58 = vld [vmem:[#allocation15 + $0x70] sm:$0xff]  }
 0x8c1   : > { %3195 = vmatprep.subr.bf16.mxu0 %v3821_v5 }
 0x8e3   : > { %v1812_v28 = vpop.xlane.xlu0 %1811 }
 0x8e7   : > { %v1114_v30 = vpop.xlane.xlu0 %1113 }
 0x8e8   : > { %3483 = vrcp.f32 %v1114_v30  ;;  %v3431_v30 = vld [vmem:[#allocation14 + $0x30] ss:$8 sps:$4 sm:$0xff]  }
 0x8f5   : > { %v3484_v31 = vpop.eup %3483 }
 0x8f6   : > { %v1215_v57 = vmul.f32 %v3484_v31, %v4288_v0  ;;  %v3432_v31 = vld [vmem:[#allocation14 + $0x34] ss:$8 sps:$4 sm:$0xff]  }
 0x8f8   : > { %v2935_v32 = vpack.c.bf16 %v1215_v57, %v1215_v57  ;;  %v3433_v57 = vld [vmem:[#allocation14 + $0x20] ss:$8 sps:$4 sm:$0xff]  }
 0x8fa   : > { %1226 = vst.msk [vmem:[#allocation2] sm:$0xf] %vm1225_vm4, %v2935_v32  ;;  %v3434_v32 = vld [vmem:[#allocation14 + $0x24] ss:$8 sps:$4 sm:$0xff]  }
 0x8fb   : > { %v1815_v27 = vpop.xlane.xlu1 %1814 }
 0x8ff   : > { %v1117_v33 = vpop.xlane.xlu1 %1116 }
 0x900   : > { %3485 = vrcp.f32 %v1117_v33  ;;  %v1455_v34 = vpop.permute.xlu0 %1454  ;;  %v3436_v33 = vld [vmem:[#allocation14 + $0x14] ss:$8 sps:$4 sm:$0xff]  }
 0x901   : > { %1461 = vst.msk [vmem:[#allocation2] sm:$0xf] %vm1460_vm5, %v1455_v34  ;;  %3487 = vrcp.f32 %v1812_v28  ;;  %v3430_v28 = vld [vmem:[#allocation14 + $0x44] ss:$8 sps:$4 sm:$0xff]   ;;  %v3437_v34 = vld [vmem:[#allocation14] ss:$8 sps:$4 sm:$0xff]  }
 0x902   : > { %3489 = vrcp.f32 %v1815_v27  ;;  %v3435_v27 = vld [vmem:[#allocation14 + $0x10] ss:$8 sps:$4 sm:$0xff]  }
 0x90d   : > { %v3486_v35 = vpop.eup %3485 }
 0x90e   : > { %v1216_v38 = vmul.f32 %v3486_v35, %v4290_v4  ;;  %v3488_v44 = vpop.eup %3487  ;;  %v3438_v35 = vld [vmem:[#allocation14 + $0x4] ss:$8 sps:$4 sm:$0xff]  }
 0x90f   : > { %v3490_v59 = vpop.eup %3489 }
 0x910   : > { %v2936_v39 = vpack.c.bf16 %v1216_v38, %v1216_v38 }
 0x912   : > { %1227 = vst.msk [vmem:[#allocation2 + $0x4] sm:$0xf] %vm1225_vm4, %v2936_v39 }
 0x918   : > { %v1457_v0 = vpop.permute.xlu1 %1456 }
 0x919   : > { %1462 = vst.msk [vmem:[#allocation2 + $0x4] sm:$0xf] %vm1460_vm5, %v1457_v0 }
 0x91b   : > { %v1862_v45 = vpop.f32.mrf.mxu0 }
 0x91c   : > { %v1916_v46 = vmul.f32 %v3488_v44, %v1862_v45  ;;  %v1690_v48 = vpop.permute.xlu1 %1689 }
 0x91d   : > { %1696 = vst.msk [vmem:[#allocation2] sm:$0xf] %vm1695_vm6, %v1690_v48  ;;  %v3147_v4 = vpop.f32.mrf.mxu0 }
 0x91e   : > { %v2941_v49 = vpack.c.bf16 %v1916_v46, %v1916_v46  ;;  %v2883_v46 = vld [vmem:[%s4555_s8] ss:$0 sm:$0xff] }
 0x91f   : > { %v1865_v53 = vpop.f32.mrf.mxu0 }
 0x920   : > { %1924 = vrot.lane.b32.xlu0 %v2941_v49, %s3824_s29  ;;  %v1692_v54 = vpop.permute.xlu1 %1691  ;;  %v2884_v49 = vld [vmem:[%s4556_s9] ss:$0 sm:$0xff] }
 0x921   : > { %1697 = vst.msk [vmem:[#allocation2 + $0x4] sm:$0xf] %vm1695_vm6, %v1692_v54  ;;  %v3148_v55 = vpop.f32.mrf.mxu0 }
 0x933   : > { %v1910_v60 = vpop.f32.mrf.mxu1 }
 0x934   : > { %v1917_v36 = vmul.f32 %v3490_v59, %v1910_v60  ;;  %v3442_v59 = vld [vmem:[#allocation15 + $0x30] sm:$0xff]   ;;  %v3443_v60 = vld [vmem:[#allocation15 + $0x68] sm:$0xff]  }
 0x935   : > { %v3153_v26 = vpop.f32.mrf.mxu1 }
 0x936   : > { %v2942_v61 = vpack.c.bf16 %v1917_v36, %v1917_v36  ;;  %v3444_v36 = vld [vmem:[#allocation15 + $0x28] sm:$0xff]   ;;  %v3445_v26 = vld [vmem:[#allocation15 + $0x60] sm:$0xff]  }
 0x937   : > { %v1913_v62 = vpop.f32.mrf.mxu1 }
 0x938   : > { %1926 = vrot.lane.b32.xlu1 %v2942_v61, %s3824_s29  ;;  %v3446_v61 = vld [vmem:[#allocation15 + $0x20] sm:$0xff]   ;;  %v3447_v62 = vld [vmem:[#allocation15 + $0x58] sm:$0xff]  }
 0x939   : > { %v3154_v37 = vpop.f32.mrf.mxu1 }
 0x93a   : > { %v3448_v37 = vld [vmem:[#allocation15 + $0x18] sm:$0xff]  }
 0x992   : > { %v1925_v63 = vpop.permute.xlu0 %1924 }
 0x993   : > { %1931 = vst.msk [vmem:[#allocation2] sm:$0xf] %vm1930_vm7, %v1925_v63  ;;  %v3449_v63 = vld [vmem:[#allocation15 + $0x50] sm:$0xff]  }
 0x9aa   : > { %v1927_v1 = vpop.permute.xlu1 %1926 }
 0x9ab   : > { %1932 = vst.msk [vmem:[#allocation2 + $0x4] sm:$0xf] %vm1930_vm7, %v1927_v1  ;;  %v3450_v1 = vld [vmem:[#allocation15 + $0x10] sm:$0xff]  }
 0x9b2   : > { %v3422_v2 = vld [vmem:[#allocation2] sm:$0xff]  }
 0x9b3   : > { %3172 = vmatmul.mubr.bf16.vlgmr.msra.gmra.mxu0 %v3422_v2  ;;  %v3451_v2 = vld [vmem:[#allocation15 + $0x48] sm:$0xff]  }
 0x9b4   : > { %3211 = vmatprep.mubr.msk.bf16.mxu0 %vm3823_vm0, %v3821_v5  ;;  %3196 = vmatpush3.bf16.msra.mxu0 %v3424_v15 }
 0x9b5   : > { %3197 = vmatprep.subr.bf16.mxu0 %v3821_v5 }
 0x9b8   : > { %3198 = vmatpush3.bf16.msra.mxu0 %v3426_v23 }
 0x9b9   : > { %3199 = vmatprep.subr.bf16.mxu0 %v3821_v5 }
 0x9bc   : > { %3200 = vmatpush3.bf16.msra.mxu0 %v3428_v24 }
 0x9bd   : > { %3201 = vmatprep.subr.bf16.mxu0 %v3821_v5 }
 0x9c0   : > { %3202 = vmatpush3.bf16.msra.mxu0 %v3430_v28 }
 0x9c1   : > { %3203 = vmatprep.subr.bf16.mxu0 %v3821_v5 }
 0x9c4   : > { %3204 = vmatpush3.bf16.msra.mxu0 %v3432_v31 }
 0x9c5   : > { %3205 = vmatprep.subr.bf16.mxu0 %v3821_v5 }
 0x9c8   : > { %3206 = vmatpush3.bf16.msra.mxu0 %v3434_v32 }
 0x9c9   : > { %3207 = vmatprep.subr.bf16.mxu0 %v3821_v5 }
 0x9cc   : > { %3208 = vmatpush3.bf16.msra.mxu0 %v3436_v33 }
 0x9cd   : > { %3209 = vmatprep.subr.bf16.mxu0 %v3821_v5 }
 0x9d0   : > { %3210 = vmatpush3.bf16.msra.mxu0 %v3438_v35 }
 0x9d1   : > { %3235 = vmatprep.subr.bf16.mxu0 %v3821_v5 }
 0xa73   : > { %v2046_v6 = vpop.f32.mrf.mxu0 }
 0xa74   : > { %v2047_v8 = vadd.f32 %v2873_v3, %v2046_v6  ;;  %v3453_v6 = vld [vmem:[#allocation15 + $0x40] sm:$0xff]  }
 0xa75   : > { %v3173_v9 = vpop.f32.mrf.mxu0 }
 0xa76   : > { %v2053_v10 = vadd.f32 %v2047_v8, %v4195_v51  ;;  %v3454_v8 = vld [vmem:[#allocation15] sm:$0xff]  }
 0xa77   : > { %v2049_v47 = vpop.f32.mrf.mxu0  ;;  %v2885_v9 = vld [vmem:[%s4558_s11] ss:$0 sm:$0xff] }
 0xa78   : > { %v2050_v11 = vadd.f32 %v2873_v3, %v2049_v47  ;;  %2057 = vadd.xlane.f32.xlu0 %v2053_v10  ;;  %v3452_v3 = vld [vmem:[#allocation15 + $0x8] sm:$0xff]  }
 0xa79   : > { %v3174_v7 = vpop.f32.mrf.mxu0 }
 0xa7a   : > { %v2054_v12 = vadd.f32 %v2050_v11, %v4197_v52  ;;  %v3425_v52 = vld [vmem:[#allocation14 + $0x60] ss:$8 sps:$4 sm:$0xff]  }
 0xa7b   : > { %3178 = vmatpush3.bf16.msra.mxu1 %v3425_v52 }
 0xa7c   : > { %2059 = vadd.xlane.f32.xlu1 %v2054_v12  ;;  %3179 = vmatprep.subr.bf16.mxu1 %v3821_v5 }
 0xa7f   : > { %3180 = vmatpush3.bf16.msra.mxu1 %v3427_v43 }
 0xa80   : > { %3181 = vmatprep.subr.bf16.mxu1 %v3821_v5 }
 0xa83   : > { %3182 = vmatpush3.bf16.msra.mxu1 %v3429_v25 }
 0xa84   : > { %3183 = vmatprep.subr.bf16.mxu1 %v3821_v5 }
 0xa87   : > { %3184 = vmatpush3.bf16.msra.mxu1 %v3431_v30 }
 0xa88   : > { %3185 = vmatprep.subr.bf16.mxu1 %v3821_v5 }
 0xa8b   : > { %3186 = vmatpush3.bf16.msra.mxu1 %v3433_v57 }
 0xa8c   : > { %3187 = vmatprep.subr.bf16.mxu1 %v3821_v5 }
 0xa8f   : > { %3188 = vmatpush3.bf16.msra.mxu1 %v3435_v27 }
 0xa90   : > { %3189 = vmatprep.subr.bf16.mxu1 %v3821_v5 }
 0xa93   : > { %3190 = vmatpush3.bf16.msra.mxu1 %v3437_v34 }
 0xa94   : > { %3215 = vmatprep.subr.bf16.mxu1 %v3821_v5 }
 0xb01   : > { %v2058_v14 = vpop.xlane.xlu0 %2057 }
 0xb02   : > { %v2061_v20 = vmul.f32 0.0078125, %v2058_v14 }
 0xb04   : > { %v2063_v16 = vsub.f32 %v2053_v10, %v2061_v20  ;;  %v2894_v10 = vld [vmem:[%s4558_s11 + $0x1] ss:$0 sm:$0xff] }
 0xb05   : > { %v2060_v17 = vpop.xlane.xlu1 %2059 }
 0xb06   : > { %v2062_v51 = vmul.f32 0.0078125, %v2060_v17  ;;  %v2065_v18 = vmul.f32 %v2063_v16, %v2063_v16 }
 0xb08   : > { %v2064_v50 = vsub.f32 %v2054_v12, %v2062_v51  ;;  %2067 = vadd.xlane.f32.xlu0 %v2065_v18 }
 0xb0a   : > { %v2066_v21 = vmul.f32 %v2064_v50, %v2064_v50 }
 0xb0c   : > { %2069 = vadd.xlane.f32.xlu0 %v2066_v21 }
 0xb91   : > { %v2068_v38 = vpop.xlane.xlu0 %2067 }
 0xb92   : > { %v2071_v39 = vmul.f32 0.0078125, %v2068_v38 }
 0xb94   : > { %v2073_v40 = vadd.f32 1e-12, %v2071_v39 }
 0xb95   : > { %v2070_v41 = vpop.xlane.xlu0 %2069 }
 0xb96   : > { %3491 = vrsqrt.f32 %v2073_v40  ;;  %v2072_v0 = vmul.f32 0.0078125, %v2070_v41 }
 0xb98   : > { %v2074_v42 = vadd.f32 1e-12, %v2072_v0 }
 0xb9a   : > { %3493 = vrsqrt.f32 %v2074_v42 }
 0xba3   : > { %v3492_v44 = vpop.eup %3491 }
 0xba4   : > { %v2077_v45 = vmul.f32 %v3492_v44, %v2063_v16 }
 0xba6   : > { %v2085_v22 = vmul.f32 %v2883_v46, %v2077_v45 }
 0xba7   : > { %v3494_v48 = vpop.eup %3493 }
 0xba8   : > { %v2078_v4 = vmul.f32 %v3494_v48, %v2064_v50  ;;  %v4453_v54 = vadd.f32 %v2884_v49, %v2085_v22 }
 0xbaa   : > { %v2086_v53 = vmul.f32 %v2883_v46, %v2078_v4 }
 0xbac   : > { %v4455_v55 = vadd.f32 %v2884_v49, %v2086_v53 }
 0xbae   : > { %v2095_v29 = vpack.c.bf16 %v4455_v55, %v4453_v54 }
 0xbb0   : > { %3192 = vmatmul.mubr.bf16.vlgmr.msra.gmra.mxu1 %v2095_v29  ;;  %3212 = vmatmul.mubr.bf16.vlgmr.msra.gmra.mxu0 %v2095_v29 }
 0xbb1   : > { %3231 = vmatprep.mubr.msk.bf16.mxu1 %vm3823_vm0, %v3821_v5  ;;  %3251 = vmatprep.mubr.msk.bf16.mxu0 %vm3823_vm0, %v3821_v5 }
 0xbb2   : > { %3216 = vmatpush3.bf16.msra.mxu1 %v3439_v19  ;;  %3236 = vmatpush3.bf16.msra.mxu0 %v3440_v56 }
 0xbb3   : > { %3217 = vmatprep.subr.bf16.mxu1 %v3821_v5  ;;  %3237 = vmatprep.subr.bf16.mxu0 %v3821_v5 }
 0xbb6   : > { %3218 = vmatpush3.bf16.msra.mxu1 %v3441_v58  ;;  %3238 = vmatpush3.bf16.msra.mxu0 %v3442_v59 }
 0xbb7   : > { %3219 = vmatprep.subr.bf16.mxu1 %v3821_v5  ;;  %3239 = vmatprep.subr.bf16.mxu0 %v3821_v5 }
 0xbba   : > { %3220 = vmatpush3.bf16.msra.mxu1 %v3443_v60  ;;  %3240 = vmatpush3.bf16.msra.mxu0 %v3444_v36 }
 0xbbb   : > { %3221 = vmatprep.subr.bf16.mxu1 %v3821_v5  ;;  %3241 = vmatprep.subr.bf16.mxu0 %v3821_v5 }
 0xbbe   : > { %3222 = vmatpush3.bf16.msra.mxu1 %v3445_v26  ;;  %3242 = vmatpush3.bf16.msra.mxu0 %v3446_v61 }
 0xbbf   : > { %3223 = vmatprep.subr.bf16.mxu1 %v3821_v5  ;;  %3243 = vmatprep.subr.bf16.mxu0 %v3821_v5 }
 0xbc2   : > { %3224 = vmatpush3.bf16.msra.mxu1 %v3447_v62  ;;  %3244 = vmatpush3.bf16.msra.mxu0 %v3448_v37  ;;  %v2919_v62 = vld [vmem:[%s4560_s13] ss:$0 sm:$0xff] }
 0xbc3   : > { %3225 = vmatprep.subr.bf16.mxu1 %v3821_v5  ;;  %3245 = vmatprep.subr.bf16.mxu0 %v3821_v5 }
 0xbc6   : > { %3226 = vmatpush3.bf16.msra.mxu1 %v3449_v63  ;;  %3246 = vmatpush3.bf16.msra.mxu0 %v3450_v1 }
 0xbc7   : > { %3227 = vmatprep.subr.bf16.mxu1 %v3821_v5  ;;  %3247 = vmatprep.subr.bf16.mxu0 %v3821_v5 }
 0xbca   : > { %3228 = vmatpush3.bf16.msra.mxu1 %v3451_v2  ;;  %3248 = vmatpush3.bf16.msra.mxu0 %v3452_v3 }
 0xbcb   : > { %3229 = vmatprep.subr.bf16.mxu1 %v3821_v5  ;;  %3249 = vmatprep.subr.bf16.mxu0 %v3821_v5 }
 0xbce   : > { %3230 = vmatpush3.bf16.msra.mxu1 %v3453_v6  ;;  %3250 = vmatpush3.bf16.msra.mxu0 %v3454_v8 }
 0xc70   : > { %v2201_v47 = vpop.f32.mrf.mxu1  ;;  %v2348_v11 = vpop.f32.mrf.mxu0 }
 0xc71   : > { %v2202_v7 = vadd.f32 %v2885_v9, %v2201_v47  ;;  %v2349_v12 = vadd.f32 %v2894_v10, %v2348_v11 }
 0xc72   : > { %v3193_v13 = vpop.f32.mrf.mxu1  ;;  %v3213_v15 = vpop.f32.mrf.mxu0 }
 0xc73   : > { %v2208_v14 = vmul.f32 %v2202_v7, %v2202_v7  ;;  %v2355_v5 = vmul.f32 %v2349_v12, %v2349_v12 }
 0xc74   : > { %v2204_v20 = vpop.f32.mrf.mxu1  ;;  %v2351_v16 = vpop.f32.mrf.mxu0 }
 0xc75   : > { %v2210_v17 = vmul.f32 %v2208_v14, %v2202_v7  ;;  %v2357_v51 = vmul.f32 %v2355_v5, %v2349_v12  ;;  %v2205_v18 = vadd.f32 %v2885_v9, %v2204_v20  ;;  %v2352_v50 = vadd.f32 %v2894_v10, %v2351_v16 }
 0xc76   : > { %v3194_v21 = vpop.f32.mrf.mxu1  ;;  %v3214_v52 = vpop.f32.mrf.mxu0 }
 0xc77   : > { %v2212_v23 = vmul.f32 0.044715, %v2210_v17  ;;  %v2359_v43 = vmul.f32 0.044715, %v2357_v51  ;;  %v2209_v24 = vmul.f32 %v2205_v18, %v2205_v18  ;;  %v2356_v25 = vmul.f32 %v2352_v50, %v2352_v50 }
 0xc79   : > { %v2214_v28 = vadd.f32 %v2212_v23, %v2202_v7  ;;  %v2361_v30 = vadd.f32 %v2359_v43, %v2349_v12  ;;  %v2211_v31 = vmul.f32 %v2209_v24, %v2205_v18  ;;  %v2358_v57 = vmul.f32 %v2356_v25, %v2352_v50  ;;  %v2920_v43 = vld [vmem:[%s4561_s14] ss:$0 sm:$0xff] }
 0xc7b   : > { %v2216_v32 = vmul.f32 0.7978846, %v2214_v28  ;;  %v2363_v27 = vmul.f32 0.7978846, %v2361_v30  ;;  %v2213_v33 = vmul.f32 0.044715, %v2211_v31 }
 0xc7c   : > { %v2360_v34 = vmul.f32 0.044715, %v2358_v57  ;;  %v2921_v30 = vld [vmem:[%s4622_s18] ss:$0 sm:$0xff] }
 0xc7d   : > { %3495 = vtanh.f32 %v2216_v32  ;;  %v2215_v35 = vadd.f32 %v2213_v33, %v2205_v18 }
 0xc7e   : > { %3497 = vtanh.f32 %v2363_v27  ;;  %v2362_v38 = vadd.f32 %v2360_v34, %v2352_v50 }
 0xc7f   : > { %v2217_v39 = vmul.f32 0.7978846, %v2215_v35 }
 0xc80   : > { %v2364_v40 = vmul.f32 0.7978846, %v2362_v38 }
 0xc81   : > { %3499 = vtanh.f32 %v2217_v39 }
 0xc82   : > { %3501 = vtanh.f32 %v2364_v40 }
 0xc8a   : > { %v3496_v41 = vpop.eup %3495 }
 0xc8b   : > { %v3498_v0 = vpop.eup %3497  ;;  %v2220_v42 = vadd.f32 1.0, %v3496_v41 }
 0xc8c   : > { %v2367_v44 = vadd.f32 1.0, %v3498_v0 }
 0xc8d   : > { %v2222_v48 = vmul.f32 0.5, %v2220_v42 }
 0xc8e   : > { %v3500_v45 = vpop.eup %3499  ;;  %v2369_v22 = vmul.f32 0.5, %v2367_v44 }
 0xc8f   : > { %v3502_v46 = vpop.eup %3501  ;;  %v2221_v4 = vadd.f32 1.0, %v3500_v45  ;;  %v2224_v19 = vmul.f32 %v2222_v48, %v2202_v7 }
 0xc90   : > { %v2368_v49 = vadd.f32 1.0, %v3502_v46  ;;  %v2371_v58 = vmul.f32 %v2369_v22, %v2349_v12 }
 0xc91   : > { %v2223_v53 = vmul.f32 0.5, %v2221_v4 }
 0xc92   : > { %v2370_v29 = vmul.f32 0.5, %v2368_v49 }
 0xc93   : > { %v2225_v56 = vmul.f32 %v2223_v53, %v2205_v18 }
 0xc94   : > { %v2372_v59 = vmul.f32 %v2370_v29, %v2352_v50 }
 0xc95   : > { %v2226_v60 = vpack.c.bf16 %v2225_v56, %v2224_v19 }
 0xc96   : > { %v2373_v36 = vpack.c.bf16 %v2372_v59, %v2371_v58 }
 0xc97   : > { %3252 = vmatmul.mubr.bf16.vlgmr.msra.gmra.mxu0 %v2226_v60 }
 0xc98   : > { %3232 = vmatmul.mubr.bf16.vlgmr.msra.gmra.mxu1 %v2373_v36 }
 0xd57   : > { %v2561_v26 = vpop.f32.mrf.mxu0 }
 0xd58   : > { %v2472_v61 = vpop.f32.mrf.mxu1 }
 0xd59   : > { %v2562_v37 = vadd.f32 %v2561_v26, %v2472_v61  ;;  %v3253_v63 = vpop.f32.mrf.mxu0 }
 0xd5a   : > { %v3233_v1 = vpop.f32.mrf.mxu1 }
 0xd5b   : > { %v2575_v2 = vadd.f32 %v2919_v62, %v2562_v37  ;;  %v2564_v3 = vpop.f32.mrf.mxu0 }
 0xd5c   : > { %v2475_v6 = vpop.f32.mrf.mxu1 }
 0xd5d   : > { %v2565_v8 = vadd.f32 %v2564_v3, %v2475_v6  ;;  %v3254_v9 = vpop.f32.mrf.mxu0  ;;  %v2577_v10 = vadd.f32 %v2575_v2, %v4453_v54 }
 0xd5e   : > { %v3234_v47 = vpop.f32.mrf.mxu1 }
 0xd5f   : > { %v2576_v11 = vadd.f32 %v2919_v62, %v2565_v8  ;;  %2581 = vadd.xlane.f32.xlu0 %v2577_v10 }
 0xd61   : > { %v2578_v7 = vadd.f32 %v2576_v11, %v4455_v55 }
 0xd63   : > { %2583 = vadd.xlane.f32.xlu1 %v2578_v7 }
 0xde8   : > { %v2582_v12 = vpop.xlane.xlu0 %2581 }
 0xde9   : > { %v2585_v13 = vmul.f32 0.0078125, %v2582_v12 }
 0xdeb   : > { %v2587_v15 = vsub.f32 %v2577_v10, %v2585_v13 }
 0xdec   : > { %v2584_v14 = vpop.xlane.xlu1 %2583 }
 0xded   : > { %v2586_v5 = vmul.f32 0.0078125, %v2584_v14  ;;  %v2589_v20 = vmul.f32 %v2587_v15, %v2587_v15 }
 0xdef   : > { %v2588_v16 = vsub.f32 %v2578_v7, %v2586_v5  ;;  %2591 = vadd.xlane.f32.xlu0 %v2589_v20 }
 0xdf1   : > { %v2590_v17 = vmul.f32 %v2588_v16, %v2588_v16 }
 0xdf3   : > { %2593 = vadd.xlane.f32.xlu1 %v2590_v17 }
 0xe78   : > { %v2592_v51 = vpop.xlane.xlu0 %2591 }
 0xe79   : > { %v2595_v18 = vmul.f32 0.0078125, %v2592_v51 }
 0xe7b   : > { %v2597_v54 = vadd.f32 1e-12, %v2595_v18 }
 0xe7c   : > { %v2594_v50 = vpop.xlane.xlu1 %2593 }
 0xe7d   : > { %3503 = vrsqrt.f32 %v2597_v54  ;;  %v2596_v21 = vmul.f32 0.0078125, %v2594_v50 }
 0xe7f   : > { %v2598_v55 = vadd.f32 1e-12, %v2596_v21 }
 0xe81   : > { %3505 = vrsqrt.f32 %v2598_v55 }
 0xe8a   : > { %v3504_v52 = vpop.eup %3503 }
 0xe8b   : > { %v2601_v23 = vmul.f32 %v3504_v52, %v2587_v15 }
 0xe8d   : > { %v2609_v25 = vmul.f32 %v2920_v43, %v2601_v23 }
 0xe8e   : > { %v3506_v24 = vpop.eup %3505 }
 0xe8f   : > { %v2602_v28 = vmul.f32 %v3506_v24, %v2588_v16  ;;  %v2617_v57 = vadd.f32 %v2921_v30, %v2609_v25 }
 0xe91   : > { %v2610_v31 = vmul.f32 %v2920_v43, %v2602_v28 }
 0xe93   : > { %v2618_v32 = vadd.f32 %v2921_v30, %v2610_v31 }
 0xe95   : > { %v2951_v27 = vpack.c.bf16 %v2618_v32, %v2617_v57 }
 0xe97   : > { %2952 = vst [vmem:[%s662_s20] sm:$0xff] %v2951_v27  }
 0xe98   : > { %3732 = shalt.err (!%p3729_p1)
}
 0xe99   : > { %s3733_s19 = scalar_lea.hbm %s4500_s15, 128  ;;  %s3737_s29 = scalar_lea.hbm %s4623_s12, 256 }
 0xe9a   : > { %p3734_p2 = scmp.ne.s32.totalorder %s4500_s15, %s3733_s19  ;;  %p3738_p9 = scmp.lt.s32.totalorder %s4500_s15, %s4623_s12 }
 0xe9b   : > { %p3739_p6 = scmp.lt.s32.totalorder %s3737_s29, %s3733_s19 }
 0xe9c   : > { %p3735_p5 = pnand %p3734_p2, %p4624_p3 }
 0xe9d   : > { %p3740_p13 = por %p3739_p6, %p3738_p9 }
 0xe9e   : > { %p3736_p8 = pneg %p3735_p5 }
 0xea0   : > { %p3741_p0 = pnand %p3740_p13, %p3736_p8 }
 0xea2   : > { %3744 = shalt.err (!%p3741_p0)
}
 0xea3   : > { %s3828_s3 = smov 4  }
 0xea4   : > { %3283 = dma.vmem_to_hbm [thread:$0]  (%p4624_p3), %s4502_s23, 128, %s4500_s15, %s2624_s6, %s3825_s17, %s3825_s17, %s3828_s3  }
 0xea5 PF: > { %s4625_s20 = sld [smem:[#allocation25_spill]]  ;;  %p4628_p11 = scmp.ge.s32.totalorder %s3803_s24, 2 }
 0xea6   : > { %s4626_s21 = sld [smem:[#allocation29_spill]] }
 0xeab   : > { %s2652_s0 = sand.u32 1, %s4625_s20  }
 0xeac   : > { %p4627_p10 = scmp.ne.s32.totalorder %s4626_s21, 0  ;;  %s2653_s28 = scalar_lea.sflag [#allocation5], %s2652_s0 }
 0xeae   : > { %p3312_p4 = pnand %p4628_p11, %p4627_p10 }
 0xeb0   : > { %p3313_p7 = pneg %p3312_p4 }
 0xeb2   : > { %3786 = dma.done.wait (%p3313_p7), %s2653_s28, 128  }
 0xeb3   : > { %3788 = vsyncadd (%p3313_p7), %s2653_s28, 4294967168  ;;  %s4629_s24 = sld [smem:[#allocation27_spill]]  ;;  %s4632_s21 = smov %s3795_s22 }
 0xeb4   : > { %s4630_s30 = sld [smem:[#allocation26_spill]] }
 0xeb5   : > { %s4631_s23 = sld [smem:[#allocation28_spill]] }
 0xeb9   : > { %p35_p12 = scmp.ge.s32.totalorder %s4629_s24, 4  }
 0xeba   : > { %s4633_s22 = smov %s4630_s30 }
 0xebb   :  { %37 = sbr.rel (!%p35_p12) target bundleno = 20 (0x14), region = 166 }
 0xec0   :  { %2658 = vsyncpa [#allocation4], 1 }
 0xec1   :  { %2660 = vsyncpa [#allocation4 + $0x1], 1 }
 0xec2   :  { %2661 = vsyncpa [#allocation7], 1 }
 0xec3   :  { %2663 = vsyncpa [#allocation7 + $0x1], 1 }
 0xec4   :  { %2664 = vsyncpa [#allocation10], 1 }
 0xec5   :  { %2665 = vsyncpa [#allocation13], 1 }
 0xec6   :  { %2666 = vsyncpa [#allocation16], 1 }
 0xec7   :  { %2667 = vsyncpa [#allocation5], 1 }
 0xec8   :  { %2669 = vsyncpa [#allocation5 + $0x1], 1 }

</bundles_post_ra>
